<compile_context>
chip_gen: v6e
topology: v6e:2x2x1
jax: 0.10.0
libtpu: 0.0.40
codegen_flags: <defaults>
</compile_context>

<pallas_src>
import jax
import jax.numpy as jnp
from jax import lax
from jax.experimental import pallas as pl
from jax.experimental.pallas import tpu as pltpu

VOICES = 5
NUM_HIDDEN_AGGREG = 130
NUM_HIDDEN_VOICEGEN = 100
NUM_OUTPUT = 12
IN_DIM = NUM_HIDDEN_AGGREG + 2 * NUM_OUTPUT  # 154
HIDDEN_PAD = 128                              # padded hidden (one vreg lane block / gate)


def psampler_kernel(x_ref, u_ref, h0_ref, c0_ref,
                    wih_x_ref, wih_sb_ref, whh_ref, bias_ref,
                    wlin_ref, blin_ref,
                    notes_ref, p_ref, h1_ref, c1_ref):
    x = x_ref[...].astype(jnp.float32)                       # (B, 130)
    B = x.shape[0]
    NO = NUM_OUTPUT
    HP = HIDDEN_PAD

    sampled = jnp.zeros((B, NO), jnp.float32)
    banned = jnp.zeros((B, NO), jnp.float32)
    sample_p = jnp.zeros((B, NO), jnp.float32)
    neg_sample_p = jnp.ones((B, NO), jnp.float32)
    ban_p = jnp.zeros((B, NO), jnp.float32)
    neg_ban_p = jnp.ones((B, NO), jnp.float32)

    # Inclusive prefix-sum matrix (multinomial CDF via a tiny MXU matmul).
    rows = lax.broadcasted_iota(jnp.int32, (2 * NO, 2 * NO), 0)
    cols = lax.broadcasted_iota(jnp.int32, (2 * NO, 2 * NO), 1)
    tri = (rows <= cols).astype(jnp.float32)                 # (24, 24)
    cat_ids = lax.broadcasted_iota(jnp.int32, (B, 2 * NO), 1)

    wih_sb = wih_sb_ref[...]                                 # (24,  4*HP)
    whh = whh_ref[...]                                       # (HP,  4*HP)
    wlin = wlin_ref[...]                                     # (HP,  24)
    blin = blin_ref[...]                                     # (1,   24)

    # Loop-invariant: x @ W_ih[x-part] + (b_ih + b_hh), computed once.
    gx = jnp.dot(x, wih_x_ref[...], preferred_element_type=jnp.float32) + bias_ref[...]

    for v in range(VOICES):                                  # unrolled at trace time
        h = h0_ref[v]                                        # (B, HP), padded lanes == 0
        c = c0_ref[v]
        sb = jnp.concatenate([sampled, banned], axis=1)      # (B, 24)

        gates = (gx
                 + jnp.dot(sb, wih_sb, preferred_element_type=jnp.float32)
                 + jnp.dot(h, whh, preferred_element_type=jnp.float32))  # (B, 4*HP)

        # PyTorch LSTM gate order: input, forget, cell(g), output; exact-vreg slices.
        i_g = jax.nn.sigmoid(gates[:, 0 * HP:1 * HP])
        f_g = jax.nn.sigmoid(gates[:, 1 * HP:2 * HP])
        g_g = jnp.tanh(gates[:, 2 * HP:3 * HP])
        o_g = jax.nn.sigmoid(gates[:, 3 * HP:4 * HP])
        c_new = f_g * c + i_g * g_g
        h_new = o_g * jnp.tanh(c_new)                        # padded lanes stay 0
        h1_ref[v] = h_new
        c1_ref[v] = c_new

        logits = jnp.dot(h_new, wlin, preferred_element_type=jnp.float32) + blin  # (B, 24)
        # Max subtraction: preserves the normalized distribution, avoids exp overflow.
        ex = jnp.exp(logits - jnp.max(logits, axis=1, keepdims=True))
        coeff_half = (1.0 - sampled) * (1.0 - banned)
        out_s = coeff_half * ex[:, :NO]
        out_b = coeff_half * ex[:, NO:]
        inv = 1.0 / (jnp.sum(out_s, axis=1, keepdims=True)
                     + jnp.sum(out_b, axis=1, keepdims=True))
        out_s = out_s * inv
        out_b = out_b * inv

        sample_p = sample_p + neg_sample_p * out_s
        neg_sample_p = neg_sample_p * (1.0 - out_s)
        ban_p = ban_p + neg_ban_p * out_b
        neg_ban_p = neg_ban_p * (1.0 - out_b)

        # torch.multinomial(out, 1) -> one-hot, via inverse CDF on a wrapper-drawn uniform.
        out24 = jnp.concatenate([out_s, out_b], axis=1)                      # (B, 24)
        cdf = jnp.dot(out24, tri, preferred_element_type=jnp.float32)        # (B, 24)
        u = u_ref[v]                                                         # (B, 1)
        idx = jnp.sum((cdf < u).astype(jnp.int32), axis=1, keepdims=True)
        idx = jnp.minimum(idx, 2 * NO - 1)
        one_hot = (cat_ids == idx).astype(jnp.float32)                       # (B, 24)

        # TODO(synk): training-mode branch (re-masking the sample with next_x)
        # is not implemented; eval-mode semantics only.
        sampled = sampled + one_hot[:, :NO]
        banned = banned + one_hot[:, NO:]

    notes_ref[...] = sampled
    p_ref[...] = sample_p * (1.0 - ban_p)


def prepare_params(w_ih, w_hh, b_ih, b_hh, w_lin, b_lin):
    """Convert PyTorch-layout PSampler parameters to the padded kernel layout.

    w_ih:  (4H, IN_DIM)  nn.LSTM weight_ih_l0, gate order i,f,g,o
    w_hh:  (4H, H)       nn.LSTM weight_hh_l0
    b_ih, b_hh: (4H,)
    w_lin: (2*NO, H), b_lin: (2*NO,)   nn.Linear
    """
    H, HP, NO = NUM_HIDDEN_VOICEGEN, HIDDEN_PAD, NUM_OUTPUT
    assert w_ih.shape == (4 * H, IN_DIM) and w_hh.shape == (4 * H, H)
    assert w_lin.shape == (2 * NO, H)

    def pad_gate_cols(w):  # (IN, 4H) -> (IN, 4*HP), each gate zero-padded to HP lanes
        parts = [jnp.pad(w[:, g * H:(g + 1) * H], ((0, 0), (0, HP - H))) for g in range(4)]
        return jnp.concatenate(parts, axis=1)

    w_ih_t = w_ih.T                                                  # (IN_DIM, 4H)
    wih_x = pad_gate_cols(w_ih_t[:NUM_HIDDEN_AGGREG])                # (130, 4*HP)
    wih_sb = pad_gate_cols(w_ih_t[NUM_HIDDEN_AGGREG:])               # (24,  4*HP)
    whh = pad_gate_cols(jnp.pad(w_hh.T, ((0, HP - H), (0, 0))))      # (HP,  4*HP)
    bias = pad_gate_cols((b_ih + b_hh)[None, :])                     # (1,   4*HP)
    wlin = jnp.pad(w_lin.T, ((0, HP - H), (0, 0)))                   # (HP,  24)
    blin = b_lin[None, :]                                            # (1,   24)
    return wih_x, wih_sb, whh, bias, wlin, blin


def psampler_forward(x, h0, c0, kernel_params, key):
    """x: (1, B, 130); h0/c0: (VOICES, B, 100).
    Returns (sampled_notes (1,B,12), probs (1,B,12), h_new, c_new)."""
    _, B, _ = x.shape
    H, HP = NUM_HIDDEN_VOICEGEN, HIDDEN_PAD
    wih_x, wih_sb, whh, bias, wlin, blin = kernel_params

    # All randomness drawn once up-front (one uniform per voice per row).
    u = jax.random.uniform(key, (VOICES, B, 1), jnp.float32)
    h0p = jnp.pad(h0, ((0, 0), (0, 0), (0, HP - H)))
    c0p = jnp.pad(c0, ((0, 0), (0, 0), (0, HP - H)))

    vmem = pl.BlockSpec(memory_space=pltpu.MemorySpace.VMEM)
    out_shapes = (
        jax.ShapeDtypeStruct((B, NUM_OUTPUT), jnp.float32),
        jax.ShapeDtypeStruct((B, NUM_OUTPUT), jnp.float32),
        jax.ShapeDtypeStruct((VOICES, B, HP), jnp.float32),
        jax.ShapeDtypeStruct((VOICES, B, HP), jnp.float32),
    )
    notes, p, h1p, c1p = pl.pallas_call(
        psampler_kernel,
        out_shape=out_shapes,
        in_specs=[vmem] * 10,
        out_specs=(vmem, vmem, vmem, vmem),
    )(x[0], u, h0p, c0p, wih_x, wih_sb, whh, bias, wlin, blin)
    return notes[None], p[None], h1p[..., :H], c1p[..., :H]


if __name__ == "__main__":
    key = jax.random.PRNGKey(0)
    ks = jax.random.split(key, 8)
    B = 2
    H = NUM_HIDDEN_VOICEGEN
    NO = NUM_OUTPUT
    s = 1.0 / (H ** 0.5)

    # Deterministic synthetic parameters in PyTorch layout (nn.LSTM / nn.Linear).
    w_ih = jax.random.uniform(ks[1], (4 * H, IN_DIM), jnp.float32, -s, s)
    w_hh = jax.random.uniform(ks[2], (4 * H, H), jnp.float32, -s, s)
    b_ih = jax.random.uniform(ks[3], (4 * H,), jnp.float32, -s, s)
    b_hh = jax.random.uniform(ks[4], (4 * H,), jnp.float32, -s, s)
    w_lin = jax.random.uniform(ks[5], (2 * NO, H), jnp.float32, -s, s)
    b_lin = jax.random.uniform(ks[6], (2 * NO,), jnp.float32, -s, s)

    # Inputs: x is the aggregation-LSTM output (seq=1, batch, 130); hidden states zero.
    x = jax.random.normal(ks[0], (1, B, NUM_HIDDEN_AGGREG), jnp.float32)
    h0 = jnp.zeros((VOICES, B, H), jnp.float32)
    c0 = jnp.zeros((VOICES, B, H), jnp.float32)

    params = prepare_params(w_ih, w_hh, b_ih, b_hh, w_lin, b_lin)
    notes, probs, h1, c1 = psampler_forward(x, h0, c0, params, ks[7])
    jax.block_until_ready((notes, probs, h1, c1))

    assert notes.shape == (1, B, NO)
    assert probs.shape == (1, B, NO)
    assert h1.shape == (VOICES, B, H) and c1.shape == (VOICES, B, H)
    # VOICES one-hot decisions were taken per row (split across sample/ban halves).
    assert bool(jnp.all(notes >= 0.0)) and bool(jnp.all(notes <= float(VOICES)))
    print("KERNEL_OK")
</pallas_src>

<mosaic_0001>
module attributes {stable_mosaic.version = 11 : i64} {
  func.func @psampler_kernel(%arg0: memref<2x130xf32, #tpu.memory_space<vmem>>, %arg1: memref<5x2x1xf32, #tpu.memory_space<vmem>>, %arg2: memref<5x2x128xf32, #tpu.memory_space<vmem>>, %arg3: memref<5x2x128xf32, #tpu.memory_space<vmem>>, %arg4: memref<130x512xf32, #tpu.memory_space<vmem>>, %arg5: memref<24x512xf32, #tpu.memory_space<vmem>>, %arg6: memref<128x512xf32, #tpu.memory_space<vmem>>, %arg7: memref<1x512xf32, #tpu.memory_space<vmem>>, %arg8: memref<128x24xf32, #tpu.memory_space<vmem>>, %arg9: memref<1x24xf32, #tpu.memory_space<vmem>>, %arg10: memref<2x12xf32, #tpu.memory_space<vmem>>, %arg11: memref<2x12xf32, #tpu.memory_space<vmem>>, %arg12: memref<5x2x128xf32, #tpu.memory_space<vmem>>, %arg13: memref<5x2x128xf32, #tpu.memory_space<vmem>>) attributes {dimension_semantics = [], scalar_prefetch = 0 : i64, scratch_operands = 0 : i64, tpu.core_type = #tpu.core_type<tc>} {
    %c0 = arith.constant 0 : index
    %c0_0 = arith.constant 0 : index
    %0 = vector.load %arg0[%c0, %c0_0] : memref<2x130xf32, #tpu.memory_space<vmem>>, vector<2x130xf32>
    %cst = arith.constant 0.000000e+00 : f32
    %1 = vector.broadcast %cst : f32 to vector<2x12xf32>
    %cst_1 = arith.constant 0.000000e+00 : f32
    %2 = vector.broadcast %cst_1 : f32 to vector<2x12xf32>
    %cst_2 = arith.constant 0.000000e+00 : f32
    %3 = vector.broadcast %cst_2 : f32 to vector<2x12xf32>
    %cst_3 = arith.constant 1.000000e+00 : f32
    %4 = vector.broadcast %cst_3 : f32 to vector<2x12xf32>
    %cst_4 = arith.constant 0.000000e+00 : f32
    %5 = vector.broadcast %cst_4 : f32 to vector<2x12xf32>
    %cst_5 = arith.constant 1.000000e+00 : f32
    %6 = vector.broadcast %cst_5 : f32 to vector<2x12xf32>
    %7 = tpu.iota {dimensions = array<i32: 0>} : vector<24x24xi32>
    %8 = tpu.iota {dimensions = array<i32: 1>} : vector<24x24xi32>
    %9 = arith.cmpi sle, %7, %8 : vector<24x24xi32>
    %10 = arith.extui %9 : vector<24x24xi1> to vector<24x24xi32>
    %11 = arith.sitofp %10 : vector<24x24xi32> to vector<24x24xf32>
    %12 = tpu.iota {dimensions = array<i32: 1>} : vector<2x24xi32>
    %c0_6 = arith.constant 0 : index
    %c0_7 = arith.constant 0 : index
    %13 = vector.load %arg5[%c0_6, %c0_7] : memref<24x512xf32, #tpu.memory_space<vmem>>, vector<24x512xf32>
    %c0_8 = arith.constant 0 : index
    %c0_9 = arith.constant 0 : index
    %14 = vector.load %arg6[%c0_8, %c0_9] : memref<128x512xf32, #tpu.memory_space<vmem>>, vector<128x512xf32>
    %c0_10 = arith.constant 0 : index
    %c0_11 = arith.constant 0 : index
    %15 = vector.load %arg8[%c0_10, %c0_11] : memref<128x24xf32, #tpu.memory_space<vmem>>, vector<128x24xf32>
    %c0_12 = arith.constant 0 : index
    %c0_13 = arith.constant 0 : index
    %16 = vector.load %arg9[%c0_12, %c0_13] : memref<1x24xf32, #tpu.memory_space<vmem>>, vector<1x24xf32>
    %c0_14 = arith.constant 0 : index
    %c0_15 = arith.constant 0 : index
    %17 = vector.load %arg4[%c0_14, %c0_15] : memref<130x512xf32, #tpu.memory_space<vmem>>, vector<130x512xf32>
    %cst_16 = arith.constant dense<0.000000e+00> : vector<2x512xf32>
    %18 = tpu.matmul %0, %17, %cst_16 {dimension_numbers = #tpu.dot_dimension_numbers<[1], [0], [0], [1], [0, 0, 1, 1], [], []>} : vector<2x130xf32>, vector<130x512xf32>, vector<2x512xf32> -> vector<2x512xf32>
    %c0_17 = arith.constant 0 : index
    %c0_18 = arith.constant 0 : index
    %19 = vector.load %arg7[%c0_17, %c0_18] : memref<1x512xf32, #tpu.memory_space<vmem>>, vector<1x512xf32>
    %20 = vector.broadcast %19 : vector<1x512xf32> to vector<2x512xf32>
    %21 = arith.addf %18, %20 : vector<2x512xf32>
    %c0_19 = arith.constant 0 : index
    %c0_20 = arith.constant 0 : index
    %c0_21 = arith.constant 0 : index
    %22 = vector.load %arg2[%c0_19, %c0_20, %c0_21] : memref<5x2x128xf32, #tpu.memory_space<vmem>>, vector<1x2x128xf32>
    %23 = vector.shape_cast %22 : vector<1x2x128xf32> to vector<2x128xf32>
    %c0_22 = arith.constant 0 : index
    %c0_23 = arith.constant 0 : index
    %c0_24 = arith.constant 0 : index
    %24 = vector.load %arg3[%c0_22, %c0_23, %c0_24] : memref<5x2x128xf32, #tpu.memory_space<vmem>>, vector<1x2x128xf32>
    %25 = vector.shape_cast %24 : vector<1x2x128xf32> to vector<2x128xf32>
    %26 = tpu.concatenate %1, %2 in 1 : vector<2x12xf32>, vector<2x12xf32> -> vector<2x24xf32>
    %cst_25 = arith.constant dense<0.000000e+00> : vector<2x512xf32>
    %27 = tpu.matmul %26, %13, %cst_25 {dimension_numbers = #tpu.dot_dimension_numbers<[1], [0], [0], [1], [0, 0, 1, 1], [], []>} : vector<2x24xf32>, vector<24x512xf32>, vector<2x512xf32> -> vector<2x512xf32>
    %28 = arith.addf %21, %27 : vector<2x512xf32>
    %cst_26 = arith.constant dense<0.000000e+00> : vector<2x512xf32>
    %29 = tpu.matmul %23, %14, %cst_26 {dimension_numbers = #tpu.dot_dimension_numbers<[1], [0], [0], [1], [0, 0, 1, 1], [], []>} : vector<2x128xf32>, vector<128x512xf32>, vector<2x512xf32> -> vector<2x512xf32>
    %30 = arith.addf %28, %29 : vector<2x512xf32>
    %31 = vector.extract_strided_slice %30 {offsets = [0, 0], sizes = [2, 128], strides = [1, 1]} : vector<2x512xf32> to vector<2x128xf32>
    %32 = arith.negf %31 : vector<2x128xf32>
    %33 = math.exp %32 : vector<2x128xf32>
    %cst_27 = arith.constant 1.000000e+00 : f32
    %34 = vector.broadcast %cst_27 : f32 to vector<2x128xf32>
    %35 = arith.addf %34, %33 : vector<2x128xf32>
    %36 = arith.divf %34, %35 : vector<2x128xf32>
    %37 = vector.extract_strided_slice %30 {offsets = [0, 128], sizes = [2, 128], strides = [1, 1]} : vector<2x512xf32> to vector<2x128xf32>
    %38 = arith.negf %37 : vector<2x128xf32>
    %39 = math.exp %38 : vector<2x128xf32>
    %cst_28 = arith.constant 1.000000e+00 : f32
    %40 = vector.broadcast %cst_28 : f32 to vector<2x128xf32>
    %41 = arith.addf %40, %39 : vector<2x128xf32>
    %42 = arith.divf %40, %41 : vector<2x128xf32>
    %43 = vector.extract_strided_slice %30 {offsets = [0, 256], sizes = [2, 128], strides = [1, 1]} : vector<2x512xf32> to vector<2x128xf32>
    %44 = math.tanh %43 : vector<2x128xf32>
    %45 = vector.extract_strided_slice %30 {offsets = [0, 384], sizes = [2, 128], strides = [1, 1]} : vector<2x512xf32> to vector<2x128xf32>
    %46 = arith.negf %45 : vector<2x128xf32>
    %47 = math.exp %46 : vector<2x128xf32>
    %cst_29 = arith.constant 1.000000e+00 : f32
    %48 = vector.broadcast %cst_29 : f32 to vector<2x128xf32>
    %49 = arith.addf %48, %47 : vector<2x128xf32>
    %50 = arith.divf %48, %49 : vector<2x128xf32>
    %51 = arith.mulf %42, %25 : vector<2x128xf32>
    %52 = arith.mulf %36, %44 : vector<2x128xf32>
    %53 = arith.addf %51, %52 : vector<2x128xf32>
    %54 = math.tanh %53 : vector<2x128xf32>
    %55 = arith.mulf %50, %54 : vector<2x128xf32>
    %c0_30 = arith.constant 0 : index
    %c0_31 = arith.constant 0 : index
    %c0_32 = arith.constant 0 : index
    %56 = vector.load %arg12[%c0_30, %c0_31, %c0_32] : memref<5x2x128xf32, #tpu.memory_space<vmem>>, vector<1x2x128xf32>
    %57 = vector.shape_cast %56 : vector<1x2x128xf32> to vector<2x128xf32>
    %58 = vector.shape_cast %55 : vector<2x128xf32> to vector<1x2x128xf32>
    tpu.vector_store %arg12[%c0_30, %c0_31, %c0_32], %58 {strides = array<i32>} : memref<5x2x128xf32, #tpu.memory_space<vmem>>, vector<1x2x128xf32>,
    %c0_33 = arith.constant 0 : index
    %c0_34 = arith.constant 0 : index
    %c0_35 = arith.constant 0 : index
    %59 = vector.load %arg13[%c0_33, %c0_34, %c0_35] : memref<5x2x128xf32, #tpu.memory_space<vmem>>, vector<1x2x128xf32>
    %60 = vector.shape_cast %59 : vector<1x2x128xf32> to vector<2x128xf32>
    %61 = vector.shape_cast %53 : vector<2x128xf32> to vector<1x2x128xf32>
    tpu.vector_store %arg13[%c0_33, %c0_34, %c0_35], %61 {strides = array<i32>} : memref<5x2x128xf32, #tpu.memory_space<vmem>>, vector<1x2x128xf32>,
    %cst_36 = arith.constant dense<0.000000e+00> : vector<2x24xf32>
    %62 = tpu.matmul %55, %15, %cst_36 {dimension_numbers = #tpu.dot_dimension_numbers<[1], [0], [0], [1], [0, 0, 1, 1], [], []>} : vector<2x128xf32>, vector<128x24xf32>, vector<2x24xf32> -> vector<2x24xf32>
    %63 = vector.broadcast %16 : vector<1x24xf32> to vector<2x24xf32>
    %64 = arith.addf %62, %63 : vector<2x24xf32>
    %cst_37 = arith.constant dense<0xFF800000> : vector<2xf32>
    %65 = vector.multi_reduction <maximumf>, %64, %cst_37 [1] : vector<2x24xf32> to vector<2xf32>
    %66 = vector.shape_cast %65 : vector<2xf32> to vector<2x1xf32>
    %67 = vector.broadcast %66 : vector<2x1xf32> to vector<2x24xf32>
    %68 = arith.subf %64, %67 : vector<2x24xf32>
    %69 = math.exp %68 : vector<2x24xf32>
    %cst_38 = arith.constant 1.000000e+00 : f32
    %70 = vector.broadcast %cst_38 : f32 to vector<2x12xf32>
    %71 = arith.subf %70, %1 : vector<2x12xf32>
    %cst_39 = arith.constant 1.000000e+00 : f32
    %72 = vector.broadcast %cst_39 : f32 to vector<2x12xf32>
    %73 = arith.subf %72, %2 : vector<2x12xf32>
    %74 = arith.mulf %71, %73 : vector<2x12xf32>
    %75 = vector.extract_strided_slice %69 {offsets = [0, 0], sizes = [2, 12], strides = [1, 1]} : vector<2x24xf32> to vector<2x12xf32>
    %76 = arith.mulf %74, %75 : vector<2x12xf32>
    %77 = vector.extract_strided_slice %69 {offsets = [0, 12], sizes = [2, 12], strides = [1, 1]} : vector<2x24xf32> to vector<2x12xf32>
    %78 = arith.mulf %74, %77 : vector<2x12xf32>
    %cst_40 = arith.constant dense<0.000000e+00> : vector<2xf32>
    %79 = vector.multi_reduction <add>, %76, %cst_40 [1] : vector<2x12xf32> to vector<2xf32>
    %80 = vector.shape_cast %79 : vector<2xf32> to vector<2x1xf32>
    %cst_41 = arith.constant dense<0.000000e+00> : vector<2xf32>
    %81 = vector.multi_reduction <add>, %78, %cst_41 [1] : vector<2x12xf32> to vector<2xf32>
    %82 = vector.shape_cast %81 : vector<2xf32> to vector<2x1xf32>
    %83 = arith.addf %80, %82 : vector<2x1xf32>
    %cst_42 = arith.constant 1.000000e+00 : f32
    %84 = vector.broadcast %cst_42 : f32 to vector<2x1xf32>
    %85 = arith.divf %84, %83 : vector<2x1xf32>
    %86 = vector.broadcast %85 : vector<2x1xf32> to vector<2x12xf32>
    %87 = arith.mulf %76, %86 : vector<2x12xf32>
    %88 = vector.broadcast %85 : vector<2x1xf32> to vector<2x12xf32>
    %89 = arith.mulf %78, %88 : vector<2x12xf32>
    %90 = arith.mulf %4, %87 : vector<2x12xf32>
    %91 = arith.addf %3, %90 : vector<2x12xf32>
    %cst_43 = arith.constant 1.000000e+00 : f32
    %92 = vector.broadcast %cst_43 : f32 to vector<2x12xf32>
    %93 = arith.subf %92, %87 : vector<2x12xf32>
    %94 = arith.mulf %4, %93 : vector<2x12xf32>
    %95 = arith.mulf %6, %89 : vector<2x12xf32>
    %96 = arith.addf %5, %95 : vector<2x12xf32>
    %cst_44 = arith.constant 1.000000e+00 : f32
    %97 = vector.broadcast %cst_44 : f32 to vector<2x12xf32>
    %98 = arith.subf %97, %89 : vector<2x12xf32>
    %99 = arith.mulf %6, %98 : vector<2x12xf32>
    %100 = tpu.concatenate %87, %89 in 1 : vector<2x12xf32>, vector<2x12xf32> -> vector<2x24xf32>
    %cst_45 = arith.constant dense<0.000000e+00> : vector<2x24xf32>
    %101 = tpu.matmul %100, %11, %cst_45 {dimension_numbers = #tpu.dot_dimension_numbers<[1], [0], [0], [1], [0, 0, 1, 1], [], []>} : vector<2x24xf32>, vector<24x24xf32>, vector<2x24xf32> -> vector<2x24xf32>
    %c0_46 = arith.constant 0 : index
    %c0_47 = arith.constant 0 : index
    %c0_48 = arith.constant 0 : index
    %102 = vector.load %arg1[%c0_46, %c0_47, %c0_48] : memref<5x2x1xf32, #tpu.memory_space<vmem>>, vector<1x2x1xf32>
    %103 = vector.shape_cast %102 : vector<1x2x1xf32> to vector<2x1xf32>
    %104 = vector.broadcast %103 : vector<2x1xf32> to vector<2x24xf32>
    %105 = arith.cmpf olt, %101, %104 : vector<2x24xf32>
    %106 = arith.extui %105 : vector<2x24xi1> to vector<2x24xi32>
    %cst_49 = arith.constant dense<0> : vector<2xi32>
    %107 = vector.multi_reduction <add>, %106, %cst_49 [1] : vector<2x24xi32> to vector<2xi32>
    %108 = vector.shape_cast %107 : vector<2xi32> to vector<2x1xi32>
    %c23_i32 = arith.constant 23 : i32
    %109 = vector.broadcast %c23_i32 : i32 to vector<2x1xi32>
    %110 = arith.minsi %108, %109 : vector<2x1xi32>
    %111 = vector.broadcast %110 : vector<2x1xi32> to vector<2x24xi32>
    %112 = arith.cmpi eq, %12, %111 : vector<2x24xi32>
    %113 = arith.extui %112 : vector<2x24xi1> to vector<2x24xi32>
    %114 = arith.sitofp %113 : vector<2x24xi32> to vector<2x24xf32>
    %115 = vector.extract_strided_slice %114 {offsets = [0, 0], sizes = [2, 12], strides = [1, 1]} : vector<2x24xf32> to vector<2x12xf32>
    %116 = arith.addf %1, %115 : vector<2x12xf32>
    %117 = vector.extract_strided_slice %114 {offsets = [0, 12], sizes = [2, 12], strides = [1, 1]} : vector<2x24xf32> to vector<2x12xf32>
    %118 = arith.addf %2, %117 : vector<2x12xf32>
    %c1 = arith.constant 1 : index
    %c0_50 = arith.constant 0 : index
    %c0_51 = arith.constant 0 : index
    %119 = vector.load %arg2[%c1, %c0_50, %c0_51] : memref<5x2x128xf32, #tpu.memory_space<vmem>>, vector<1x2x128xf32>
    %120 = vector.shape_cast %119 : vector<1x2x128xf32> to vector<2x128xf32>
    %c1_52 = arith.constant 1 : index
    %c0_53 = arith.constant 0 : index
    %c0_54 = arith.constant 0 : index
    %121 = vector.load %arg3[%c1_52, %c0_53, %c0_54] : memref<5x2x128xf32, #tpu.memory_space<vmem>>, vector<1x2x128xf32>
    %122 = vector.shape_cast %121 : vector<1x2x128xf32> to vector<2x128xf32>
    %123 = tpu.concatenate %116, %118 in 1 : vector<2x12xf32>, vector<2x12xf32> -> vector<2x24xf32>
    %cst_55 = arith.constant dense<0.000000e+00> : vector<2x512xf32>
    %124 = tpu.matmul %123, %13, %cst_55 {dimension_numbers = #tpu.dot_dimension_numbers<[1], [0], [0], [1], [0, 0, 1, 1], [], []>} : vector<2x24xf32>, vector<24x512xf32>, vector<2x512xf32> -> vector<2x512xf32>
    %125 = arith.addf %21, %124 : vector<2x512xf32>
    %cst_56 = arith.constant dense<0.000000e+00> : vector<2x512xf32>
    %126 = tpu.matmul %120, %14, %cst_56 {dimension_numbers = #tpu.dot_dimension_numbers<[1], [0], [0], [1], [0, 0, 1, 1], [], []>} : vector<2x128xf32>, vector<128x512xf32>, vector<2x512xf32> -> vector<2x512xf32>
    %127 = arith.addf %125, %126 : vector<2x512xf32>
    %128 = vector.extract_strided_slice %127 {offsets = [0, 0], sizes = [2, 128], strides = [1, 1]} : vector<2x512xf32> to vector<2x128xf32>
    %129 = arith.negf %128 : vector<2x128xf32>
    %130 = math.exp %129 : vector<2x128xf32>
    %cst_57 = arith.constant 1.000000e+00 : f32
    %131 = vector.broadcast %cst_57 : f32 to vector<2x128xf32>
    %132 = arith.addf %131, %130 : vector<2x128xf32>
    %133 = arith.divf %131, %132 : vector<2x128xf32>
    %134 = vector.extract_strided_slice %127 {offsets = [0, 128], sizes = [2, 128], strides = [1, 1]} : vector<2x512xf32> to vector<2x128xf32>
    %135 = arith.negf %134 : vector<2x128xf32>
    %136 = math.exp %135 : vector<2x128xf32>
    %cst_58 = arith.constant 1.000000e+00 : f32
    %137 = vector.broadcast %cst_58 : f32 to vector<2x128xf32>
    %138 = arith.addf %137, %136 : vector<2x128xf32>
    %139 = arith.divf %137, %138 : vector<2x128xf32>
    %140 = vector.extract_strided_slice %127 {offsets = [0, 256], sizes = [2, 128], strides = [1, 1]} : vector<2x512xf32> to vector<2x128xf32>
    %141 = math.tanh %140 : vector<2x128xf32>
    %142 = vector.extract_strided_slice %127 {offsets = [0, 384], sizes = [2, 128], strides = [1, 1]} : vector<2x512xf32> to vector<2x128xf32>
    %143 = arith.negf %142 : vector<2x128xf32>
    %144 = math.exp %143 : vector<2x128xf32>
    %cst_59 = arith.constant 1.000000e+00 : f32
    %145 = vector.broadcast %cst_59 : f32 to vector<2x128xf32>
    %146 = arith.addf %145, %144 : vector<2x128xf32>
    %147 = arith.divf %145, %146 : vector<2x128xf32>
    %148 = arith.mulf %139, %122 : vector<2x128xf32>
    %149 = arith.mulf %133, %141 : vector<2x128xf32>
    %150 = arith.addf %148, %149 : vector<2x128xf32>
    %151 = math.tanh %150 : vector<2x128xf32>
    %152 = arith.mulf %147, %151 : vector<2x128xf32>
    %c1_60 = arith.constant 1 : index
    %c0_61 = arith.constant 0 : index
    %c0_62 = arith.constant 0 : index
    %153 = vector.load %arg12[%c1_60, %c0_61, %c0_62] : memref<5x2x128xf32, #tpu.memory_space<vmem>>, vector<1x2x128xf32>
    %154 = vector.shape_cast %153 : vector<1x2x128xf32> to vector<2x128xf32>
    %155 = vector.shape_cast %152 : vector<2x128xf32> to vector<1x2x128xf32>
    tpu.vector_store %arg12[%c1_60, %c0_61, %c0_62], %155 {strides = array<i32>} : memref<5x2x128xf32, #tpu.memory_space<vmem>>, vector<1x2x128xf32>,
    %c1_63 = arith.constant 1 : index
    %c0_64 = arith.constant 0 : index
    %c0_65 = arith.constant 0 : index
    %156 = vector.load %arg13[%c1_63, %c0_64, %c0_65] : memref<5x2x128xf32, #tpu.memory_space<vmem>>, vector<1x2x128xf32>
    %157 = vector.shape_cast %156 : vector<1x2x128xf32> to vector<2x128xf32>
    %158 = vector.shape_cast %150 : vector<2x128xf32> to vector<1x2x128xf32>
    tpu.vector_store %arg13[%c1_63, %c0_64, %c0_65], %158 {strides = array<i32>} : memref<5x2x128xf32, #tpu.memory_space<vmem>>, vector<1x2x128xf32>,
    %cst_66 = arith.constant dense<0.000000e+00> : vector<2x24xf32>
    %159 = tpu.matmul %152, %15, %cst_66 {dimension_numbers = #tpu.dot_dimension_numbers<[1], [0], [0], [1], [0, 0, 1, 1], [], []>} : vector<2x128xf32>, vector<128x24xf32>, vector<2x24xf32> -> vector<2x24xf32>
    %160 = vector.broadcast %16 : vector<1x24xf32> to vector<2x24xf32>
    %161 = arith.addf %159, %160 : vector<2x24xf32>
    %cst_67 = arith.constant dense<0xFF800000> : vector<2xf32>
    %162 = vector.multi_reduction <maximumf>, %161, %cst_67 [1] : vector<2x24xf32> to vector<2xf32>
    %163 = vector.shape_cast %162 : vector<2xf32> to vector<2x1xf32>
    %164 = vector.broadcast %163 : vector<2x1xf32> to vector<2x24xf32>
    %165 = arith.subf %161, %164 : vector<2x24xf32>
    %166 = math.exp %165 : vector<2x24xf32>
    %cst_68 = arith.constant 1.000000e+00 : f32
    %167 = vector.broadcast %cst_68 : f32 to vector<2x12xf32>
    %168 = arith.subf %167, %116 : vector<2x12xf32>
    %cst_69 = arith.constant 1.000000e+00 : f32
    %169 = vector.broadcast %cst_69 : f32 to vector<2x12xf32>
    %170 = arith.subf %169, %118 : vector<2x12xf32>
    %171 = arith.mulf %168, %170 : vector<2x12xf32>
    %172 = vector.extract_strided_slice %166 {offsets = [0, 0], sizes = [2, 12], strides = [1, 1]} : vector<2x24xf32> to vector<2x12xf32>
    %173 = arith.mulf %171, %172 : vector<2x12xf32>
    %174 = vector.extract_strided_slice %166 {offsets = [0, 12], sizes = [2, 12], strides = [1, 1]} : vector<2x24xf32> to vector<2x12xf32>
    %175 = arith.mulf %171, %174 : vector<2x12xf32>
    %cst_70 = arith.constant dense<0.000000e+00> : vector<2xf32>
    %176 = vector.multi_reduction <add>, %173, %cst_70 [1] : vector<2x12xf32> to vector<2xf32>
    %177 = vector.shape_cast %176 : vector<2xf32> to vector<2x1xf32>
    %cst_71 = arith.constant dense<0.000000e+00> : vector<2xf32>
    %178 = vector.multi_reduction <add>, %175, %cst_71 [1] : vector<2x12xf32> to vector<2xf32>
    %179 = vector.shape_cast %178 : vector<2xf32> to vector<2x1xf32>
    %180 = arith.addf %177, %179 : vector<2x1xf32>
    %cst_72 = arith.constant 1.000000e+00 : f32
    %181 = vector.broadcast %cst_72 : f32 to vector<2x1xf32>
    %182 = arith.divf %181, %180 : vector<2x1xf32>
    %183 = vector.broadcast %182 : vector<2x1xf32> to vector<2x12xf32>
    %184 = arith.mulf %173, %183 : vector<2x12xf32>
    %185 = vector.broadcast %182 : vector<2x1xf32> to vector<2x12xf32>
    %186 = arith.mulf %175, %185 : vector<2x12xf32>
    %187 = arith.mulf %94, %184 : vector<2x12xf32>
    %188 = arith.addf %91, %187 : vector<2x12xf32>
    %cst_73 = arith.constant 1.000000e+00 : f32
    %189 = vector.broadcast %cst_73 : f32 to vector<2x12xf32>
    %190 = arith.subf %189, %184 : vector<2x12xf32>
    %191 = arith.mulf %94, %190 : vector<2x12xf32>
    %192 = arith.mulf %99, %186 : vector<2x12xf32>
    %193 = arith.addf %96, %192 : vector<2x12xf32>
    %cst_74 = arith.constant 1.000000e+00 : f32
    %194 = vector.broadcast %cst_74 : f32 to vector<2x12xf32>
    %195 = arith.subf %194, %186 : vector<2x12xf32>
    %196 = arith.mulf %99, %195 : vector<2x12xf32>
    %197 = tpu.concatenate %184, %186 in 1 : vector<2x12xf32>, vector<2x12xf32> -> vector<2x24xf32>
    %cst_75 = arith.constant dense<0.000000e+00> : vector<2x24xf32>
    %198 = tpu.matmul %197, %11, %cst_75 {dimension_numbers = #tpu.dot_dimension_numbers<[1], [0], [0], [1], [0, 0, 1, 1], [], []>} : vector<2x24xf32>, vector<24x24xf32>, vector<2x24xf32> -> vector<2x24xf32>
    %c1_76 = arith.constant 1 : index
    %c0_77 = arith.constant 0 : index
    %c0_78 = arith.constant 0 : index
    %199 = vector.load %arg1[%c1_76, %c0_77, %c0_78] : memref<5x2x1xf32, #tpu.memory_space<vmem>>, vector<1x2x1xf32>
    %200 = vector.shape_cast %199 : vector<1x2x1xf32> to vector<2x1xf32>
    %201 = vector.broadcast %200 : vector<2x1xf32> to vector<2x24xf32>
    %202 = arith.cmpf olt, %198, %201 : vector<2x24xf32>
    %203 = arith.extui %202 : vector<2x24xi1> to vector<2x24xi32>
    %cst_79 = arith.constant dense<0> : vector<2xi32>
    %204 = vector.multi_reduction <add>, %203, %cst_79 [1] : vector<2x24xi32> to vector<2xi32>
    %205 = vector.shape_cast %204 : vector<2xi32> to vector<2x1xi32>
    %c23_i32_80 = arith.constant 23 : i32
    %206 = vector.broadcast %c23_i32_80 : i32 to vector<2x1xi32>
    %207 = arith.minsi %205, %206 : vector<2x1xi32>
    %208 = vector.broadcast %207 : vector<2x1xi32> to vector<2x24xi32>
    %209 = arith.cmpi eq, %12, %208 : vector<2x24xi32>
    %210 = arith.extui %209 : vector<2x24xi1> to vector<2x24xi32>
    %211 = arith.sitofp %210 : vector<2x24xi32> to vector<2x24xf32>
    %212 = vector.extract_strided_slice %211 {offsets = [0, 0], sizes = [2, 12], strides = [1, 1]} : vector<2x24xf32> to vector<2x12xf32>
    %213 = arith.addf %116, %212 : vector<2x12xf32>
    %214 = vector.extract_strided_slice %211 {offsets = [0, 12], sizes = [2, 12], strides = [1, 1]} : vector<2x24xf32> to vector<2x12xf32>
    %215 = arith.addf %118, %214 : vector<2x12xf32>
    %c2 = arith.constant 2 : index
    %c0_81 = arith.constant 0 : index
    %c0_82 = arith.constant 0 : index
    %216 = vector.load %arg2[%c2, %c0_81, %c0_82] : memref<5x2x128xf32, #tpu.memory_space<vmem>>, vector<1x2x128xf32>
    %217 = vector.shape_cast %216 : vector<1x2x128xf32> to vector<2x128xf32>
    %c2_83 = arith.constant 2 : index
    %c0_84 = arith.constant 0 : index
    %c0_85 = arith.constant 0 : index
    %218 = vector.load %arg3[%c2_83, %c0_84, %c0_85] : memref<5x2x128xf32, #tpu.memory_space<vmem>>, vector<1x2x128xf32>
    %219 = vector.shape_cast %218 : vector<1x2x128xf32> to vector<2x128xf32>
    %220 = tpu.concatenate %213, %215 in 1 : vector<2x12xf32>, vector<2x12xf32> -> vector<2x24xf32>
    %cst_86 = arith.constant dense<0.000000e+00> : vector<2x512xf32>
    %221 = tpu.matmul %220, %13, %cst_86 {dimension_numbers = #tpu.dot_dimension_numbers<[1], [0], [0], [1], [0, 0, 1, 1], [], []>} : vector<2x24xf32>, vector<24x512xf32>, vector<2x512xf32> -> vector<2x512xf32>
    %222 = arith.addf %21, %221 : vector<2x512xf32>
    %cst_87 = arith.constant dense<0.000000e+00> : vector<2x512xf32>
    %223 = tpu.matmul %217, %14, %cst_87 {dimension_numbers = #tpu.dot_dimension_numbers<[1], [0], [0], [1], [0, 0, 1, 1], [], []>} : vector<2x128xf32>, vector<128x512xf32>, vector<2x512xf32> -> vector<2x512xf32>
    %224 = arith.addf %222, %223 : vector<2x512xf32>
    %225 = vector.extract_strided_slice %224 {offsets = [0, 0], sizes = [2, 128], strides = [1, 1]} : vector<2x512xf32> to vector<2x128xf32>
    %226 = arith.negf %225 : vector<2x128xf32>
    %227 = math.exp %226 : vector<2x128xf32>
    %cst_88 = arith.constant 1.000000e+00 : f32
    %228 = vector.broadcast %cst_88 : f32 to vector<2x128xf32>
    %229 = arith.addf %228, %227 : vector<2x128xf32>
    %230 = arith.divf %228, %229 : vector<2x128xf32>
    %231 = vector.extract_strided_slice %224 {offsets = [0, 128], sizes = [2, 128], strides = [1, 1]} : vector<2x512xf32> to vector<2x128xf32>
    %232 = arith.negf %231 : vector<2x128xf32>
    %233 = math.exp %232 : vector<2x128xf32>
    %cst_89 = arith.constant 1.000000e+00 : f32
    %234 = vector.broadcast %cst_89 : f32 to vector<2x128xf32>
    %235 = arith.addf %234, %233 : vector<2x128xf32>
    %236 = arith.divf %234, %235 : vector<2x128xf32>
    %237 = vector.extract_strided_slice %224 {offsets = [0, 256], sizes = [2, 128], strides = [1, 1]} : vector<2x512xf32> to vector<2x128xf32>
    %238 = math.tanh %237 : vector<2x128xf32>
    %239 = vector.extract_strided_slice %224 {offsets = [0, 384], sizes = [2, 128], strides = [1, 1]} : vector<2x512xf32> to vector<2x128xf32>
    %240 = arith.negf %239 : vector<2x128xf32>
    %241 = math.exp %240 : vector<2x128xf32>
    %cst_90 = arith.constant 1.000000e+00 : f32
    %242 = vector.broadcast %cst_90 : f32 to vector<2x128xf32>
    %243 = arith.addf %242, %241 : vector<2x128xf32>
    %244 = arith.divf %242, %243 : vector<2x128xf32>
    %245 = arith.mulf %236, %219 : vector<2x128xf32>
    %246 = arith.mulf %230, %238 : vector<2x128xf32>
    %247 = arith.addf %245, %246 : vector<2x128xf32>
    %248 = math.tanh %247 : vector<2x128xf32>
    %249 = arith.mulf %244, %248 : vector<2x128xf32>
    %c2_91 = arith.constant 2 : index
    %c0_92 = arith.constant 0 : index
    %c0_93 = arith.constant 0 : index
    %250 = vector.load %arg12[%c2_91, %c0_92, %c0_93] : memref<5x2x128xf32, #tpu.memory_space<vmem>>, vector<1x2x128xf32>
    %251 = vector.shape_cast %250 : vector<1x2x128xf32> to vector<2x128xf32>
    %252 = vector.shape_cast %249 : vector<2x128xf32> to vector<1x2x128xf32>
    tpu.vector_store %arg12[%c2_91, %c0_92, %c0_93], %252 {strides = array<i32>} : memref<5x2x128xf32, #tpu.memory_space<vmem>>, vector<1x2x128xf32>,
    %c2_94 = arith.constant 2 : index
    %c0_95 = arith.constant 0 : index
    %c0_96 = arith.constant 0 : index
    %253 = vector.load %arg13[%c2_94, %c0_95, %c0_96] : memref<5x2x128xf32, #tpu.memory_space<vmem>>, vector<1x2x128xf32>
    %254 = vector.shape_cast %253 : vector<1x2x128xf32> to vector<2x128xf32>
    %255 = vector.shape_cast %247 : vector<2x128xf32> to vector<1x2x128xf32>
    tpu.vector_store %arg13[%c2_94, %c0_95, %c0_96], %255 {strides = array<i32>} : memref<5x2x128xf32, #tpu.memory_space<vmem>>, vector<1x2x128xf32>,
    %cst_97 = arith.constant dense<0.000000e+00> : vector<2x24xf32>
    %256 = tpu.matmul %249, %15, %cst_97 {dimension_numbers = #tpu.dot_dimension_numbers<[1], [0], [0], [1], [0, 0, 1, 1], [], []>} : vector<2x128xf32>, vector<128x24xf32>, vector<2x24xf32> -> vector<2x24xf32>
    %257 = vector.broadcast %16 : vector<1x24xf32> to vector<2x24xf32>
    %258 = arith.addf %256, %257 : vector<2x24xf32>
    %cst_98 = arith.constant dense<0xFF800000> : vector<2xf32>
    %259 = vector.multi_reduction <maximumf>, %258, %cst_98 [1] : vector<2x24xf32> to vector<2xf32>
    %260 = vector.shape_cast %259 : vector<2xf32> to vector<2x1xf32>
    %261 = vector.broadcast %260 : vector<2x1xf32> to vector<2x24xf32>
    %262 = arith.subf %258, %261 : vector<2x24xf32>
    %263 = math.exp %262 : vector<2x24xf32>
    %cst_99 = arith.constant 1.000000e+00 : f32
    %264 = vector.broadcast %cst_99 : f32 to vector<2x12xf32>
    %265 = arith.subf %264, %213 : vector<2x12xf32>
    %cst_100 = arith.constant 1.000000e+00 : f32
    %266 = vector.broadcast %cst_100 : f32 to vector<2x12xf32>
    %267 = arith.subf %266, %215 : vector<2x12xf32>
    %268 = arith.mulf %265, %267 : vector<2x12xf32>
    %269 = vector.extract_strided_slice %263 {offsets = [0, 0], sizes = [2, 12], strides = [1, 1]} : vector<2x24xf32> to vector<2x12xf32>
    %270 = arith.mulf %268, %269 : vector<2x12xf32>
    %271 = vector.extract_strided_slice %263 {offsets = [0, 12], sizes = [2, 12], strides = [1, 1]} : vector<2x24xf32> to vector<2x12xf32>
    %272 = arith.mulf %268, %271 : vector<2x12xf32>
    %cst_101 = arith.constant dense<0.000000e+00> : vector<2xf32>
    %273 = vector.multi_reduction <add>, %270, %cst_101 [1] : vector<2x12xf32> to vector<2xf32>
    %274 = vector.shape_cast %273 : vector<2xf32> to vector<2x1xf32>
    %cst_102 = arith.constant dense<0.000000e+00> : vector<2xf32>
    %275 = vector.multi_reduction <add>, %272, %cst_102 [1] : vector<2x12xf32> to vector<2xf32>
    %276 = vector.shape_cast %275 : vector<2xf32> to vector<2x1xf32>
    %277 = arith.addf %274, %276 : vector<2x1xf32>
    %cst_103 = arith.constant 1.000000e+00 : f32
    %278 = vector.broadcast %cst_103 : f32 to vector<2x1xf32>
    %279 = arith.divf %278, %277 : vector<2x1xf32>
    %280 = vector.broadcast %279 : vector<2x1xf32> to vector<2x12xf32>
    %281 = arith.mulf %270, %280 : vector<2x12xf32>
    %282 = vector.broadcast %279 : vector<2x1xf32> to vector<2x12xf32>
    %283 = arith.mulf %272, %282 : vector<2x12xf32>
    %284 = arith.mulf %191, %281 : vector<2x12xf32>
    %285 = arith.addf %188, %284 : vector<2x12xf32>
    %cst_104 = arith.constant 1.000000e+00 : f32
    %286 = vector.broadcast %cst_104 : f32 to vector<2x12xf32>
    %287 = arith.subf %286, %281 : vector<2x12xf32>
    %288 = arith.mulf %191, %287 : vector<2x12xf32>
    %289 = arith.mulf %196, %283 : vector<2x12xf32>
    %290 = arith.addf %193, %289 : vector<2x12xf32>
    %cst_105 = arith.constant 1.000000e+00 : f32
    %291 = vector.broadcast %cst_105 : f32 to vector<2x12xf32>
    %292 = arith.subf %291, %283 : vector<2x12xf32>
    %293 = arith.mulf %196, %292 : vector<2x12xf32>
    %294 = tpu.concatenate %281, %283 in 1 : vector<2x12xf32>, vector<2x12xf32> -> vector<2x24xf32>
    %cst_106 = arith.constant dense<0.000000e+00> : vector<2x24xf32>
    %295 = tpu.matmul %294, %11, %cst_106 {dimension_numbers = #tpu.dot_dimension_numbers<[1], [0], [0], [1], [0, 0, 1, 1], [], []>} : vector<2x24xf32>, vector<24x24xf32>, vector<2x24xf32> -> vector<2x24xf32>
    %c2_107 = arith.constant 2 : index
    %c0_108 = arith.constant 0 : index
    %c0_109 = arith.constant 0 : index
    %296 = vector.load %arg1[%c2_107, %c0_108, %c0_109] : memref<5x2x1xf32, #tpu.memory_space<vmem>>, vector<1x2x1xf32>
    %297 = vector.shape_cast %296 : vector<1x2x1xf32> to vector<2x1xf32>
    %298 = vector.broadcast %297 : vector<2x1xf32> to vector<2x24xf32>
    %299 = arith.cmpf olt, %295, %298 : vector<2x24xf32>
    %300 = arith.extui %299 : vector<2x24xi1> to vector<2x24xi32>
    %cst_110 = arith.constant dense<0> : vector<2xi32>
    %301 = vector.multi_reduction <add>, %300, %cst_110 [1] : vector<2x24xi32> to vector<2xi32>
    %302 = vector.shape_cast %301 : vector<2xi32> to vector<2x1xi32>
    %c23_i32_111 = arith.constant 23 : i32
    %303 = vector.broadcast %c23_i32_111 : i32 to vector<2x1xi32>
    %304 = arith.minsi %302, %303 : vector<2x1xi32>
    %305 = vector.broadcast %304 : vector<2x1xi32> to vector<2x24xi32>
    %306 = arith.cmpi eq, %12, %305 : vector<2x24xi32>
    %307 = arith.extui %306 : vector<2x24xi1> to vector<2x24xi32>
    %308 = arith.sitofp %307 : vector<2x24xi32> to vector<2x24xf32>
    %309 = vector.extract_strided_slice %308 {offsets = [0, 0], sizes = [2, 12], strides = [1, 1]} : vector<2x24xf32> to vector<2x12xf32>
    %310 = arith.addf %213, %309 : vector<2x12xf32>
    %311 = vector.extract_strided_slice %308 {offsets = [0, 12], sizes = [2, 12], strides = [1, 1]} : vector<2x24xf32> to vector<2x12xf32>
    %312 = arith.addf %215, %311 : vector<2x12xf32>
    %c3 = arith.constant 3 : index
    %c0_112 = arith.constant 0 : index
    %c0_113 = arith.constant 0 : index
    %313 = vector.load %arg2[%c3, %c0_112, %c0_113] : memref<5x2x128xf32, #tpu.memory_space<vmem>>, vector<1x2x128xf32>
    %314 = vector.shape_cast %313 : vector<1x2x128xf32> to vector<2x128xf32>
    %c3_114 = arith.constant 3 : index
    %c0_115 = arith.constant 0 : index
    %c0_116 = arith.constant 0 : index
    %315 = vector.load %arg3[%c3_114, %c0_115, %c0_116] : memref<5x2x128xf32, #tpu.memory_space<vmem>>, vector<1x2x128xf32>
    %316 = vector.shape_cast %315 : vector<1x2x128xf32> to vector<2x128xf32>
    %317 = tpu.concatenate %310, %312 in 1 : vector<2x12xf32>, vector<2x12xf32> -> vector<2x24xf32>
    %cst_117 = arith.constant dense<0.000000e+00> : vector<2x512xf32>
    %318 = tpu.matmul %317, %13, %cst_117 {dimension_numbers = #tpu.dot_dimension_numbers<[1], [0], [0], [1], [0, 0, 1, 1], [], []>} : vector<2x24xf32>, vector<24x512xf32>, vector<2x512xf32> -> vector<2x512xf32>
    %319 = arith.addf %21, %318 : vector<2x512xf32>
    %cst_118 = arith.constant dense<0.000000e+00> : vector<2x512xf32>
    %320 = tpu.matmul %314, %14, %cst_118 {dimension_numbers = #tpu.dot_dimension_numbers<[1], [0], [0], [1], [0, 0, 1, 1], [], []>} : vector<2x128xf32>, vector<128x512xf32>, vector<2x512xf32> -> vector<2x512xf32>
    %321 = arith.addf %319, %320 : vector<2x512xf32>
    %322 = vector.extract_strided_slice %321 {offsets = [0, 0], sizes = [2, 128], strides = [1, 1]} : vector<2x512xf32> to vector<2x128xf32>
    %323 = arith.negf %322 : vector<2x128xf32>
    %324 = math.exp %323 : vector<2x128xf32>
    %cst_119 = arith.constant 1.000000e+00 : f32
    %325 = vector.broadcast %cst_119 : f32 to vector<2x128xf32>
    %326 = arith.addf %325, %324 : vector<2x128xf32>
    %327 = arith.divf %325, %326 : vector<2x128xf32>
    %328 = vector.extract_strided_slice %321 {offsets = [0, 128], sizes = [2, 128], strides = [1, 1]} : vector<2x512xf32> to vector<2x128xf32>
    %329 = arith.negf %328 : vector<2x128xf32>
    %330 = math.exp %329 : vector<2x128xf32>
    %cst_120 = arith.constant 1.000000e+00 : f32
    %331 = vector.broadcast %cst_120 : f32 to vector<2x128xf32>
    %332 = arith.addf %331, %330 : vector<2x128xf32>
    %333 = arith.divf %331, %332 : vector<2x128xf32>
    %334 = vector.extract_strided_slice %321 {offsets = [0, 256], sizes = [2, 128], strides = [1, 1]} : vector<2x512xf32> to vector<2x128xf32>
    %335 = math.tanh %334 : vector<2x128xf32>
    %336 = vector.extract_strided_slice %321 {offsets = [0, 384], sizes = [2, 128], strides = [1, 1]} : vector<2x512xf32> to vector<2x128xf32>
    %337 = arith.negf %336 : vector<2x128xf32>
    %338 = math.exp %337 : vector<2x128xf32>
    %cst_121 = arith.constant 1.000000e+00 : f32
    %339 = vector.broadcast %cst_121 : f32 to vector<2x128xf32>
    %340 = arith.addf %339, %338 : vector<2x128xf32>
    %341 = arith.divf %339, %340 : vector<2x128xf32>
    %342 = arith.mulf %333, %316 : vector<2x128xf32>
    %343 = arith.mulf %327, %335 : vector<2x128xf32>
    %344 = arith.addf %342, %343 : vector<2x128xf32>
    %345 = math.tanh %344 : vector<2x128xf32>
    %346 = arith.mulf %341, %345 : vector<2x128xf32>
    %c3_122 = arith.constant 3 : index
    %c0_123 = arith.constant 0 : index
    %c0_124 = arith.constant 0 : index
    %347 = vector.load %arg12[%c3_122, %c0_123, %c0_124] : memref<5x2x128xf32, #tpu.memory_space<vmem>>, vector<1x2x128xf32>
    %348 = vector.shape_cast %347 : vector<1x2x128xf32> to vector<2x128xf32>
    %349 = vector.shape_cast %346 : vector<2x128xf32> to vector<1x2x128xf32>
    tpu.vector_store %arg12[%c3_122, %c0_123, %c0_124], %349 {strides = array<i32>} : memref<5x2x128xf32, #tpu.memory_space<vmem>>, vector<1x2x128xf32>,
    %c3_125 = arith.constant 3 : index
    %c0_126 = arith.constant 0 : index
    %c0_127 = arith.constant 0 : index
    %350 = vector.load %arg13[%c3_125, %c0_126, %c0_127] : memref<5x2x128xf32, #tpu.memory_space<vmem>>, vector<1x2x128xf32>
    %351 = vector.shape_cast %350 : vector<1x2x128xf32> to vector<2x128xf32>
    %352 = vector.shape_cast %344 : vector<2x128xf32> to vector<1x2x128xf32>
    tpu.vector_store %arg13[%c3_125, %c0_126, %c0_127], %352 {strides = array<i32>} : memref<5x2x128xf32, #tpu.memory_space<vmem>>, vector<1x2x128xf32>,
    %cst_128 = arith.constant dense<0.000000e+00> : vector<2x24xf32>
    %353 = tpu.matmul %346, %15, %cst_128 {dimension_numbers = #tpu.dot_dimension_numbers<[1], [0], [0], [1], [0, 0, 1, 1], [], []>} : vector<2x128xf32>, vector<128x24xf32>, vector<2x24xf32> -> vector<2x24xf32>
    %354 = vector.broadcast %16 : vector<1x24xf32> to vector<2x24xf32>
    %355 = arith.addf %353, %354 : vector<2x24xf32>
    %cst_129 = arith.constant dense<0xFF800000> : vector<2xf32>
    %356 = vector.multi_reduction <maximumf>, %355, %cst_129 [1] : vector<2x24xf32> to vector<2xf32>
    %357 = vector.shape_cast %356 : vector<2xf32> to vector<2x1xf32>
    %358 = vector.broadcast %357 : vector<2x1xf32> to vector<2x24xf32>
    %359 = arith.subf %355, %358 : vector<2x24xf32>
    %360 = math.exp %359 : vector<2x24xf32>
    %cst_130 = arith.constant 1.000000e+00 : f32
    %361 = vector.broadcast %cst_130 : f32 to vector<2x12xf32>
    %362 = arith.subf %361, %310 : vector<2x12xf32>
    %cst_131 = arith.constant 1.000000e+00 : f32
    %363 = vector.broadcast %cst_131 : f32 to vector<2x12xf32>
    %364 = arith.subf %363, %312 : vector<2x12xf32>
    %365 = arith.mulf %362, %364 : vector<2x12xf32>
    %366 = vector.extract_strided_slice %360 {offsets = [0, 0], sizes = [2, 12], strides = [1, 1]} : vector<2x24xf32> to vector<2x12xf32>
    %367 = arith.mulf %365, %366 : vector<2x12xf32>
    %368 = vector.extract_strided_slice %360 {offsets = [0, 12], sizes = [2, 12], strides = [1, 1]} : vector<2x24xf32> to vector<2x12xf32>
    %369 = arith.mulf %365, %368 : vector<2x12xf32>
    %cst_132 = arith.constant dense<0.000000e+00> : vector<2xf32>
    %370 = vector.multi_reduction <add>, %367, %cst_132 [1] : vector<2x12xf32> to vector<2xf32>
    %371 = vector.shape_cast %370 : vector<2xf32> to vector<2x1xf32>
    %cst_133 = arith.constant dense<0.000000e+00> : vector<2xf32>
    %372 = vector.multi_reduction <add>, %369, %cst_133 [1] : vector<2x12xf32> to vector<2xf32>
    %373 = vector.shape_cast %372 : vector<2xf32> to vector<2x1xf32>
    %374 = arith.addf %371, %373 : vector<2x1xf32>
    %cst_134 = arith.constant 1.000000e+00 : f32
    %375 = vector.broadcast %cst_134 : f32 to vector<2x1xf32>
    %376 = arith.divf %375, %374 : vector<2x1xf32>
    %377 = vector.broadcast %376 : vector<2x1xf32> to vector<2x12xf32>
    %378 = arith.mulf %367, %377 : vector<2x12xf32>
    %379 = vector.broadcast %376 : vector<2x1xf32> to vector<2x12xf32>
    %380 = arith.mulf %369, %379 : vector<2x12xf32>
    %381 = arith.mulf %288, %378 : vector<2x12xf32>
    %382 = arith.addf %285, %381 : vector<2x12xf32>
    %cst_135 = arith.constant 1.000000e+00 : f32
    %383 = vector.broadcast %cst_135 : f32 to vector<2x12xf32>
    %384 = arith.subf %383, %378 : vector<2x12xf32>
    %385 = arith.mulf %288, %384 : vector<2x12xf32>
    %386 = arith.mulf %293, %380 : vector<2x12xf32>
    %387 = arith.addf %290, %386 : vector<2x12xf32>
    %cst_136 = arith.constant 1.000000e+00 : f32
    %388 = vector.broadcast %cst_136 : f32 to vector<2x12xf32>
    %389 = arith.subf %388, %380 : vector<2x12xf32>
    %390 = arith.mulf %293, %389 : vector<2x12xf32>
    %391 = tpu.concatenate %378, %380 in 1 : vector<2x12xf32>, vector<2x12xf32> -> vector<2x24xf32>
    %cst_137 = arith.constant dense<0.000000e+00> : vector<2x24xf32>
    %392 = tpu.matmul %391, %11, %cst_137 {dimension_numbers = #tpu.dot_dimension_numbers<[1], [0], [0], [1], [0, 0, 1, 1], [], []>} : vector<2x24xf32>, vector<24x24xf32>, vector<2x24xf32> -> vector<2x24xf32>
    %c3_138 = arith.constant 3 : index
    %c0_139 = arith.constant 0 : index
    %c0_140 = arith.constant 0 : index
    %393 = vector.load %arg1[%c3_138, %c0_139, %c0_140] : memref<5x2x1xf32, #tpu.memory_space<vmem>>, vector<1x2x1xf32>
    %394 = vector.shape_cast %393 : vector<1x2x1xf32> to vector<2x1xf32>
    %395 = vector.broadcast %394 : vector<2x1xf32> to vector<2x24xf32>
    %396 = arith.cmpf olt, %392, %395 : vector<2x24xf32>
    %397 = arith.extui %396 : vector<2x24xi1> to vector<2x24xi32>
    %cst_141 = arith.constant dense<0> : vector<2xi32>
    %398 = vector.multi_reduction <add>, %397, %cst_141 [1] : vector<2x24xi32> to vector<2xi32>
    %399 = vector.shape_cast %398 : vector<2xi32> to vector<2x1xi32>
    %c23_i32_142 = arith.constant 23 : i32
    %400 = vector.broadcast %c23_i32_142 : i32 to vector<2x1xi32>
    %401 = arith.minsi %399, %400 : vector<2x1xi32>
    %402 = vector.broadcast %401 : vector<2x1xi32> to vector<2x24xi32>
    %403 = arith.cmpi eq, %12, %402 : vector<2x24xi32>
    %404 = arith.extui %403 : vector<2x24xi1> to vector<2x24xi32>
    %405 = arith.sitofp %404 : vector<2x24xi32> to vector<2x24xf32>
    %406 = vector.extract_strided_slice %405 {offsets = [0, 0], sizes = [2, 12], strides = [1, 1]} : vector<2x24xf32> to vector<2x12xf32>
    %407 = arith.addf %310, %406 : vector<2x12xf32>
    %408 = vector.extract_strided_slice %405 {offsets = [0, 12], sizes = [2, 12], strides = [1, 1]} : vector<2x24xf32> to vector<2x12xf32>
    %409 = arith.addf %312, %408 : vector<2x12xf32>
    %c4 = arith.constant 4 : index
    %c0_143 = arith.constant 0 : index
    %c0_144 = arith.constant 0 : index
    %410 = vector.load %arg2[%c4, %c0_143, %c0_144] : memref<5x2x128xf32, #tpu.memory_space<vmem>>, vector<1x2x128xf32>
    %411 = vector.shape_cast %410 : vector<1x2x128xf32> to vector<2x128xf32>
    %c4_145 = arith.constant 4 : index
    %c0_146 = arith.constant 0 : index
    %c0_147 = arith.constant 0 : index
    %412 = vector.load %arg3[%c4_145, %c0_146, %c0_147] : memref<5x2x128xf32, #tpu.memory_space<vmem>>, vector<1x2x128xf32>
    %413 = vector.shape_cast %412 : vector<1x2x128xf32> to vector<2x128xf32>
    %414 = tpu.concatenate %407, %409 in 1 : vector<2x12xf32>, vector<2x12xf32> -> vector<2x24xf32>
    %cst_148 = arith.constant dense<0.000000e+00> : vector<2x512xf32>
    %415 = tpu.matmul %414, %13, %cst_148 {dimension_numbers = #tpu.dot_dimension_numbers<[1], [0], [0], [1], [0, 0, 1, 1], [], []>} : vector<2x24xf32>, vector<24x512xf32>, vector<2x512xf32> -> vector<2x512xf32>
    %416 = arith.addf %21, %415 : vector<2x512xf32>
    %cst_149 = arith.constant dense<0.000000e+00> : vector<2x512xf32>
    %417 = tpu.matmul %411, %14, %cst_149 {dimension_numbers = #tpu.dot_dimension_numbers<[1], [0], [0], [1], [0, 0, 1, 1], [], []>} : vector<2x128xf32>, vector<128x512xf32>, vector<2x512xf32> -> vector<2x512xf32>
    %418 = arith.addf %416, %417 : vector<2x512xf32>
    %419 = vector.extract_strided_slice %418 {offsets = [0, 0], sizes = [2, 128], strides = [1, 1]} : vector<2x512xf32> to vector<2x128xf32>
    %420 = arith.negf %419 : vector<2x128xf32>
    %421 = math.exp %420 : vector<2x128xf32>
    %cst_150 = arith.constant 1.000000e+00 : f32
    %422 = vector.broadcast %cst_150 : f32 to vector<2x128xf32>
    %423 = arith.addf %422, %421 : vector<2x128xf32>
    %424 = arith.divf %422, %423 : vector<2x128xf32>
    %425 = vector.extract_strided_slice %418 {offsets = [0, 128], sizes = [2, 128], strides = [1, 1]} : vector<2x512xf32> to vector<2x128xf32>
    %426 = arith.negf %425 : vector<2x128xf32>
    %427 = math.exp %426 : vector<2x128xf32>
    %cst_151 = arith.constant 1.000000e+00 : f32
    %428 = vector.broadcast %cst_151 : f32 to vector<2x128xf32>
    %429 = arith.addf %428, %427 : vector<2x128xf32>
    %430 = arith.divf %428, %429 : vector<2x128xf32>
    %431 = vector.extract_strided_slice %418 {offsets = [0, 256], sizes = [2, 128], strides = [1, 1]} : vector<2x512xf32> to vector<2x128xf32>
    %432 = math.tanh %431 : vector<2x128xf32>
    %433 = vector.extract_strided_slice %418 {offsets = [0, 384], sizes = [2, 128], strides = [1, 1]} : vector<2x512xf32> to vector<2x128xf32>
    %434 = arith.negf %433 : vector<2x128xf32>
    %435 = math.exp %434 : vector<2x128xf32>
    %cst_152 = arith.constant 1.000000e+00 : f32
    %436 = vector.broadcast %cst_152 : f32 to vector<2x128xf32>
    %437 = arith.addf %436, %435 : vector<2x128xf32>
    %438 = arith.divf %436, %437 : vector<2x128xf32>
    %439 = arith.mulf %430, %413 : vector<2x128xf32>
    %440 = arith.mulf %424, %432 : vector<2x128xf32>
    %441 = arith.addf %439, %440 : vector<2x128xf32>
    %442 = math.tanh %441 : vector<2x128xf32>
    %443 = arith.mulf %438, %442 : vector<2x128xf32>
    %c4_153 = arith.constant 4 : index
    %c0_154 = arith.constant 0 : index
    %c0_155 = arith.constant 0 : index
    %444 = vector.load %arg12[%c4_153, %c0_154, %c0_155] : memref<5x2x128xf32, #tpu.memory_space<vmem>>, vector<1x2x128xf32>
    %445 = vector.shape_cast %444 : vector<1x2x128xf32> to vector<2x128xf32>
    %446 = vector.shape_cast %443 : vector<2x128xf32> to vector<1x2x128xf32>
    tpu.vector_store %arg12[%c4_153, %c0_154, %c0_155], %446 {strides = array<i32>} : memref<5x2x128xf32, #tpu.memory_space<vmem>>, vector<1x2x128xf32>,
    %c4_156 = arith.constant 4 : index
    %c0_157 = arith.constant 0 : index
    %c0_158 = arith.constant 0 : index
    %447 = vector.load %arg13[%c4_156, %c0_157, %c0_158] : memref<5x2x128xf32, #tpu.memory_space<vmem>>, vector<1x2x128xf32>
    %448 = vector.shape_cast %447 : vector<1x2x128xf32> to vector<2x128xf32>
    %449 = vector.shape_cast %441 : vector<2x128xf32> to vector<1x2x128xf32>
    tpu.vector_store %arg13[%c4_156, %c0_157, %c0_158], %449 {strides = array<i32>} : memref<5x2x128xf32, #tpu.memory_space<vmem>>, vector<1x2x128xf32>,
    %cst_159 = arith.constant dense<0.000000e+00> : vector<2x24xf32>
    %450 = tpu.matmul %443, %15, %cst_159 {dimension_numbers = #tpu.dot_dimension_numbers<[1], [0], [0], [1], [0, 0, 1, 1], [], []>} : vector<2x128xf32>, vector<128x24xf32>, vector<2x24xf32> -> vector<2x24xf32>
    %451 = vector.broadcast %16 : vector<1x24xf32> to vector<2x24xf32>
    %452 = arith.addf %450, %451 : vector<2x24xf32>
    %cst_160 = arith.constant dense<0xFF800000> : vector<2xf32>
    %453 = vector.multi_reduction <maximumf>, %452, %cst_160 [1] : vector<2x24xf32> to vector<2xf32>
    %454 = vector.shape_cast %453 : vector<2xf32> to vector<2x1xf32>
    %455 = vector.broadcast %454 : vector<2x1xf32> to vector<2x24xf32>
    %456 = arith.subf %452, %455 : vector<2x24xf32>
    %457 = math.exp %456 : vector<2x24xf32>
    %cst_161 = arith.constant 1.000000e+00 : f32
    %458 = vector.broadcast %cst_161 : f32 to vector<2x12xf32>
    %459 = arith.subf %458, %407 : vector<2x12xf32>
    %cst_162 = arith.constant 1.000000e+00 : f32
    %460 = vector.broadcast %cst_162 : f32 to vector<2x12xf32>
    %461 = arith.subf %460, %409 : vector<2x12xf32>
    %462 = arith.mulf %459, %461 : vector<2x12xf32>
    %463 = vector.extract_strided_slice %457 {offsets = [0, 0], sizes = [2, 12], strides = [1, 1]} : vector<2x24xf32> to vector<2x12xf32>
    %464 = arith.mulf %462, %463 : vector<2x12xf32>
    %465 = vector.extract_strided_slice %457 {offsets = [0, 12], sizes = [2, 12], strides = [1, 1]} : vector<2x24xf32> to vector<2x12xf32>
    %466 = arith.mulf %462, %465 : vector<2x12xf32>
    %cst_163 = arith.constant dense<0.000000e+00> : vector<2xf32>
    %467 = vector.multi_reduction <add>, %464, %cst_163 [1] : vector<2x12xf32> to vector<2xf32>
    %468 = vector.shape_cast %467 : vector<2xf32> to vector<2x1xf32>
    %cst_164 = arith.constant dense<0.000000e+00> : vector<2xf32>
    %469 = vector.multi_reduction <add>, %466, %cst_164 [1] : vector<2x12xf32> to vector<2xf32>
    %470 = vector.shape_cast %469 : vector<2xf32> to vector<2x1xf32>
    %471 = arith.addf %468, %470 : vector<2x1xf32>
    %cst_165 = arith.constant 1.000000e+00 : f32
    %472 = vector.broadcast %cst_165 : f32 to vector<2x1xf32>
    %473 = arith.divf %472, %471 : vector<2x1xf32>
    %474 = vector.broadcast %473 : vector<2x1xf32> to vector<2x12xf32>
    %475 = arith.mulf %464, %474 : vector<2x12xf32>
    %476 = vector.broadcast %473 : vector<2x1xf32> to vector<2x12xf32>
    %477 = arith.mulf %466, %476 : vector<2x12xf32>
    %478 = arith.mulf %385, %475 : vector<2x12xf32>
    %479 = arith.addf %382, %478 : vector<2x12xf32>
    %480 = arith.mulf %390, %477 : vector<2x12xf32>
    %481 = arith.addf %387, %480 : vector<2x12xf32>
    %482 = tpu.concatenate %475, %477 in 1 : vector<2x12xf32>, vector<2x12xf32> -> vector<2x24xf32>
    %cst_166 = arith.constant dense<0.000000e+00> : vector<2x24xf32>
    %483 = tpu.matmul %482, %11, %cst_166 {dimension_numbers = #tpu.dot_dimension_numbers<[1], [0], [0], [1], [0, 0, 1, 1], [], []>} : vector<2x24xf32>, vector<24x24xf32>, vector<2x24xf32> -> vector<2x24xf32>
    %c4_167 = arith.constant 4 : index
    %c0_168 = arith.constant 0 : index
    %c0_169 = arith.constant 0 : index
    %484 = vector.load %arg1[%c4_167, %c0_168, %c0_169] : memref<5x2x1xf32, #tpu.memory_space<vmem>>, vector<1x2x1xf32>
    %485 = vector.shape_cast %484 : vector<1x2x1xf32> to vector<2x1xf32>
    %486 = vector.broadcast %485 : vector<2x1xf32> to vector<2x24xf32>
    %487 = arith.cmpf olt, %483, %486 : vector<2x24xf32>
    %488 = arith.extui %487 : vector<2x24xi1> to vector<2x24xi32>
    %cst_170 = arith.constant dense<0> : vector<2xi32>
    %489 = vector.multi_reduction <add>, %488, %cst_170 [1] : vector<2x24xi32> to vector<2xi32>
    %490 = vector.shape_cast %489 : vector<2xi32> to vector<2x1xi32>
    %c23_i32_171 = arith.constant 23 : i32
    %491 = vector.broadcast %c23_i32_171 : i32 to vector<2x1xi32>
    %492 = arith.minsi %490, %491 : vector<2x1xi32>
    %493 = vector.broadcast %492 : vector<2x1xi32> to vector<2x24xi32>
    %494 = arith.cmpi eq, %12, %493 : vector<2x24xi32>
    %495 = arith.extui %494 : vector<2x24xi1> to vector<2x24xi32>
    %496 = arith.sitofp %495 : vector<2x24xi32> to vector<2x24xf32>
    %497 = vector.extract_strided_slice %496 {offsets = [0, 0], sizes = [2, 12], strides = [1, 1]} : vector<2x24xf32> to vector<2x12xf32>
    %498 = arith.addf %407, %497 : vector<2x12xf32>
    %c0_172 = arith.constant 0 : index
    %c0_173 = arith.constant 0 : index
    %499 = vector.load %arg10[%c0_172, %c0_173] : memref<2x12xf32, #tpu.memory_space<vmem>>, vector<2x12xf32>
    tpu.vector_store %arg10[%c0_172, %c0_173], %498 {strides = array<i32>} : memref<2x12xf32, #tpu.memory_space<vmem>>, vector<2x12xf32>,
    %cst_174 = arith.constant 1.000000e+00 : f32
    %500 = vector.broadcast %cst_174 : f32 to vector<2x12xf32>
    %501 = arith.subf %500, %481 : vector<2x12xf32>
    %502 = arith.mulf %479, %501 : vector<2x12xf32>
    %c0_175 = arith.constant 0 : index
    %c0_176 = arith.constant 0 : index
    %503 = vector.load %arg11[%c0_175, %c0_176] : memref<2x12xf32, #tpu.memory_space<vmem>>, vector<2x12xf32>
    tpu.vector_store %arg11[%c0_175, %c0_176], %502 {strides = array<i32>} : memref<2x12xf32, #tpu.memory_space<vmem>>, vector<2x12xf32>,
    return
  }
}

</mosaic_0001>

<bundles_post_ra>
// kernel: tpu_custom_call.1
= control target key start
LH: loop header
LB: loop body
LE: loop exit
PB: predicated region body
PF: predicated region fallthrough
CT: control target
= control target key end

     0   :  { %19 = vsyncpa [#allocation3], 0  ;;  %s5500_s0 = inlined_call_operand.vmem [shape: f32[2,130], index: 0, kind: input, shape index: {}]   ;;  %s5501_s1 = inlined_call_operand.vmem [shape: f32[5,2,1], index: 1, kind: input, shape index: {}]   ;;  %s5502_s2 = inlined_call_operand.vmem [shape: f32[5,2,128], index: 2, kind: input, shape index: {}]   ;;  %s5503_s3 = inlined_call_operand.vmem [shape: f32[5,2,128], index: 3, kind: input, shape index: {}]   ;;  %s5504_s4 = inlined_call_operand.hbm [shape: f32[130,512], index: 4, kind: input, shape index: {}]   ;;  %s5505_s5 = inlined_call_operand.vmem [shape: f32[24,512], index: 5, kind: input, shape index: {}]   ;;  %s5506_s6 = inlined_call_operand.hbm [shape: f32[128,512], index: 6, kind: input, shape index: {}]   ;;  %s5507_s7 = inlined_call_operand.vmem [shape: f32[1,512], index: 7, kind: input, shape index: {}]   ;;  %s5508_s8 = inlined_call_operand.vmem [shape: f32[128,24], index: 8, kind: input, shape index: {}]   ;;  %s5509_s9 = inlined_call_operand.vmem [shape: f32[1,24], index: 9, kind: input, shape index: {}]   ;;  %s5510_s10 = inlined_call_operand.hbm [shape: f32[2,12], index: 10, kind: output, shape index: {0}]   ;;  %s5511_s11 = inlined_call_operand.hbm [shape: f32[2,12], index: 11, kind: output, shape index: {1}]   ;;  %s5512_s12 = inlined_call_operand.hbm [shape: f32[5,2,128], index: 12, kind: output, shape index: {2}]   ;;  %s5513_s13 = inlined_call_operand.hbm [shape: f32[5,2,128], index: 13, kind: output, shape index: {3}]  }
   0x1   :  { %20 = vsyncpa [#allocation6], 0 }
   0x2   :  { %21 = vsyncpa [#allocation4], 0 }
   0x3   :  { %22 = vsyncpa [#allocation9], 0 }
   0x4   :  { %23 = vsyncpa [#allocation12], 0  ;;  %s3935_s25 = smov [#allocation2]  }
   0x5   :  { %s37_s26 = sshll.u32 %s3935_s25, 4  ;;  %s38_s26 = int_to_ptr.vmem [resolvable:$true] %s37_s26 }
   0x6   :  { %s3813_s27 = scalar_lea.vmem %s38_s26, 8704  ;;  %p3818_p1 = scmp.lt.s32.totalorder %s38_s26, %s38_s26 }
   0x7   :  { %p3814_p0 = scmp.ne.s32.totalorder %s38_s26, %s3813_s27  ;;  %p3819_p2 = scmp.lt.s32.totalorder %s3813_s27, %s3813_s27 }
   0x9   :  { %p3820_p3 = por %p3819_p2, %p3818_p1 }
   0xb   :  { %p3821_p4 = pnand %p3820_p3, %p3814_p0 }
   0xd   :  { %3824 = shalt.err (!%p3821_p4)
}
   0xe   :  { %s3936_s28 = smov 512   ;;  %s3937_s29 = smov 32  }
   0xf   :  { %43 = dma.hbm_to_vmem [thread:$0]  %s5504_s4, 8704, %s38_s26, [#allocation3], %s3936_s28, %s3936_s28, %s3937_s29  }
  0x10   :  { %s3938_s15 = smov [#allocation5]  }
  0x11   :  { %s51_s16 = sshll.u32 %s3938_s15, 4  ;;  %s52_s16 = int_to_ptr.vmem [resolvable:$true] %s51_s16 }
  0x12   :  { %s3833_s17 = scalar_lea.vmem %s52_s16, 8192  ;;  %p3838_p6 = scmp.lt.s32.totalorder %s52_s16, %s52_s16 }
  0x13   :  { %p3834_p5 = scmp.ne.s32.totalorder %s52_s16, %s3833_s17  ;;  %p3839_p7 = scmp.lt.s32.totalorder %s3833_s17, %s3833_s17 }
  0x15   :  { %p3840_p8 = por %p3839_p7, %p3838_p6 }
  0x17   :  { %p3841_p9 = pnand %p3840_p8, %p3834_p5 }
  0x19   :  { %3844 = shalt.err (!%p3841_p9)
}
  0x1a   :  { %57 = dma.hbm_to_vmem [thread:$0]  %s5506_s6, 8192, %s52_s16, [#allocation6], %s3936_s28, %s3936_s28, %s3937_s29  }
  0x1b   :  { %3925 = dma.done.wait [#allocation3], 8704  }
  0x1c   :  { %3926 = vsyncadd [#allocation3], 4294958592 }
  0x1d   :  { %3927 = dma.done.wait [#allocation6], 8192  }
  0x1e   :  { %3928 = vsyncadd [#allocation6], 4294959104  ;;  %v240_v0 = vld [vmem:[#allocation2 + $0x1e8] sm:$0xff]  ;;  %v242_v1 = vld [vmem:[#allocation2 + $0x1f8] sm:$0xff]  ;;  %vm282_vm0 = vcmask 1041408   ;;  %vm279_vm1 = vcmask 15360  }
  0x1f   :  { %v239_v2 = vld [vmem:[#allocation2 + $0x1e0] sm:$0xff]  ;;  %295 = vmatprep.subr.mxu0 %v240_v0  ;;  %366 = vmatprep.subr.mxu1 %v242_v1  ;;  %v241_v3 = vld [vmem:[#allocation2 + $0x1f0] sm:$0xff]  ;;  %v236_v4 = vld [vmem:[#allocation2 + $0x1c8] sm:$0xff]  ;;  %vm3940_vm2 = vmmov 0   ;;  %vm837_vm3 = vcmask 189440   ;;  %vm844_vm4 = vcmask 91136  }
  0x20   :  { %v238_v5 = vld [vmem:[#allocation2 + $0x1d8] sm:$0xff]  ;;  %296 = vmatpush1.msra.mxu0 %v239_v2  ;;  %367 = vmatpush1.msra.mxu1 %v241_v3  ;;  %v235_v6 = vld [vmem:[#allocation2 + $0x1c0] sm:$0xff]  ;;  %v237_v7 = vld [vmem:[#allocation2 + $0x1d0] sm:$0xff]  ;;  %s3941_s25 = smov 116   ;;  %vm439_vm8 = vcmask 195584   ;;  %s3944_s18 = smov 12  }
  0x21   :  { %v232_v8 = vld [vmem:[#allocation2 + $0x1a8] sm:$0xff]  ;;  %297 = vmatprep.subr.mxu0 %v236_v4  ;;  %368 = vmatprep.subr.mxu1 %v238_v5  ;;  %v234_v9 = vld [vmem:[#allocation2 + $0x1b8] sm:$0xff]  ;;  %v231_v10 = vld [vmem:[#allocation2 + $0x1a0] sm:$0xff]  ;;  %vm861_vm12 = vcmask 97280  }
  0x22   :  { %v233_v11 = vld [vmem:[#allocation2 + $0x1b0] sm:$0xff]  ;;  %298 = vmatpush1.msra.mxu0 %v235_v6  ;;  %369 = vmatpush1.msra.mxu1 %v237_v7  ;;  %v228_v12 = vld [vmem:[#allocation2 + $0x188] sm:$0xff]  ;;  %v230_v13 = vld [vmem:[#allocation2 + $0x198] sm:$0xff] }
  0x23   :  { %299 = vmatprep.subr.mxu0 %v232_v8  ;;  %370 = vmatprep.subr.mxu1 %v234_v9  ;;  %v227_v14 = vld [vmem:[#allocation2 + $0x180] sm:$0xff]  ;;  %v229_v15 = vld [vmem:[#allocation2 + $0x190] sm:$0xff]  ;;  %v224_v16 = vld [vmem:[#allocation2 + $0x168] sm:$0xff] }
  0x24   :  { %300 = vmatpush1.msra.mxu0 %v231_v10  ;;  %371 = vmatpush1.msra.mxu1 %v233_v11  ;;  %v226_v17 = vld [vmem:[#allocation2 + $0x178] sm:$0xff]  ;;  %v223_v18 = vld [vmem:[#allocation2 + $0x160] sm:$0xff]  ;;  %v225_v19 = vld [vmem:[#allocation2 + $0x170] sm:$0xff] }
  0x25   :  { %301 = vmatprep.subr.mxu0 %v228_v12  ;;  %372 = vmatprep.subr.mxu1 %v230_v13  ;;  %v220_v20 = vld [vmem:[#allocation2 + $0x148] sm:$0xff]  ;;  %v222_v21 = vld [vmem:[#allocation2 + $0x158] sm:$0xff]  ;;  %v219_v22 = vld [vmem:[#allocation2 + $0x140] sm:$0xff] }
  0x26   :  { %302 = vmatpush1.msra.mxu0 %v227_v14  ;;  %373 = vmatpush1.msra.mxu1 %v229_v15  ;;  %v221_v23 = vld [vmem:[#allocation2 + $0x150] sm:$0xff]  ;;  %v216_v24 = vld [vmem:[#allocation2 + $0x128] sm:$0xff]  ;;  %v218_v25 = vld [vmem:[#allocation2 + $0x138] sm:$0xff] }
  0x27   :  { %303 = vmatprep.subr.mxu0 %v224_v16  ;;  %374 = vmatprep.subr.mxu1 %v226_v17  ;;  %v215_v26 = vld [vmem:[#allocation2 + $0x120] sm:$0xff]  ;;  %v217_v27 = vld [vmem:[#allocation2 + $0x130] sm:$0xff]  ;;  %v212_v28 = vld [vmem:[#allocation2 + $0x108] sm:$0xff] }
  0x28   :  { %304 = vmatpush1.msra.mxu0 %v223_v18  ;;  %375 = vmatpush1.msra.mxu1 %v225_v19  ;;  %v214_v29 = vld [vmem:[#allocation2 + $0x118] sm:$0xff]  ;;  %v211_v30 = vld [vmem:[#allocation2 + $0x100] sm:$0xff]  ;;  %v213_v31 = vld [vmem:[#allocation2 + $0x110] sm:$0xff] }
  0x29   :  { %305 = vmatprep.subr.mxu0 %v220_v20  ;;  %376 = vmatprep.subr.mxu1 %v222_v21  ;;  %v208_v32 = vld [vmem:[#allocation2 + $0xe8] sm:$0xff]  ;;  %v210_v33 = vld [vmem:[#allocation2 + $0xf8] sm:$0xff]  ;;  %v207_v34 = vld [vmem:[#allocation2 + $0xe0] sm:$0xff]  ;;  %v5514_v20 = vmov 0.0  }
  0x2a   :  { %306 = vmatpush1.msra.mxu0 %v219_v22  ;;  %377 = vmatpush1.msra.mxu1 %v221_v23  ;;  %v209_v35 = vld [vmem:[#allocation2 + $0xf0] sm:$0xff]  ;;  %v204_v36 = vld [vmem:[#allocation2 + $0xc8] sm:$0xff]  ;;  %v206_v37 = vld [vmem:[#allocation2 + $0xd8] sm:$0xff] }
  0x2b   :  { %307 = vmatprep.subr.mxu0 %v216_v24  ;;  %378 = vmatprep.subr.mxu1 %v218_v25  ;;  %v203_v38 = vld [vmem:[#allocation2 + $0xc0] sm:$0xff]  ;;  %v205_v39 = vld [vmem:[#allocation2 + $0xd0] sm:$0xff]  ;;  %v200_v40 = vld [vmem:[#allocation2 + $0xa8] sm:$0xff] }
  0x2c   :  { %308 = vmatpush1.msra.mxu0 %v215_v26  ;;  %379 = vmatpush1.msra.mxu1 %v217_v27  ;;  %v202_v41 = vld [vmem:[#allocation2 + $0xb8] sm:$0xff]  ;;  %v199_v42 = vld [vmem:[#allocation2 + $0xa0] sm:$0xff]  ;;  %v201_v43 = vld [vmem:[#allocation2 + $0xb0] sm:$0xff] }
  0x2d   :  { %309 = vmatprep.subr.mxu0 %v212_v28  ;;  %380 = vmatprep.subr.mxu1 %v214_v29  ;;  %v196_v44 = vld [vmem:[#allocation2 + $0x88] sm:$0xff]  ;;  %v198_v45 = vld [vmem:[#allocation2 + $0x98] sm:$0xff]  ;;  %v195_v46 = vld [vmem:[#allocation2 + $0x80] sm:$0xff] }
  0x2e   :  { %310 = vmatpush1.msra.mxu0 %v211_v30  ;;  %381 = vmatpush1.msra.mxu1 %v213_v31  ;;  %v197_v47 = vld [vmem:[#allocation2 + $0x90] sm:$0xff]  ;;  %v192_v48 = vld [vmem:[#allocation2 + $0x68] sm:$0xff]  ;;  %v194_v49 = vld [vmem:[#allocation2 + $0x78] sm:$0xff] }
  0x2f   :  { %311 = vmatprep.subr.mxu0 %v208_v32  ;;  %382 = vmatprep.subr.mxu1 %v210_v33  ;;  %v191_v50 = vld [vmem:[#allocation2 + $0x60] sm:$0xff]  ;;  %v193_v51 = vld [vmem:[#allocation2 + $0x70] sm:$0xff]  ;;  %v188_v52 = vld [vmem:[#allocation2 + $0x48] sm:$0xff] }
  0x30   :  { %312 = vmatpush1.msra.mxu0 %v207_v34  ;;  %383 = vmatpush1.msra.mxu1 %v209_v35  ;;  %v190_v53 = vld [vmem:[#allocation2 + $0x58] sm:$0xff]  ;;  %v187_v54 = vld [vmem:[#allocation2 + $0x40] sm:$0xff]  ;;  %v189_v55 = vld [vmem:[#allocation2 + $0x50] sm:$0xff] }
  0x31   :  { %313 = vmatprep.subr.mxu0 %v204_v36  ;;  %384 = vmatprep.subr.mxu1 %v206_v37  ;;  %v184_v56 = vld [vmem:[#allocation2 + $0x28] sm:$0xff]  ;;  %v186_v57 = vld [vmem:[#allocation2 + $0x38] sm:$0xff]  ;;  %v183_v58 = vld [vmem:[#allocation2 + $0x20] sm:$0xff] }
  0x32   :  { %314 = vmatpush1.msra.mxu0 %v203_v38  ;;  %385 = vmatpush1.msra.mxu1 %v205_v39  ;;  %v185_v59 = vld [vmem:[#allocation2 + $0x30] sm:$0xff]  ;;  %v3202_v60 = vld.sshfl [vmem:[%s5500_s0] sm:$0x33 pattern:$0x76325410]  ;;  %v180_v61 = vld [vmem:[#allocation2 + $0x8] sm:$0xff] }
  0x33   :  { %315 = vmatprep.subr.mxu0 %v200_v40  ;;  %386 = vmatprep.subr.mxu1 %v202_v41  ;;  %v182_v62 = vld [vmem:[#allocation2 + $0x18] sm:$0xff]  ;;  %v179_v63 = vld [vmem:[#allocation2] sm:$0xff]  ;;  %v181_v0 = vld [vmem:[#allocation2 + $0x10] sm:$0xff]  ;;  %v277_v3 = vcombine.high %v3202_v60, %v3202_v60 }
  0x34   :  { %316 = vmatpush1.msra.mxu0 %v199_v42  ;;  %387 = vmatpush1.msra.mxu1 %v201_v43  ;;  %v244_v1 = vld [vmem:[#allocation2 + $0x208] sm:$0x3]  ;;  %v246_v2 = vld [vmem:[#allocation2 + $0x218] sm:$0x3]  ;;  %v243_v4 = vld [vmem:[#allocation2 + $0x200] sm:$0x3] }
  0x35   :  { %317 = vmatprep.subr.mxu0 %v196_v44  ;;  %388 = vmatprep.subr.mxu1 %v198_v45  ;;  %v245_v5 = vld [vmem:[#allocation2 + $0x210] sm:$0x3]  ;;  %v4036_v6 = vld [vmem:[%s5505_s5 + $0x48] sm:$0xff]  ;;  %v4045_v8 = vld [vmem:[%s5505_s5 + $0x40] sm:$0xff] }
  0x36   :  { %318 = vmatpush1.msra.mxu0 %v195_v46  ;;  %389 = vmatpush1.msra.mxu1 %v197_v47  ;;  %v4039_v7 = vld [vmem:[#allocation5 + $0x1e8] sm:$0xff]  ;;  %v4047_v9 = vld [vmem:[#allocation5 + $0x1e0] sm:$0xff]  ;;  %v4090_v18 = vld [vmem:[%s5505_s5 + $0x58] sm:$0xff] }
  0x37   :  { %319 = vmatprep.subr.mxu0 %v192_v48  ;;  %390 = vmatprep.subr.mxu1 %v194_v49  ;;  %5670 = vst [vmem:[#allocation18_spill] sm:$0xff] %v4039_v7  ;;  %5671 = vst [vmem:[#allocation19_spill] sm:$0xff] %v4047_v9  ;;  %v4053_v10 = vld [vmem:[%s5505_s5 + $0x28] sm:$0xff]  ;;  %v4061_v12 = vld [vmem:[%s5505_s5 + $0x20] sm:$0xff] }
  0x38   :  { %320 = vmatpush1.msra.mxu0 %v191_v50  ;;  %391 = vmatpush1.msra.mxu1 %v193_v51  ;;  %v4055_v11 = vld [vmem:[#allocation5 + $0x1c8] sm:$0xff]  ;;  %v4063_v13 = vld [vmem:[#allocation5 + $0x1c0] sm:$0xff]  ;;  %v4099_v21 = vld [vmem:[%s5505_s5 + $0x50] sm:$0xff] }
  0x39   :  { %321 = vmatprep.subr.mxu0 %v188_v52  ;;  %392 = vmatprep.subr.mxu1 %v190_v53  ;;  %5672 = vst [vmem:[#allocation20_spill] sm:$0xff] %v4055_v11  ;;  %5673 = vst [vmem:[#allocation21_spill] sm:$0xff] %v4063_v13  ;;  %v4070_v14 = vld [vmem:[%s5505_s5 + $0x8] sm:$0xff]  ;;  %v4079_v16 = vld [vmem:[%s5505_s5] sm:$0xff] }
  0x3a   :  { %322 = vmatpush1.msra.mxu0 %v187_v54  ;;  %393 = vmatpush1.msra.mxu1 %v189_v55  ;;  %v4072_v15 = vld [vmem:[#allocation5 + $0x1a8] sm:$0xff]  ;;  %v4083_v17 = vld [vmem:[#allocation5 + $0x1a0] sm:$0xff]  ;;  %v4108_v23 = vld [vmem:[%s5505_s5 + $0x38] sm:$0xff] }
  0x3b   :  { %323 = vmatprep.subr.mxu0 %v184_v56  ;;  %394 = vmatprep.subr.mxu1 %v186_v57  ;;  %5674 = vst [vmem:[#allocation22_spill] sm:$0xff] %v4072_v15  ;;  %5675 = vst [vmem:[#allocation23_spill] sm:$0xff] %v4083_v17  ;;  %v4092_v19 = vld [vmem:[#allocation5 + $0x188] sm:$0xff]  ;;  %v4101_v22 = vld [vmem:[#allocation5 + $0x180] sm:$0xff] }
  0x3c   :  { %324 = vmatpush1.msra.mxu0 %v183_v58  ;;  %395 = vmatpush1.msra.mxu1 %v185_v59  ;;  %5676 = vst [vmem:[#allocation24_spill] sm:$0xff] %v4092_v19  ;;  %5677 = vst [vmem:[#allocation25_spill] sm:$0xff] %v4101_v22  ;;  %v4110_v24 = vld [vmem:[#allocation5 + $0x168] sm:$0xff]  ;;  %v4117_v25 = vld [vmem:[%s5505_s5 + $0x30] sm:$0xff] }
  0x3d   :  { %325 = vmatprep.subr.mxu0 %v180_v61  ;;  %396 = vmatprep.subr.mxu1 %v182_v62  ;;  %5678 = vst [vmem:[#allocation26_spill] sm:$0xff] %v4110_v24  ;;  %5679 = vst [vmem:[#allocation27_spill] sm:$0xff] %v4117_v25  ;;  %v4119_v26 = vld [vmem:[#allocation5 + $0x160] sm:$0xff]  ;;  %v4126_v27 = vld [vmem:[%s5505_s5 + $0x18] sm:$0xff] }
  0x3e   :  { %326 = vmatpush1.msra.mxu0 %v179_v63  ;;  %397 = vmatpush1.msra.mxu1 %v181_v0  ;;  %5680 = vst [vmem:[#allocation28_spill] sm:$0xff] %v4119_v26  ;;  %5681 = vst [vmem:[#allocation29_spill] sm:$0xff] %v4126_v27  ;;  %v4128_v28 = vld [vmem:[#allocation5 + $0x148] sm:$0xff]  ;;  %v4135_v29 = vld [vmem:[%s5505_s5 + $0x10] sm:$0xff] }
  0x3f   :  { %3203 = vmatprep.subr.msk.mxu0 %vm282_vm0, %v244_v1  ;;  %3206 = vmatprep.subr.msk.mxu1 %vm282_vm0, %v246_v2  ;;  %5682 = vst [vmem:[#allocation30_spill] sm:$0xff] %v4128_v28  ;;  %5683 = vst [vmem:[#allocation31_spill] sm:$0xff] %v4135_v29  ;;  %v4139_v30 = vld [vmem:[#allocation5 + $0x140] sm:$0xff]  ;;  %v4143_v31 = vld [vmem:[#allocation5 + $0x128] sm:$0xff] }
  0x40   :  { %3204 = vmatpush2.msk.msra.mxu0 %vm282_vm0, %v243_v4  ;;  %3205 = vmatprep.mubr.msk.f32.mxu0 %vm279_vm1, %v277_v3  ;;  %5684 = vst [vmem:[#allocation32_spill] sm:$0xff] %v4139_v30  ;;  %5685 = vst [vmem:[#allocation33_spill] sm:$0xff] %v4143_v31  ;;  %v4145_v32 = vld [vmem:[#allocation5 + $0x1f8] sm:$0xff]  ;;  %v4149_v33 = vld [vmem:[#allocation5 + $0x120] sm:$0xff] }
  0x41   :  { %3207 = vmatpush2.msk.msra.mxu1 %vm282_vm0, %v245_v5  ;;  %360 = vmatmul.mubr.f32.vlgmr.msra.gmra.mxu0 %v3202_v60  ;;  %5686 = vst [vmem:[#allocation34_spill] sm:$0xff] %v4145_v32  ;;  %5687 = vst [vmem:[#allocation35_spill] sm:$0xff] %v4149_v33  ;;  %v4151_v34 = vld [vmem:[#allocation5 + $0x1f0] sm:$0xff]  ;;  %v4155_v35 = vld [vmem:[#allocation5 + $0x108] sm:$0xff] }
  0x42   :  { %3208 = vmatprep.mubr.msk.f32.mxu1 %vm279_vm1, %v277_v3  ;;  %469 = vmatprep.subr.mxu1 %v4036_v6  ;;  %5688 = vst [vmem:[#allocation36_spill] sm:$0xff] %v4155_v35  ;;  %v4157_v36 = vld [vmem:[#allocation5 + $0x1d8] sm:$0xff]  ;;  %v4161_v37 = vld [vmem:[#allocation5 + $0x100] sm:$0xff]  ;;  %v4163_v38 = vld [vmem:[#allocation5 + $0x1d0] sm:$0xff] }
  0x43   :  { %589 = vmatprep.subr.mxu0 %v4039_v7  ;;  %431 = vmatmul.mubr.f32.vlgmr.msra.gmra.mxu1 %v3202_v60  ;;  %5689 = vst [vmem:[#allocation37_spill] sm:$0xff] %v4161_v37  ;;  %v4167_v39 = vld [vmem:[#allocation5 + $0xe8] sm:$0xff]  ;;  %v4169_v40 = vld [vmem:[#allocation5 + $0x1b8] sm:$0xff]  ;;  %v4173_v41 = vld [vmem:[#allocation5 + $0xe0] sm:$0xff] }
  0x44   :  { %470 = vmatpush1.msra.mxu1 %v4045_v8  ;;  %590 = vmatpush1.msra.mxu0 %v4047_v9  ;;  %5690 = vst [vmem:[#allocation38_spill] sm:$0xff] %v4167_v39  ;;  %5691 = vst [vmem:[#allocation39_spill] sm:$0xff] %v4173_v41  ;;  %v4175_v42 = vld [vmem:[#allocation5 + $0x1b0] sm:$0xff]  ;;  %v4179_v43 = vld [vmem:[#allocation5 + $0xc8] sm:$0xff] }
  0x45   :  { %471 = vmatprep.subr.mxu1 %v4053_v10  ;;  %591 = vmatprep.subr.mxu0 %v4055_v11  ;;  %5692 = vst [vmem:[#allocation40_spill] sm:$0xff] %v4179_v43  ;;  %v4181_v44 = vld [vmem:[#allocation5 + $0x198] sm:$0xff]  ;;  %v4185_v45 = vld [vmem:[#allocation5 + $0xc0] sm:$0xff]  ;;  %v4187_v46 = vld [vmem:[#allocation5 + $0x190] sm:$0xff] }
  0x46   :  { %472 = vmatpush1.msra.mxu1 %v4061_v12  ;;  %592 = vmatpush1.msra.mxu0 %v4063_v13  ;;  %5693 = vst [vmem:[#allocation41_spill] sm:$0xff] %v4185_v45  ;;  %v4191_v47 = vld [vmem:[#allocation5 + $0xa8] sm:$0xff]  ;;  %v4193_v48 = vld [vmem:[#allocation5 + $0x178] sm:$0xff]  ;;  %v4197_v49 = vld [vmem:[#allocation5 + $0xa0] sm:$0xff] }
  0x47   :  { %473 = vmatprep.subr.mxu1 %v4070_v14  ;;  %593 = vmatprep.subr.mxu0 %v4072_v15  ;;  %5694 = vst [vmem:[#allocation42_spill] sm:$0xff] %v4191_v47  ;;  %5695 = vst [vmem:[#allocation43_spill] sm:$0xff] %v4197_v49  ;;  %v4199_v50 = vld [vmem:[#allocation5 + $0x170] sm:$0xff]  ;;  %v4203_v51 = vld [vmem:[#allocation5 + $0x88] sm:$0xff] }
  0x48   :  { %474 = vmatpush1.msra.mxu1 %v4079_v16  ;;  %507 = vmatprep.mubr.f32.mxu1 %v5514_v20  ;;  %5696 = vst [vmem:[#allocation44_spill] sm:$0xff] %v4203_v51  ;;  %v4205_v52 = vld [vmem:[#allocation5 + $0x158] sm:$0xff]  ;;  %v4209_v53 = vld [vmem:[#allocation5 + $0x80] sm:$0xff]  ;;  %v4211_v54 = vld [vmem:[#allocation5 + $0x150] sm:$0xff] }
  0x49   :  { %594 = vmatpush1.msra.mxu0 %v4083_v17  ;;  %508 = vmatmul.mubr.f32.vlgmr.msra.gmra.mxu1 %v5514_v20  ;;  %5697 = vst [vmem:[#allocation45_spill] sm:$0xff] %v4209_v53  ;;  %v4215_v55 = vld [vmem:[#allocation5 + $0x68] sm:$0xff]  ;;  %v4217_v56 = vld [vmem:[#allocation5 + $0x138] sm:$0xff]  ;;  %v4221_v57 = vld [vmem:[#allocation5 + $0x60] sm:$0xff] }
  0x4a   :  { %540 = vmatprep.subr.mxu1 %v4090_v18  ;;  %595 = vmatprep.subr.mxu0 %v4092_v19  ;;  %5698 = vst [vmem:[#allocation46_spill] sm:$0xff] %v4215_v55  ;;  %5699 = vst [vmem:[#allocation47_spill] sm:$0xff] %v4221_v57  ;;  %v4223_v58 = vld [vmem:[#allocation5 + $0x130] sm:$0xff]  ;;  %v4227_v59 = vld [vmem:[#allocation5 + $0x48] sm:$0xff] }
  0x4b   :  { %541 = vmatpush1.msra.mxu1 %v4099_v21  ;;  %596 = vmatpush1.msra.mxu0 %v4101_v22  ;;  %5700 = vst [vmem:[#allocation48_spill] sm:$0xff] %v4227_v59  ;;  %v4229_v60 = vld [vmem:[#allocation5 + $0x118] sm:$0xff]  ;;  %v4233_v61 = vld [vmem:[#allocation5 + $0x40] sm:$0xff]  ;;  %v4235_v62 = vld [vmem:[#allocation5 + $0x110] sm:$0xff] }
  0x4c   :  { %542 = vmatprep.subr.mxu1 %v4108_v23  ;;  %597 = vmatprep.subr.mxu0 %v4110_v24  ;;  %5701 = vst [vmem:[#allocation49_spill] sm:$0xff] %v4233_v61  ;;  %v4239_v63 = vld [vmem:[#allocation5 + $0x28] sm:$0xff]  ;;  %v4241_v0 = vld [vmem:[#allocation5 + $0xf8] sm:$0xff]  ;;  %v4245_v1 = vld [vmem:[#allocation5 + $0x20] sm:$0xff] }
  0x4d   :  { %543 = vmatpush1.msra.mxu1 %v4117_v25  ;;  %598 = vmatpush1.msra.mxu0 %v4119_v26  ;;  %5702 = vst [vmem:[#allocation50_spill] sm:$0xff] %v4239_v63  ;;  %5703 = vst [vmem:[#allocation51_spill] sm:$0xff] %v4245_v1  ;;  %v4247_v2 = vld [vmem:[#allocation5 + $0xf0] sm:$0xff]  ;;  %v4251_v3 = vld [vmem:[#allocation5 + $0x8] sm:$0xff] }
  0x4e   :  { %544 = vmatprep.subr.mxu1 %v4126_v27  ;;  %599 = vmatprep.subr.mxu0 %v4128_v28  ;;  %5704 = vst [vmem:[#allocation52_spill] sm:$0xff] %v4251_v3  ;;  %v4253_v4 = vld [vmem:[#allocation5 + $0xd8] sm:$0xff]  ;;  %v4257_v5 = vld [vmem:[#allocation5] sm:$0xff] }
  0x4f   :  { %545 = vmatpush1.msra.mxu1 %v4135_v29  ;;  %578 = vmatprep.mubr.f32.mxu1 %v5514_v20  ;;  %5705 = vst [vmem:[#allocation53_spill] sm:$0xff] %v4257_v5 }
  0x50   :  { %600 = vmatpush1.msra.mxu0 %v4139_v30  ;;  %579 = vmatmul.mubr.f32.vlgmr.msra.gmra.mxu1 %v5514_v20  ;;  %v4261_v20 = vld [vmem:[#allocation5 + $0xd0] sm:$0xff] }
  0x51   :  { %601 = vmatprep.subr.mxu0 %v4143_v31  ;;  %660 = vmatprep.subr.mxu1 %v4145_v32  ;;  %v247_v31 = vld [vmem:[%s5507_s7] sm:$0xf] }
  0x52   :  { %602 = vmatpush1.msra.mxu0 %v4149_v33  ;;  %661 = vmatpush1.msra.mxu1 %v4151_v34 }
  0x53   :  { %603 = vmatprep.subr.mxu0 %v4155_v35  ;;  %662 = vmatprep.subr.mxu1 %v4157_v36 }
  0x54   :  { %604 = vmatpush1.msra.mxu0 %v4161_v37  ;;  %663 = vmatpush1.msra.mxu1 %v4163_v38  ;;  %v4392_v37 = vld [vmem:[%s5508_s8 + $0x20] sm:$0xff] }
  0x55   :  { %605 = vmatprep.subr.mxu0 %v4167_v39  ;;  %664 = vmatprep.subr.mxu1 %v4169_v40  ;;  %v4320_v39 = vld [vmem:[%s5508_s8 + $0x70] sm:$0xff]  ;;  %5718 = vst [vmem:[#allocation65_spill] sm:$0xff] %v4392_v37 }
  0x56   :  { %606 = vmatpush1.msra.mxu0 %v4173_v41  ;;  %665 = vmatpush1.msra.mxu1 %v4175_v42  ;;  %v4313_v41 = vld [vmem:[%s5508_s8 + $0x78] sm:$0xff]  ;;  %5708 = vst [vmem:[#allocation55_spill] sm:$0xff] %v4320_v39 }
  0x57   :  { %607 = vmatprep.subr.mxu0 %v4179_v43  ;;  %666 = vmatprep.subr.mxu1 %v4181_v44  ;;  %v4304_v43 = vld [vmem:[#allocation5 + $0x10] sm:$0xff]  ;;  %5707 = vst [vmem:[#allocation54_spill] sm:$0xff] %v4313_v41 }
  0x58   :  { %608 = vmatpush1.msra.mxu0 %v4185_v45  ;;  %667 = vmatpush1.msra.mxu1 %v4187_v46  ;;  %v4301_v45 = vld [vmem:[#allocation5 + $0x18] sm:$0xff] }
  0x59   :  { %609 = vmatprep.subr.mxu0 %v4191_v47  ;;  %668 = vmatprep.subr.mxu1 %v4193_v48  ;;  %v4298_v47 = vld [vmem:[#allocation5 + $0x30] sm:$0xff] }
  0x5a   :  { %610 = vmatpush1.msra.mxu0 %v4197_v49  ;;  %669 = vmatpush1.msra.mxu1 %v4199_v50  ;;  %v4295_v49 = vld [vmem:[#allocation5 + $0x38] sm:$0xff] }
  0x5b   :  { %611 = vmatprep.subr.mxu0 %v4203_v51  ;;  %670 = vmatprep.subr.mxu1 %v4205_v52  ;;  %v4292_v51 = vld [vmem:[#allocation5 + $0x50] sm:$0xff] }
  0x5c   :  { %612 = vmatpush1.msra.mxu0 %v4209_v53  ;;  %671 = vmatpush1.msra.mxu1 %v4211_v54  ;;  %v4289_v53 = vld [vmem:[#allocation5 + $0x58] sm:$0xff] }
  0x5d   :  { %613 = vmatprep.subr.mxu0 %v4215_v55  ;;  %672 = vmatprep.subr.mxu1 %v4217_v56  ;;  %v4278_v55 = vld [vmem:[#allocation5 + $0x90] sm:$0xff] }
  0x5e   :  { %614 = vmatpush1.msra.mxu0 %v4221_v57  ;;  %673 = vmatpush1.msra.mxu1 %v4223_v58  ;;  %v4272_v57 = vld [vmem:[#allocation5 + $0xb0] sm:$0xff] }
  0x5f   :  { %615 = vmatprep.subr.mxu0 %v4227_v59  ;;  %674 = vmatprep.subr.mxu1 %v4229_v60  ;;  %v4268_v59 = vld [vmem:[#allocation5 + $0xb8] sm:$0xff] }
  0x60   :  { %616 = vmatpush1.msra.mxu0 %v4233_v61  ;;  %675 = vmatpush1.msra.mxu1 %v4235_v62  ;;  %v437_v61 = vld [vmem:[%s5502_s2] sm:$0x3] }
  0x61   :  { %617 = vmatprep.subr.mxu0 %v4239_v63  ;;  %676 = vmatprep.subr.mxu1 %v4241_v0  ;;  %v5706_v63 = vmov 0.0  }
  0x62   :  { %618 = vmatpush1.msra.mxu0 %v4245_v1  ;;  %677 = vmatpush1.msra.mxu1 %v4247_v2  ;;  %v4275_v1 = vld [vmem:[#allocation5 + $0x98] sm:$0xff] }
  0x63   :  { %619 = vmatprep.subr.mxu0 %v4251_v3  ;;  %678 = vmatprep.subr.mxu1 %v4253_v4  ;;  %v4282_v3 = vld [vmem:[#allocation5 + $0x78] sm:$0xff] }
  0x64   :  { %620 = vmatpush1.msra.mxu0 %v4257_v5  ;;  %653 = vmatprep.mubr.f32.mxu0 %v5706_v63  ;;  %v4286_v5 = vld [vmem:[#allocation5 + $0x70] sm:$0xff] }
  0x65   :  { %679 = vmatpush1.msra.mxu1 %v4261_v20  ;;  %654 = vmatmul.mubr.f32.vlgmr.msra.gmra.mxu0 %v437_v61 }
  0x66   :  { %680 = vmatprep.subr.mxu1 %v4268_v59  ;;  %724 = vmatprep.mubr.f32.mxu1 %v5706_v63 }
  0x67   :  { %681 = vmatpush1.msra.mxu1 %v4272_v57  ;;  %3375 = vmatprep.subr.mxu0 %v5706_v63 }
  0x68   :  { %682 = vmatprep.subr.mxu1 %v4275_v1  ;;  %3376 = vmatpush3.msra.mxu0 %v4313_v41  ;;  %v4334_v41 = vld [vmem:[%s5508_s8 + $0x60] sm:$0xff] }
  0x69   :  { %683 = vmatpush1.msra.mxu1 %v4278_v55  ;;  %3377 = vmatprep.subr.mxu0 %v5706_v63  ;;  %5710 = vst [vmem:[#allocation57_spill] sm:$0xff] %v4334_v41 }
  0x6a   :  { %684 = vmatprep.subr.mxu1 %v4282_v3  ;;  %3378 = vmatpush3.msra.mxu0 %v4320_v39  ;;  %v4341_v39 = vld [vmem:[%s5508_s8 + $0x58] sm:$0xff] }
  0x6b   :  { %685 = vmatpush1.msra.mxu1 %v4286_v5  ;;  %3379 = vmatprep.subr.mxu0 %v5706_v63  ;;  %5711 = vst [vmem:[#allocation58_spill] sm:$0xff] %v4341_v39 }
  0x6c   :  { %686 = vmatprep.subr.mxu1 %v4289_v53  ;;  %3407 = vmatprep.mubr.msk.f32.mxu0 %vm3940_vm2, %v5706_v63 }
  0x6d   :  { %687 = vmatpush1.msra.mxu1 %v4292_v51 }
  0x6e   :  { %688 = vmatprep.subr.mxu1 %v4295_v49 }
  0x6f   :  { %689 = vmatpush1.msra.mxu1 %v4298_v47 }
  0x70   :  { %690 = vmatprep.subr.mxu1 %v4301_v45 }
  0x71   :  { %691 = vmatpush1.msra.mxu1 %v4304_v43 }
  0x72   :  { %725 = vmatmul.mubr.f32.vlgmr.msra.gmra.mxu1 %v437_v61  ;;  %3410 = vmatprep.subr.mxu1 %v5706_v63  ;;  %v4327_v61 = vld [vmem:[%s5508_s8 + $0x68] sm:$0xff] }
  0x73   :  { %5709 = vst [vmem:[#allocation56_spill] sm:$0xff] %v4327_v61  ;;  %3380 = vmatpush3.msra.mxu0 %v4327_v61  ;;  %v4348_v61 = vld [vmem:[%s5508_s8 + $0x50] sm:$0xff]  ;;  %3416 = vmatprep.mubr.msk.f32.mxu1 %vm3940_vm2, %v5706_v63 }
  0x74   :  { %3381 = vmatprep.subr.mxu0 %v5706_v63  ;;  %5712 = vst [vmem:[#allocation59_spill] sm:$0xff] %v4348_v61 }
  0x75   :  { %3382 = vmatpush3.msra.mxu0 %v4334_v41  ;;  %v4355_v41 = vld [vmem:[%s5508_s8 + $0x48] sm:$0xff] }
  0x76   :  { %3383 = vmatprep.subr.mxu0 %v5706_v63  ;;  %5713 = vst [vmem:[#allocation60_spill] sm:$0xff] %v4355_v41 }
  0x77   :  { %3384 = vmatpush3.msra.mxu0 %v4341_v39  ;;  %v4362_v39 = vld [vmem:[%s5508_s8 + $0x40] sm:$0xff] }
  0x78   :  { %3385 = vmatprep.subr.mxu0 %v5706_v63  ;;  %5714 = vst [vmem:[#allocation61_spill] sm:$0xff] %v4362_v39 }
  0x79   :  { %3386 = vmatpush3.msra.mxu0 %v4348_v61  ;;  %v4368_v61 = vld [vmem:[%s5508_s8 + $0x38] sm:$0xff] }
  0x7a   :  { %3387 = vmatprep.subr.mxu0 %v5706_v63  ;;  %5715 = vst [vmem:[#allocation62_spill] sm:$0xff] %v4368_v61 }
  0x7b   :  { %3388 = vmatpush3.msra.mxu0 %v4355_v41  ;;  %v4374_v41 = vld [vmem:[%s5508_s8 + $0x30] sm:$0xff] }
  0x7c   :  { %3389 = vmatprep.subr.mxu0 %v5706_v63  ;;  %5716 = vst [vmem:[#allocation63_spill] sm:$0xff] %v4374_v41 }
  0x7d   :  { %3390 = vmatpush3.msra.mxu0 %v4362_v39  ;;  %v4385_v39 = vld [vmem:[%s5508_s8 + $0x28] sm:$0xff] }
  0x7e   :  { %3391 = vmatprep.subr.mxu0 %v5706_v63  ;;  %5717 = vst [vmem:[#allocation64_spill] sm:$0xff] %v4385_v39 }
  0x7f   :  { %3392 = vmatpush3.msra.mxu0 %v4368_v61  ;;  %v4399_v61 = vld [vmem:[%s5508_s8 + $0x18] sm:$0xff] }
  0x80   :  { %3393 = vmatprep.subr.mxu0 %v5706_v63  ;;  %5719 = vst [vmem:[#allocation66_spill] sm:$0xff] %v4399_v61 }
  0x81   :  { %3394 = vmatpush3.msra.mxu0 %v4374_v41  ;;  %v4406_v41 = vld [vmem:[%s5508_s8 + $0x10] sm:$0xff] }
  0x82   :  { %3395 = vmatprep.subr.mxu0 %v5706_v63  ;;  %5720 = vst [vmem:[#allocation67_spill] sm:$0xff] %v4406_v41 }
  0x83   :  { %3396 = vmatpush3.msra.mxu0 %v4385_v39  ;;  %v4413_v39 = vld [vmem:[%s5508_s8 + $0x8] sm:$0xff] }
  0x84   :  { %3397 = vmatprep.subr.mxu0 %v5706_v63  ;;  %5721 = vst [vmem:[#allocation68_spill] sm:$0xff] %v4413_v39 }
  0x85   :  { %3398 = vmatpush3.msra.mxu0 %v4392_v37  ;;  %v4420_v37 = vld [vmem:[%s5508_s8] sm:$0xff] }
  0x86   :  { %3399 = vmatprep.subr.mxu0 %v5706_v63  ;;  %5722 = vst [vmem:[#allocation69_spill] sm:$0xff] %v4420_v37 }
  0x87   :  { %3400 = vmatpush3.msra.mxu0 %v4399_v61  ;;  %v5575_v61 = vlaneseq }
  0x88   :  { %3401 = vmatprep.subr.mxu0 %v5706_v63 }
  0x89   :  { %3402 = vmatpush3.msra.mxu0 %v4406_v41  ;;  %v4427_v35 = vshrl.u32 %v5575_v61, 7 }
  0x8a   :  { %3403 = vmatprep.subr.mxu0 %v5706_v63 }
  0x8b   :  { %3404 = vmatpush3.msra.mxu0 %v4413_v39  ;;  %v251_v33 = vsub.s32 0, %v4427_v35  ;;  %v255_v39 = vsub.s32 1, %v4427_v35  ;;  %v263_v27 = vsub.s32 3, %v4427_v35 }
  0x8c   :  { %3405 = vmatprep.subr.mxu0 %v5706_v63 }
  0x8d   :  { %3406 = vmatpush3.msra.mxu0 %v4420_v37  ;;  %v252_v26 = vrot.slane %v247_v31, %v251_v33  ;;  %v256_v37 = vrot.slane %v247_v31, %v255_v39  ;;  %v259_v39 = vsub.s32 2, %v4427_v35 }
  0x8e   :  { %1186 = vmatprep.subr.mxu0 %v4145_v32 }
 0x101   :  { %v361_v28 = vpop.f32.mrf.mxu0 }
 0x102   :  { %v4434_v32 = vadd.f32 %v361_v28, %v252_v26  ;;  %v264_v28 = vrot.slane %v247_v31, %v263_v27 }
 0x103   :  { %v432_v41 = vpop.f32.mrf.mxu1  ;;  %v363_v22 = vpop.f32.mrf.mxu0 }
 0x104   :  { %5723 = vst [vmem:[#allocation70_spill] sm:$0xff] %v4434_v32  ;;  %v4436_v61 = vadd.f32 %v363_v22, %v256_v37  ;;  %v260_v22 = vrot.slane %v247_v31, %v259_v39 }
 0x105   :  { %v434_v30 = vpop.f32.mrf.mxu1 }
 0x106   :  { %5724 = vst [vmem:[#allocation71_spill] sm:$0xff] %v4436_v61  ;;  %v4442_v25 = vadd.f32 %v434_v30, %v264_v28 }
 0x109   :  { %v509_v24 = vpop.f32.mrf.mxu1 }
 0x10a   :  { %v585_v17 = vadd.f32 %v509_v24, %v4434_v32  ;;  %v4444_v32 = vadd.f32 %v432_v41, %v260_v22  ;;  %v438_v41 = vld [vmem:[%s5503_s3] sm:$0x3] }
 0x10b   :  { %v511_v19 = vpop.f32.mrf.mxu1 }
 0x10c   :  { %v586_v13 = vadd.f32 %v511_v19, %v4436_v61 }
 0x110   :  { %v580_v26 = vpop.f32.mrf.mxu1 }
 0x112   :  { %v582_v37 = vpop.f32.mrf.mxu1 }
 0x125   :  { %v655_v15 = vpop.f32.mrf.mxu0 }
 0x126   :  { %v731_v11 = vadd.f32 %v655_v15, %v585_v17  ;;  %v588_v15 = vadd.f32 %v582_v37, %v4442_v25 }
 0x127   :  { %v657_v9 = vpop.f32.mrf.mxu0 }
 0x128   :  { %v3209_v7 = vmul.f32 -1.442695, %v731_v11  ;;  %v732_v29 = vadd.f32 %v657_v9, %v586_v13  ;;  %v587_v9 = vadd.f32 %v580_v26, %v4444_v32 }
 0x12a   :  { %3612 = vpow2.f32 %v3209_v7  ;;  %v3210_v33 = vmul.f32 -1.442695, %v732_v29 }
 0x12c   :  { %3614 = vpow2.f32 %v3210_v33 }
 0x132   :  { %v726_v24 = vpop.f32.mrf.mxu1 }
 0x133   :  { %v733_v17 = vadd.f32 %v726_v24, %v587_v9 }
 0x134   :  { %v728_v11 = vpop.f32.mrf.mxu1 }
 0x135   :  { %v734_v13 = vadd.f32 %v728_v11, %v588_v15  ;;  %v4487_v11 = vld [vmem:[%s5509_s9] ss:$0 sm:$0xff] }
 0x137   :  { %v3613_v7 = vpop.eup %3612  ;;  %v3211_v19 = vmul.f32 -1.442695, %v734_v13 }
 0x138   :  { %v738_v29 = vadd.f32 1.0, %v3613_v7 }
 0x139   :  { %v3615_v61 = vpop.eup %3614  ;;  %3616 = vpow2.f32 %v3211_v19 }
 0x13a   :  { %3618 = vrcp.f32 %v738_v29  ;;  %v744_v27 = vadd.f32 1.0, %v3615_v61 }
 0x13b   :  { %3620 = vtanh.f32 %v733_v17 }
 0x13c   :  { %3622 = vrcp.f32 %v744_v27 }
 0x146   :  { %v3617_v30 = vpop.eup %3616 }
 0x147   :  { %v3619_v31 = vpop.eup %3618  ;;  %v751_v26 = vadd.f32 1.0, %v3617_v30 }
 0x148   :  { %v3621_v33 = vpop.eup %3620 }
 0x149   :  { %v3623_v39 = vpop.eup %3622  ;;  %v755_v22 = vmul.f32 %v3621_v33, %v3619_v31  ;;  %3624 = vrcp.f32 %v751_v26 }
 0x14a   :  { %v754_v28 = vmul.f32 %v3623_v39, %v438_v41  ;;  %v5725_v39 = vlaneseq }
 0x14c   :  { %v756_v37 = vadd.f32 %v755_v22, %v754_v28  ;;  %v4495_v26 = vand.u32 127, %v5725_v39  ;;  %v74_v28 = vadd.s32 16, %v4427_v35  ;;  %v73_v22 = vadd.s32 8, %v4427_v35 }
 0x14e   :  { %3626 = vtanh.f32 %v756_v37  ;;  %760 = vst [vmem:[#allocation11] sm:$0x3] %v756_v37  ;;  %vm4500_vm5 = vcmp.le.s32.totalorder %v74_v28, %v4495_v26  ;;  %vm4505_vm6 = vcmp.le.s32.totalorder %v73_v22, %v4495_v26  ;;  %vm4515_vm7 = vcmp.le.s32.totalorder %v4427_v35, %v4495_v26 }
 0x14f   :  { %v5589_v35 = vmov 0  }
 0x150   :  { %3610 = vset.pattern.permute.xlu1 %v5589_v35  ;;  %3611 = vset.pattern.permute.xlu0 %v5589_v35 }
 0x156   :  { %v3625_v24 = vpop.eup %3624 }
 0x15b   :  { %v3627_v15 = vpop.eup %3626 }
 0x15c   :  { %v758_v61 = vmul.f32 %v3627_v15, %v3625_v24  ;;  %v5591_v15 = vmov 1.0  }
 0x15d   :  { %3411 = vmatpush3.msk.msra.mxu1 %vm4500_vm5, %v5591_v15 }
 0x15e   :  { %759 = vst [vmem:[#allocation10] sm:$0x3] %v758_v61  ;;  %3408 = vmatmul.mubr.f32.vlgmr.msra.gmra.mxu0 %v758_v61  ;;  %3412 = vmatprep.subr.mxu1 %v5706_v63 }
 0x15f   :  { %1187 = vmatpush1.msra.mxu0 %v4151_v34  ;;  %1250 = vmatprep.mubr.f32.mxu0 %v5706_v63 }
 0x160   :  { %1188 = vmatprep.subr.mxu0 %v4157_v36  ;;  %3413 = vmatpush3.msk.msra.mxu1 %vm4505_vm6, %v5591_v15 }
 0x161   :  { %1189 = vmatpush1.msra.mxu0 %v4163_v38  ;;  %3414 = vmatprep.subr.mxu1 %v5706_v63 }
 0x162   :  { %1190 = vmatprep.subr.mxu0 %v4169_v40  ;;  %3415 = vmatpush3.msk.msra.mxu1 %vm4515_vm7, %v5591_v15 }
 0x163   :  { %1191 = vmatpush1.msra.mxu0 %v4175_v42  ;;  %995 = vmatprep.subr.mxu1 %v4036_v6 }
 0x164   :  { %1192 = vmatprep.subr.mxu0 %v4181_v44 }
 0x165   :  { %1193 = vmatpush1.msra.mxu0 %v4187_v46 }
 0x166   :  { %1194 = vmatprep.subr.mxu0 %v4193_v48 }
 0x167   :  { %1195 = vmatpush1.msra.mxu0 %v4199_v50 }
 0x168   :  { %1196 = vmatprep.subr.mxu0 %v4205_v52 }
 0x169   :  { %1197 = vmatpush1.msra.mxu0 %v4211_v54 }
 0x16a   :  { %1198 = vmatprep.subr.mxu0 %v4217_v56 }
 0x16b   :  { %1199 = vmatpush1.msra.mxu0 %v4223_v58 }
 0x16c   :  { %1200 = vmatprep.subr.mxu0 %v4229_v60 }
 0x16d   :  { %1201 = vmatpush1.msra.mxu0 %v4235_v62 }
 0x16e   :  { %1202 = vmatprep.subr.mxu0 %v4241_v0 }
 0x16f   :  { %1203 = vmatpush1.msra.mxu0 %v4247_v2 }
 0x170   :  { %1204 = vmatprep.subr.mxu0 %v4253_v4 }
 0x171   :  { %1205 = vmatpush1.msra.mxu0 %v4261_v20 }
 0x172   :  { %1206 = vmatprep.subr.mxu0 %v4268_v59 }
 0x173   :  { %1207 = vmatpush1.msra.mxu0 %v4272_v57 }
 0x174   :  { %1208 = vmatprep.subr.mxu0 %v4275_v1 }
 0x175   :  { %1209 = vmatpush1.msra.mxu0 %v4278_v55 }
 0x176   :  { %1210 = vmatprep.subr.mxu0 %v4282_v3 }
 0x177   :  { %1211 = vmatpush1.msra.mxu0 %v4286_v5 }
 0x178   :  { %1212 = vmatprep.subr.mxu0 %v4289_v53 }
 0x179   :  { %1213 = vmatpush1.msra.mxu0 %v4292_v51 }
 0x17a   :  { %1214 = vmatprep.subr.mxu0 %v4295_v49 }
 0x17b   :  { %1215 = vmatpush1.msra.mxu0 %v4298_v47 }
 0x17c   :  { %1216 = vmatprep.subr.mxu0 %v4301_v45 }
 0x17d   :  { %1217 = vmatpush1.msra.mxu0 %v4304_v43 }
 0x17e   :  { %1539 = vmatprep.subr.mxu0 %v4036_v6 }
 0x21e   :  { %v833_v9 = vpop.f32.mrf.mxu0 }
 0x21f   :  { %v834_v13 = vadd.f32 %v4487_v11, %v833_v9  ;;  %v935_v9 = vld [vmem:[%s5501_s1] sm:$0x3] }
 0x220   :  { %v3409_v7 = vpop.f32.mrf.mxu0 }
 0x221   :  { %v838_v17 = vsel %vm837_vm3, %v834_v13, -inf }
 0x222   :  { %839 = vmax.xlane.f32.xlu0 %v838_v17 }
 0x2ab   :  { %v840_v19 = vpop.xlane.xlu0 %839 }
 0x2ac   :  { %v841_v29 = vsub.f32 %v834_v13, %v840_v19 }
 0x2ae   :  { %v842_v27 = vmul.f32 1.442695, %v841_v29 }
 0x2b0   :  { %3628 = vpow2.f32 %v842_v27 }
 0x2bd   :  { %v3629_v30 = vpop.eup %3628 }
 0x2be   :  { %849 = vrot.lane.b32.xlu0 %v3629_v30, %s3941_s25  ;;  %v845_v31 = vsel %vm844_vm4, %v3629_v30, 0.0 }
 0x2bf   :  { %846 = vadd.xlane.f32.xlu1 %v845_v31 }
 0x330   :  { %v850_v41 = vpop.permute.xlu0 %849 }
 0x331   :  { %v852_v33 = vsel %vm844_vm4, %v850_v41, 0.0 }
 0x332   :  { %853 = vadd.xlane.f32.xlu1 %v852_v33 }
 0x343   :  { %938 = vperm.xlu1 %3610, %v935_v9   ;;  %v3218_v9 = vld [vmem:[%s5502_s2 + $0x2] sm:$0x3] }
 0x344   :  { %1251 = vmatmul.mubr.f32.vlgmr.msra.gmra.mxu0 %v3218_v9 }
 0x345   :  { %1540 = vmatpush1.msra.mxu0 %v4045_v8  ;;  %1577 = vmatprep.mubr.f32.mxu0 %v5706_v63 }
 0x346   :  { %1541 = vmatprep.subr.mxu0 %v4053_v10 }
 0x347   :  { %1542 = vmatpush1.msra.mxu0 %v4061_v12 }
 0x348   :  { %v847_v13 = vpop.xlane.xlu1 %846  ;;  %1543 = vmatprep.subr.mxu0 %v4070_v14 }
 0x349   :  { %1544 = vmatpush1.msra.mxu0 %v4079_v16 }
 0x34a   :  { %1610 = vmatprep.subr.mxu0 %v4090_v18 }
 0x3bb   :  { %v854_v7 = vpop.xlane.xlu1 %853 }
 0x3bc   :  { %v855_v17 = vadd.f32 %v854_v7, %v847_v13 }
 0x3be   :  { %3630 = vrcp.f32 %v855_v17 }
 0x3bf   :  { %v939_v6 = vpop.permute.xlu1 %938 }
 0x3cb   :  { %v3631_v19 = vpop.eup %3630 }
 0x3cc   :  { %v4532_v29 = vmul.f32 %v3631_v19, %v3629_v30 }
 0x3ce   :  { %5732 = vst [vmem:[#allocation72_spill] sm:$0xff] %v4532_v29  ;;  %3417 = vmatmul.mubr.msk.f32.vlgmr.msra.gmra.mxu1 %vm439_vm8, %v4532_v29  ;;  %v5785_v29 = vld [vmem:[#allocation71_spill] sm:$0xff] }
 0x3cf   :  { %996 = vmatpush1.msra.mxu1 %v4045_v8  ;;  %1033 = vmatprep.mubr.f32.mxu1 %v5706_v63 }
 0x3d0   :  { %997 = vmatprep.subr.mxu1 %v4053_v10 }
 0x3d1   :  { %998 = vmatpush1.msra.mxu1 %v4061_v12  ;;  %v5733_v12 = vld [vmem:[#allocation27_spill] sm:$0xff] }
 0x3d2   :  { %999 = vmatprep.subr.mxu1 %v4070_v14  ;;  %v5734_v14 = vld [vmem:[#allocation29_spill] sm:$0xff] }
 0x3d3   :  { %1000 = vmatpush1.msra.mxu1 %v4079_v16  ;;  %v5735_v16 = vld [vmem:[#allocation31_spill] sm:$0xff] }
 0x3d4   :  { %1066 = vmatprep.subr.mxu1 %v4090_v18  ;;  %v5736_v18 = vld [vmem:[#allocation18_spill] sm:$0xff] }
 0x48e   :  { %v931_v27 = vpop.f32.mrf.mxu1 }
 0x48f   :  { %vm941_vm9 = vcmp.lt.f32.partialorder %v931_v27, %v939_v6 }
 0x490   :  { %v942_v30 = vsel %vm941_vm9, 1, %v5589_v35  ;;  %v3418_v31 = vpop.f32.mrf.mxu1 }
 0x491   :  { %v943_v41 = vsel %vm837_vm3, %v942_v30, 0  ;;  %v5737_v30 = vld [vmem:[#allocation19_spill] sm:$0xff]  ;;  %v5739_v31 = vld [vmem:[#allocation21_spill] sm:$0xff] }
 0x492   :  { %v945_v33 = vshrl.u32 %v943_v41, 16  ;;  %v944_v39 = vand.u32 65535, %v943_v41  ;;  %v5741_v41 = vld [vmem:[#allocation23_spill] sm:$0xff] }
 0x494   :  { %v947_v28 = vcvt.s32.f32 %v945_v33  ;;  %v946_v22 = vcvt.s32.f32 %v944_v39  ;;  %v5742_v33 = vld [vmem:[#allocation24_spill] sm:$0xff]  ;;  %v5743_v39 = vld [vmem:[#allocation25_spill] sm:$0xff] }
 0x496   :  { %950 = vadd.xlane.f32.xlu1 %v947_v28  ;;  %948 = vadd.xlane.f32.xlu0 %v946_v22  ;;  %v5744_v28 = vld [vmem:[#allocation26_spill] sm:$0xff]  ;;  %v5745_v22 = vld [vmem:[#allocation28_spill] sm:$0xff] }
 0x51f   :  { %v951_v13 = vpop.xlane.xlu1 %950  ;;  %v949_v7 = vpop.xlane.xlu0 %948 }
 0x520   :  { %v953_v17 = vcvt.f32.s32 %v951_v13  ;;  %v952_v6 = vcvt.f32.s32 %v949_v7  ;;  %v5746_v13 = vld [vmem:[#allocation30_spill] sm:$0xff]  ;;  %v5747_v7 = vld [vmem:[#allocation32_spill] sm:$0xff] }
 0x522   :  { %v954_v19 = vshll.u32 %v953_v17, 16  ;;  %v5748_v17 = vld [vmem:[#allocation33_spill] sm:$0xff] }
 0x524   :  { %v955_v27 = vadd.s32 %v954_v19, %v952_v6  ;;  %v5749_v19 = vld [vmem:[#allocation35_spill] sm:$0xff]  ;;  %v5750_v6 = vld [vmem:[#allocation36_spill] sm:$0xff] }
 0x526   :  { %vm956_vm10 = vcmp.lt.s32.totalorder %v955_v27, 23 }
 0x527   :  { %v957_v8 = vsel %vm956_vm10, %v955_v27, 23  ;;  %v5751_v27 = vld [vmem:[#allocation37_spill] sm:$0xff] }
 0x528   :  { %vm958_vm11 = vcmp.eq.s32.totalorder %v4495_v26, %v957_v8  ;;  %v5752_v8 = vld [vmem:[#allocation38_spill] sm:$0xff] }
 0x529   :  { %v4557_v10 = vsel %vm958_vm11, 1.0, %v5706_v63 }
 0x52a   :  { %3220 = vmatmul.mubr.msk.f32.vlgmr.msra.gmra.mxu1 %vm439_vm8, %v4557_v10 }
 0x52b   :  { %1067 = vmatpush1.msra.mxu1 %v4099_v21  ;;  %1104 = vmatprep.mubr.f32.mxu1 %v5706_v63  ;;  %v5738_v21 = vld [vmem:[#allocation20_spill] sm:$0xff] }
 0x52c   :  { %1068 = vmatprep.subr.mxu1 %v4108_v23  ;;  %v5740_v23 = vld [vmem:[#allocation22_spill] sm:$0xff] }
 0x52d   :  { %1069 = vmatpush1.msra.mxu1 %v5733_v12  ;;  %v5753_v12 = vld [vmem:[#allocation39_spill] sm:$0xff] }
 0x52e   :  { %1070 = vmatprep.subr.mxu1 %v5734_v14  ;;  %v5754_v14 = vld [vmem:[#allocation40_spill] sm:$0xff] }
 0x52f   :  { %1071 = vmatpush1.msra.mxu1 %v5735_v16  ;;  %v5755_v16 = vld [vmem:[#allocation41_spill] sm:$0xff] }
 0x530   :  { %3221 = vmatmul.mubr.msk.f32.vlgmr.msra.gmra.mxu1 %vm439_vm8, %v4557_v10  ;;  %1115 = vmatprep.subr.mxu1 %v5736_v18  ;;  %v5756_v18 = vld [vmem:[#allocation42_spill] sm:$0xff] }
 0x531   :  { %1116 = vmatpush1.msra.mxu1 %v5737_v30  ;;  %1179 = vmatprep.mubr.f32.mxu1 %v5706_v63  ;;  %v5757_v30 = vld [vmem:[#allocation43_spill] sm:$0xff] }
 0x532   :  { %1117 = vmatprep.subr.mxu1 %v5738_v21  ;;  %v5758_v21 = vld [vmem:[#allocation44_spill] sm:$0xff] }
 0x533   :  { %1118 = vmatpush1.msra.mxu1 %v5739_v31  ;;  %v5759_v31 = vld [vmem:[#allocation45_spill] sm:$0xff] }
 0x534   :  { %1119 = vmatprep.subr.mxu1 %v5740_v23  ;;  %v5760_v23 = vld [vmem:[#allocation46_spill] sm:$0xff] }
 0x535   :  { %1120 = vmatpush1.msra.mxu1 %v5741_v41  ;;  %v5761_v41 = vld [vmem:[#allocation47_spill] sm:$0xff] }
 0x536   :  { %1121 = vmatprep.subr.mxu1 %v5742_v33  ;;  %v5762_v33 = vld [vmem:[#allocation48_spill] sm:$0xff] }
 0x537   :  { %1122 = vmatpush1.msra.mxu1 %v5743_v39  ;;  %v5763_v39 = vld [vmem:[#allocation49_spill] sm:$0xff] }
 0x538   :  { %1123 = vmatprep.subr.mxu1 %v5744_v28  ;;  %v5764_v28 = vld [vmem:[#allocation50_spill] sm:$0xff] }
 0x539   :  { %1124 = vmatpush1.msra.mxu1 %v5745_v22  ;;  %v5765_v22 = vld [vmem:[#allocation51_spill] sm:$0xff] }
 0x53a   :  { %1125 = vmatprep.subr.mxu1 %v5746_v13  ;;  %v5766_v13 = vld [vmem:[#allocation52_spill] sm:$0xff] }
 0x53b   :  { %1126 = vmatpush1.msra.mxu1 %v5747_v7  ;;  %v5767_v7 = vld [vmem:[#allocation53_spill] sm:$0xff] }
 0x53c   :  { %1127 = vmatprep.subr.mxu1 %v5748_v17  ;;  %v5768_v17 = vld [vmem:[#allocation54_spill] sm:$0xff] }
 0x53d   :  { %1128 = vmatpush1.msra.mxu1 %v5749_v19  ;;  %v5769_v19 = vld [vmem:[#allocation55_spill] sm:$0xff] }
 0x53e   :  { %1129 = vmatprep.subr.mxu1 %v5750_v6  ;;  %v5770_v6 = vld [vmem:[#allocation56_spill] sm:$0xff] }
 0x53f   :  { %1130 = vmatpush1.msra.mxu1 %v5751_v27  ;;  %v5771_v27 = vld [vmem:[#allocation57_spill] sm:$0xff] }
 0x540   :  { %1131 = vmatprep.subr.mxu1 %v5752_v8  ;;  %v5773_v8 = vld [vmem:[#allocation59_spill] sm:$0xff] }
 0x541   :  { %1132 = vmatpush1.msra.mxu1 %v5753_v12  ;;  %v5774_v12 = vld [vmem:[#allocation60_spill] sm:$0xff] }
 0x542   :  { %1133 = vmatprep.subr.mxu1 %v5754_v14  ;;  %v5775_v14 = vld [vmem:[#allocation61_spill] sm:$0xff] }
 0x543   :  { %1134 = vmatpush1.msra.mxu1 %v5755_v16  ;;  %v5776_v16 = vld [vmem:[#allocation62_spill] sm:$0xff] }
 0x544   :  { %1135 = vmatprep.subr.mxu1 %v5756_v18  ;;  %v5777_v18 = vld [vmem:[#allocation63_spill] sm:$0xff] }
 0x545   :  { %1136 = vmatpush1.msra.mxu1 %v5757_v30  ;;  %v5778_v30 = vld [vmem:[#allocation64_spill] sm:$0xff] }
 0x546   :  { %1137 = vmatprep.subr.mxu1 %v5758_v21  ;;  %v5779_v21 = vld [vmem:[#allocation65_spill] sm:$0xff] }
 0x547   :  { %1138 = vmatpush1.msra.mxu1 %v5759_v31  ;;  %v5780_v31 = vld [vmem:[#allocation66_spill] sm:$0xff] }
 0x548   :  { %1139 = vmatprep.subr.mxu1 %v5760_v23  ;;  %v5781_v23 = vld [vmem:[#allocation67_spill] sm:$0xff] }
 0x549   :  { %1140 = vmatpush1.msra.mxu1 %v5761_v41  ;;  %v5782_v41 = vld [vmem:[#allocation68_spill] sm:$0xff] }
 0x54a   :  { %1141 = vmatprep.subr.mxu1 %v5762_v33  ;;  %v5783_v33 = vld [vmem:[#allocation69_spill] sm:$0xff] }
 0x54b   :  { %1142 = vmatpush1.msra.mxu1 %v5763_v39 }
 0x54c   :  { %1143 = vmatprep.subr.mxu1 %v5764_v28 }
 0x54d   :  { %1144 = vmatpush1.msra.mxu1 %v5765_v22 }
 0x54e   :  { %1145 = vmatprep.subr.mxu1 %v5766_v13 }
 0x54f   :  { %1146 = vmatpush1.msra.mxu1 %v5767_v7  ;;  %v5784_v7 = vld [vmem:[#allocation70_spill] sm:$0xff] }
 0x550   :  { %1180 = vmatmul.mubr.f32.vlgmr.msra.gmra.mxu1 %v3218_v9  ;;  %3419 = vmatprep.subr.mxu1 %v5706_v63  ;;  %v5772_v9 = vld [vmem:[#allocation58_spill] sm:$0xff] }
 0x551   :  { %3420 = vmatpush3.msra.mxu1 %v5768_v17  ;;  %3451 = vmatprep.mubr.msk.f32.mxu1 %vm3940_vm2, %v5706_v63 }
 0x552   :  { %3421 = vmatprep.subr.mxu1 %v5706_v63 }
 0x553   :  { %3422 = vmatpush3.msra.mxu1 %v5769_v19 }
 0x554   :  { %3423 = vmatprep.subr.mxu1 %v5706_v63 }
 0x555   :  { %3424 = vmatpush3.msra.mxu1 %v5770_v6 }
 0x556   :  { %3425 = vmatprep.subr.mxu1 %v5706_v63 }
 0x557   :  { %3426 = vmatpush3.msra.mxu1 %v5771_v27 }
 0x558   :  { %3427 = vmatprep.subr.mxu1 %v5706_v63 }
 0x559   :  { %3428 = vmatpush3.msra.mxu1 %v5772_v9 }
 0x55a   :  { %3429 = vmatprep.subr.mxu1 %v5706_v63 }
 0x55b   :  { %3430 = vmatpush3.msra.mxu1 %v5773_v8 }
 0x55c   :  { %3431 = vmatprep.subr.mxu1 %v5706_v63 }
 0x55d   :  { %3432 = vmatpush3.msra.mxu1 %v5774_v12 }
 0x55e   :  { %3433 = vmatprep.subr.mxu1 %v5706_v63 }
 0x55f   :  { %3434 = vmatpush3.msra.mxu1 %v5775_v14 }
 0x560   :  { %3435 = vmatprep.subr.mxu1 %v5706_v63 }
 0x561   :  { %3436 = vmatpush3.msra.mxu1 %v5776_v16 }
 0x562   :  { %3437 = vmatprep.subr.mxu1 %v5706_v63 }
 0x563   :  { %3438 = vmatpush3.msra.mxu1 %v5777_v18 }
 0x564   :  { %3439 = vmatprep.subr.mxu1 %v5706_v63 }
 0x565   :  { %3440 = vmatpush3.msra.mxu1 %v5778_v30 }
 0x566   :  { %3441 = vmatprep.subr.mxu1 %v5706_v63 }
 0x567   :  { %3442 = vmatpush3.msra.mxu1 %v5779_v21 }
 0x568   :  { %3443 = vmatprep.subr.mxu1 %v5706_v63 }
 0x569   :  { %3444 = vmatpush3.msra.mxu1 %v5780_v31 }
 0x56a   :  { %3445 = vmatprep.subr.mxu1 %v5706_v63 }
 0x56b   :  { %3446 = vmatpush3.msra.mxu1 %v5781_v23 }
 0x56c   :  { %3447 = vmatprep.subr.mxu1 %v5706_v63 }
 0x56d   :  { %3448 = vmatpush3.msra.mxu1 %v5782_v41  ;;  %v1252_v41 = vpop.f32.mrf.mxu0 }
 0x56e   :  { %3449 = vmatprep.subr.mxu1 %v5706_v63 }
 0x56f   :  { %3450 = vmatpush3.msra.mxu1 %v5783_v33  ;;  %v1254_v14 = vpop.f32.mrf.mxu0 }
 0x570   :  { %3454 = vmatprep.subr.mxu1 %v5706_v63 }
 0x5ea   :  { %v1035_v39 = vpop.f32.mrf.mxu1 }
 0x5eb   :  { %v1111_v35 = vadd.f32 %v1035_v39, %v5784_v7 }
 0x5ec   :  { %v1037_v28 = vpop.f32.mrf.mxu1 }
 0x5ed   :  { %v1112_v31 = vadd.f32 %v1037_v28, %v5785_v29 }
 0x5f0   :  { %v1106_v22 = vpop.f32.mrf.mxu1 }
 0x5f1   :  { %v1113_v8 = vadd.f32 %v1106_v22, %v4444_v32 }
 0x5f2   :  { %v1108_v13 = vpop.f32.mrf.mxu1 }
 0x5f3   :  { %v1114_v33 = vadd.f32 %v1108_v13, %v4442_v25  ;;  %v1259_v39 = vadd.f32 %v1252_v41, %v1113_v8  ;;  %v5786_v8 = vmov 1.0   ;;  %v5787_v41 = vld [vmem:[#allocation34_spill] sm:$0xff] }
 0x5f5   :  { %v1260_v12 = vadd.f32 %v1254_v14, %v1114_v33 }
 0x5f7   :  { %v3224_v9 = vmul.f32 -1.442695, %v1260_v12 }
 0x610   :  { %v1181_v15 = vpop.f32.mrf.mxu1 }
 0x611   :  { %v1257_v23 = vadd.f32 %v1181_v15, %v1111_v35 }
 0x612   :  { %v1183_v21 = vpop.f32.mrf.mxu1 }
 0x613   :  { %v3222_v30 = vmul.f32 -1.442695, %v1257_v23  ;;  %v1258_v18 = vadd.f32 %v1183_v21, %v1112_v31 }
 0x615   :  { %3632 = vpow2.f32 %v3222_v30  ;;  %v3223_v16 = vmul.f32 -1.442695, %v1258_v18 }
 0x617   :  { %3634 = vpow2.f32 %v3223_v16  ;;  %v3219_v16 = vld [vmem:[%s5503_s3 + $0x2] sm:$0x3] }
 0x618   :  { %3636 = vpow2.f32 %v3224_v9 }
 0x622   :  { %v3633_v27 = vpop.eup %3632 }
 0x623   :  { %v1264_v7 = vadd.f32 1.0, %v3633_v27 }
 0x624   :  { %v3635_v6 = vpop.eup %3634 }
 0x625   :  { %3638 = vrcp.f32 %v1264_v7  ;;  %v1270_v15 = vadd.f32 1.0, %v3635_v6  ;;  %v3637_v35 = vpop.eup %3636  ;;  %v1365_v7 = vsub.f32 1.0, %v4557_v10 }
 0x626   :  { %3640 = vtanh.f32 %v1259_v39  ;;  %v1277_v21 = vadd.f32 1.0, %v3637_v35 }
 0x627   :  { %3642 = vrcp.f32 %v1270_v15 }
 0x628   :  { %3644 = vrcp.f32 %v1277_v21 }
 0x632   :  { %v3639_v30 = vpop.eup %3638 }
 0x633   :  { %v3641_v18 = vpop.eup %3640 }
 0x634   :  { %v3643_v14 = vpop.eup %3642  ;;  %v1281_v31 = vmul.f32 %v3641_v18, %v3639_v30 }
 0x635   :  { %v1280_v12 = vmul.f32 %v3643_v14, %v3219_v16  ;;  %v3645_v27 = vpop.eup %3644 }
 0x637   :  { %v1282_v23 = vadd.f32 %v1281_v31, %v1280_v12  ;;  %v3229_v31 = vld [vmem:[%s5501_s1 + $0x2] sm:$0x3] }
 0x639   :  { %1288 = vst [vmem:[#allocation11 + $0x2] sm:$0x3] %v1282_v23  ;;  %3646 = vtanh.f32 %v1282_v23 }
 0x646   :  { %v3647_v9 = vpop.eup %3646 }
 0x647   :  { %v1284_v6 = vmul.f32 %v3647_v9, %v3645_v27 }
 0x649   :  { %1286 = vst [vmem:[#allocation10 + $0x2] sm:$0x3] %v1284_v6  ;;  %3452 = vmatmul.mubr.f32.vlgmr.msra.gmra.mxu1 %v1284_v6 }
 0x64a   :  { %3455 = vmatpush3.msk.msra.mxu1 %vm4500_vm5, %v5786_v8  ;;  %3460 = vmatprep.mubr.msk.f32.mxu1 %vm3940_vm2, %v5706_v63 }
 0x64b   :  { %3456 = vmatprep.subr.mxu1 %v5706_v63 }
 0x64c   :  { %3457 = vmatpush3.msk.msra.mxu1 %vm4505_vm6, %v5786_v8 }
 0x64d   :  { %3458 = vmatprep.subr.mxu1 %v5706_v63 }
 0x64e   :  { %3459 = vmatpush3.msk.msra.mxu1 %vm4515_vm7, %v5786_v8 }
 0x64f   :  { %1730 = vmatprep.subr.mxu1 %v5787_v41 }
 0x709   :  { %v1355_v33 = vpop.f32.mrf.mxu1 }
 0x70a   :  { %v1356_v28 = vadd.f32 %v4487_v11, %v1355_v33 }
 0x70b   :  { %v3453_v22 = vpop.f32.mrf.mxu1 }
 0x70c   :  { %v1359_v13 = vsel %vm837_vm3, %v1356_v28, -inf }
 0x70d   :  { %1360 = vmax.xlane.f32.xlu0 %v1359_v13 }
 0x723   :  { %1367 = vrot.lane.b32.xlu0 %v1365_v7, %s3941_s25 }
 0x796   :  { %v1361_v39 = vpop.xlane.xlu0 %1360 }
 0x797   :  { %v1362_v15 = vsub.f32 %v1356_v28, %v1361_v39  ;;  %v4800_v39 = vld [vmem:[#allocation5 + $0x1a0] sm:$0xff] }
 0x799   :  { %v1363_v35 = vmul.f32 1.442695, %v1362_v15  ;;  %v4803_v15 = vld [vmem:[#allocation5 + $0x188] sm:$0xff] }
 0x79a   :  { %v1368_v16 = vpop.permute.xlu0 %1367 }
 0x79b   :  { %3648 = vpow2.f32 %v1363_v35  ;;  %v1370_v18 = vmul.f32 %v1368_v16, %v1365_v7  ;;  %v4806_v35 = vld [vmem:[#allocation5 + $0x180] sm:$0xff] }
 0x79c   :  { %v4812_v16 = vld [vmem:[#allocation5 + $0x160] sm:$0xff] }
 0x7a8   :  { %v3649_v30 = vpop.eup %3648 }
 0x7a9   :  { %1373 = vrot.lane.b32.xlu1 %v3649_v30, %s3941_s25  ;;  %v1371_v14 = vmul.f32 %v3649_v30, %v1370_v18  ;;  %v4809_v30 = vld [vmem:[#allocation5 + $0x168] sm:$0xff] }
 0x7ab   :  { %v1377_v21 = vsel %vm844_vm4, %v1371_v14, 0.0 }
 0x7cd   :  { %1378 = vadd.xlane.f32.xlu1 %v1377_v21  ;;  %v4821_v21 = vld [vmem:[#allocation5 + $0x128] sm:$0xff] }
 0x7de   :  { %1482 = vperm.xlu1 %3610, %v3229_v31   ;;  %v4824_v31 = vld [vmem:[#allocation5 + $0x120] sm:$0xff] }
 0x81b   :  { %v1374_v12 = vpop.permute.xlu1 %1373 }
 0x81c   :  { %v1376_v23 = vmul.f32 %v1374_v12, %v1370_v18  ;;  %v4815_v18 = vld [vmem:[#allocation5 + $0x148] sm:$0xff] }
 0x81d   :  { %v4827_v12 = vld [vmem:[#allocation5 + $0x108] sm:$0xff] }
 0x81e   :  { %v1380_v27 = vsel %vm844_vm4, %v1376_v23, 0.0 }
 0x81f   :  { %1381 = vadd.xlane.f32.xlu0 %v1380_v27  ;;  %v4833_v27 = vld [vmem:[#allocation5 + $0xe8] sm:$0xff] }
 0x820   :  { %5793 = vst [vmem:[#allocation19_spill] sm:$0xff] %v4833_v27 }
 0x856   :  { %v1379_v9 = vpop.xlane.xlu1 %1378 }
 0x8a8   :  { %v1382_v6 = vpop.xlane.xlu0 %1381 }
 0x8a9   :  { %v1383_v41 = vadd.f32 %v1382_v6, %v1379_v9  ;;  %v4836_v9 = vld [vmem:[#allocation5 + $0xe0] sm:$0xff]  ;;  %v4839_v6 = vld [vmem:[#allocation5 + $0xc8] sm:$0xff] }
 0x8aa   :  { %5794 = vst [vmem:[#allocation20_spill] sm:$0xff] %v4836_v9  ;;  %5795 = vst [vmem:[#allocation21_spill] sm:$0xff] %v4839_v6 }
 0x8ab   :  { %3650 = vrcp.f32 %v1383_v41  ;;  %v4842_v41 = vld [vmem:[#allocation5 + $0xc0] sm:$0xff] }
 0x8ac   :  { %5796 = vst [vmem:[#allocation22_spill] sm:$0xff] %v4842_v41 }
 0x8b8   :  { %v3651_v33 = vpop.eup %3650 }
 0x8b9   :  { %v4668_v28 = vmul.f32 %v3651_v33, %v1376_v23  ;;  %v4672_v22 = vmul.f32 %v3651_v33, %v1371_v14  ;;  %v4818_v14 = vld [vmem:[#allocation5 + $0x140] sm:$0xff]  ;;  %v4845_v33 = vld [vmem:[#allocation5 + $0xa8] sm:$0xff] }
 0x8ba   :  { %v4830_v23 = vld [vmem:[#allocation5 + $0x100] sm:$0xff]  ;;  %5797 = vst [vmem:[#allocation23_spill] sm:$0xff] %v4845_v33 }
 0x8bb   :  { %5788 = vst [vmem:[#allocation27_spill] sm:$0xff] %v4668_v28  ;;  %1393 = vrot.lane.b32.xlu0 %v4668_v28, %s3944_s18  ;;  %5789 = vst [vmem:[#allocation29_spill] sm:$0xff] %v4672_v22 }
 0x8bc   :  { %5792 = vst [vmem:[#allocation18_spill] sm:$0xff] %v4830_v23 }
 0x8c3   :  { %v5904_v61 = vld [vmem:[#allocation18_spill] sm:$0xff] }
 0x92d   :  { %v4674_v13 = vpop.permute.xlu0 %1393 }
 0x92e   :  { %5790 = vst [vmem:[#allocation31_spill] sm:$0xff] %v4674_v13  ;;  %v1404_v7 = vsel %vm861_vm12, %v4672_v22, %v4674_v13 }
 0x92f   :  { %3461 = vmatmul.mubr.msk.f32.vlgmr.msra.gmra.mxu1 %vm439_vm8, %v1404_v7  ;;  %v4848_v7 = vld [vmem:[#allocation5 + $0xa0] sm:$0xff] }
 0x930   :  { %1731 = vmatpush1.msra.mxu1 %v4151_v34  ;;  %1794 = vmatprep.mubr.f32.mxu1 %v5706_v63  ;;  %5798 = vst [vmem:[#allocation24_spill] sm:$0xff] %v4848_v7 }
 0x931   :  { %1732 = vmatprep.subr.mxu1 %v4157_v36  ;;  %v5791_v36 = vmov 0  }
 0x932   :  { %1733 = vmatpush1.msra.mxu1 %v4163_v38 }
 0x933   :  { %1734 = vmatprep.subr.mxu1 %v4169_v40 }
 0x934   :  { %1735 = vmatpush1.msra.mxu1 %v4175_v42 }
 0x935   :  { %1736 = vmatprep.subr.mxu1 %v4181_v44 }
 0x936   :  { %1737 = vmatpush1.msra.mxu1 %v4187_v46 }
 0x937   :  { %1738 = vmatprep.subr.mxu1 %v4193_v48 }
 0x938   :  { %1739 = vmatpush1.msra.mxu1 %v4199_v50 }
 0x939   :  { %1740 = vmatprep.subr.mxu1 %v4205_v52 }
 0x93a   :  { %1741 = vmatpush1.msra.mxu1 %v4211_v54 }
 0x93b   :  { %1742 = vmatprep.subr.mxu1 %v4217_v56 }
 0x93c   :  { %1743 = vmatpush1.msra.mxu1 %v4223_v58 }
 0x93d   :  { %1744 = vmatprep.subr.mxu1 %v4229_v60  ;;  %v4758_v60 = vld [vmem:[%s5505_s5 + $0x38] sm:$0xff] }
 0x93e   :  { %1745 = vmatpush1.msra.mxu1 %v4235_v62  ;;  %v4767_v62 = vld [vmem:[%s5505_s5 + $0x30] sm:$0xff] }
 0x93f   :  { %1746 = vmatprep.subr.mxu1 %v4241_v0  ;;  %v4773_v0 = vld [vmem:[%s5505_s5 + $0x18] sm:$0xff] }
 0x940   :  { %1747 = vmatpush1.msra.mxu1 %v4247_v2  ;;  %v4784_v2 = vld [vmem:[#allocation5 + $0x1e8] sm:$0xff] }
 0x941   :  { %1748 = vmatprep.subr.mxu1 %v4253_v4  ;;  %v4791_v4 = vld [vmem:[#allocation5 + $0x1c8] sm:$0xff] }
 0x942   :  { %1749 = vmatpush1.msra.mxu1 %v4261_v20  ;;  %v1483_v20 = vpop.permute.xlu1 %1482 }
 0x943   :  { %1750 = vmatprep.subr.mxu1 %v4268_v59  ;;  %v4751_v59 = vld [vmem:[%s5505_s5 + $0x50] sm:$0xff] }
 0x944   :  { %1751 = vmatpush1.msra.mxu1 %v4272_v57 }
 0x945   :  { %1752 = vmatprep.subr.mxu1 %v4275_v1  ;;  %v4779_v1 = vld [vmem:[%s5505_s5 + $0x10] sm:$0xff] }
 0x946   :  { %1753 = vmatpush1.msra.mxu1 %v4278_v55 }
 0x947   :  { %1754 = vmatprep.subr.mxu1 %v4282_v3  ;;  %v4787_v3 = vld [vmem:[#allocation5 + $0x1e0] sm:$0xff] }
 0x948   :  { %1755 = vmatpush1.msra.mxu1 %v4286_v5  ;;  %v4794_v5 = vld [vmem:[#allocation5 + $0x1c0] sm:$0xff] }
 0x949   :  { %1756 = vmatprep.subr.mxu1 %v4289_v53 }
 0x94a   :  { %1757 = vmatpush1.msra.mxu1 %v4292_v51 }
 0x94b   :  { %1758 = vmatprep.subr.mxu1 %v4295_v49 }
 0x94c   :  { %1759 = vmatpush1.msra.mxu1 %v4298_v47 }
 0x94d   :  { %1760 = vmatprep.subr.mxu1 %v4301_v45  ;;  %v4737_v45 = vld [vmem:[%s5505_s5 + $0x48] sm:$0xff] }
 0x94e   :  { %1761 = vmatpush1.msra.mxu1 %v4304_v43  ;;  %v4718_v43 = vld [vmem:[%s5502_s2 + $0x4] sm:$0x3] }
 0x94f   :  { %3498 = vmatprep.subr.mxu1 %v5706_v63  ;;  %1795 = vmatmul.mubr.f32.vlgmr.msra.gmra.mxu1 %v4718_v43 }
 0x950   :  { %3499 = vmatpush3.msk.msra.mxu1 %vm4500_vm5, %v5786_v8  ;;  %3504 = vmatprep.mubr.msk.f32.mxu1 %vm3940_vm2, %v5706_v63 }
 0x951   :  { %3500 = vmatprep.subr.mxu1 %v5706_v63 }
 0x952   :  { %3501 = vmatpush3.msk.msra.mxu1 %vm4505_vm6, %v5786_v8 }
 0x953   :  { %3502 = vmatprep.subr.mxu1 %v5706_v63 }
 0x954   :  { %3503 = vmatpush3.msk.msra.mxu1 %vm4515_vm7, %v5786_v8 }
 0x955   :  { %2083 = vmatprep.subr.mxu1 %v4737_v45 }
 0x9ef   :  { %v1474_v34 = vpop.f32.mrf.mxu1 }
 0x9f0   :  { %vm1485_vm13 = vcmp.lt.f32.partialorder %v1474_v34, %v1483_v20  ;;  %v4851_v20 = vld [vmem:[#allocation5 + $0x88] sm:$0xff]  ;;  %v4854_v34 = vld [vmem:[#allocation5 + $0x80] sm:$0xff] }
 0x9f1   :  { %v1486_v38 = vsel %vm1485_vm13, 1, %v5791_v36  ;;  %v3462_v40 = vpop.f32.mrf.mxu1  ;;  %5799 = vst [vmem:[#allocation25_spill] sm:$0xff] %v4851_v20  ;;  %5800 = vst [vmem:[#allocation26_spill] sm:$0xff] %v4854_v34 }
 0x9f2   :  { %v1487_v42 = vsel %vm837_vm3, %v1486_v38, 0  ;;  %v4857_v38 = vld [vmem:[#allocation5 + $0x68] sm:$0xff]  ;;  %v4860_v40 = vld [vmem:[#allocation5 + $0x60] sm:$0xff] }
 0x9f3   :  { %v1489_v44 = vshrl.u32 %v1487_v42, 16  ;;  %v1488_v46 = vand.u32 65535, %v1487_v42  ;;  %5801 = vst [vmem:[#allocation28_spill] sm:$0xff] %v4857_v38  ;;  %5802 = vst [vmem:[#allocation30_spill] sm:$0xff] %v4860_v40  ;;  %v4863_v42 = vld [vmem:[#allocation5 + $0x48] sm:$0xff] }
 0x9f4   :  { %5803 = vst [vmem:[#allocation32_spill] sm:$0xff] %v4863_v42 }
 0x9f5   :  { %v1491_v48 = vcvt.s32.f32 %v1489_v44  ;;  %v1490_v49 = vcvt.s32.f32 %v1488_v46  ;;  %v4866_v44 = vld [vmem:[#allocation5 + $0x40] sm:$0xff]  ;;  %v4869_v46 = vld [vmem:[#allocation5 + $0x28] sm:$0xff] }
 0x9f6   :  { %5804 = vst [vmem:[#allocation33_spill] sm:$0xff] %v4866_v44  ;;  %5805 = vst [vmem:[#allocation35_spill] sm:$0xff] %v4869_v46 }
 0x9f7   :  { %1494 = vadd.xlane.f32.xlu1 %v1491_v48  ;;  %1492 = vadd.xlane.f32.xlu0 %v1490_v49  ;;  %v4872_v48 = vld [vmem:[#allocation5 + $0x20] sm:$0xff]  ;;  %v4875_v49 = vld [vmem:[#allocation5 + $0x8] sm:$0xff] }
 0x9f8   :  { %5806 = vst [vmem:[#allocation36_spill] sm:$0xff] %v4872_v48  ;;  %5807 = vst [vmem:[#allocation37_spill] sm:$0xff] %v4875_v49 }
 0xa80   :  { %v1495_v47 = vpop.xlane.xlu1 %1494  ;;  %v1493_v50 = vpop.xlane.xlu0 %1492 }
 0xa81   :  { %v1497_v51 = vcvt.f32.s32 %v1495_v47  ;;  %v1496_v53 = vcvt.f32.s32 %v1493_v50  ;;  %v4878_v47 = vld [vmem:[#allocation5] sm:$0xff]  ;;  %v5809_v50 = vld [vmem:[#allocation56_spill] sm:$0xff] }
 0xa82   :  { %5808 = vst [vmem:[#allocation38_spill] sm:$0xff] %v4878_v47 }
 0xa83   :  { %v1498_v52 = vshll.u32 %v1497_v51, 16  ;;  %v5810_v51 = vld [vmem:[#allocation57_spill] sm:$0xff] }
 0xa85   :  { %v1499_v54 = vadd.s32 %v1498_v52, %v1496_v53  ;;  %v5813_v52 = vld [vmem:[#allocation60_spill] sm:$0xff]  ;;  %v5815_v53 = vld [vmem:[#allocation62_spill] sm:$0xff] }
 0xa87   :  { %vm1500_vm14 = vcmp.lt.s32.totalorder %v1499_v54, 23 }
 0xa88   :  { %v1501_v55 = vsel %vm1500_vm14, %v1499_v54, 23  ;;  %v5816_v54 = vld [vmem:[#allocation63_spill] sm:$0xff] }
 0xa89   :  { %vm1502_vm15 = vcmp.eq.s32.totalorder %v4495_v26, %v1501_v55  ;;  %v5817_v55 = vld [vmem:[#allocation64_spill] sm:$0xff] }
 0xa8a   :  { %v3230_v56 = vsel %vm1502_vm15, 1.0, %v5706_v63 }
 0xa8b   :  { %v4743_v57 = vadd.f32 %v3230_v56, %v4557_v10  ;;  %v4797_v10 = vld [vmem:[#allocation5 + $0x1a8] sm:$0xff]  ;;  %v5818_v56 = vld [vmem:[#allocation65_spill] sm:$0xff] }
 0xa8d   :  { %3233 = vmatmul.mubr.msk.f32.vlgmr.msra.gmra.mxu0 %vm439_vm8, %v4743_v57  ;;  %v5595_v58 = vsub.f32 1.0, %v4743_v57 }
 0xa8e   :  { %1611 = vmatpush1.msra.mxu0 %v4751_v59  ;;  %1648 = vmatprep.mubr.f32.mxu0 %v5706_v63 }
 0xa8f   :  { %1612 = vmatprep.subr.mxu0 %v4758_v60  ;;  %1911 = vrot.lane.b32.xlu1 %v5595_v58, %s3941_s25 }
 0xa90   :  { %1613 = vmatpush1.msra.mxu0 %v4767_v62 }
 0xa91   :  { %1614 = vmatprep.subr.mxu0 %v4773_v0 }
 0xa92   :  { %1615 = vmatpush1.msra.mxu0 %v4779_v1 }
 0xa93   :  { %3234 = vmatmul.mubr.msk.f32.vlgmr.msra.gmra.mxu0 %vm439_vm8, %v4743_v57  ;;  %1659 = vmatprep.subr.mxu0 %v4784_v2 }
 0xa94   :  { %1660 = vmatpush1.msra.mxu0 %v4787_v3  ;;  %1723 = vmatprep.mubr.f32.mxu0 %v5706_v63 }
 0xa95   :  { %1661 = vmatprep.subr.mxu0 %v4791_v4 }
 0xa96   :  { %1662 = vmatpush1.msra.mxu0 %v4794_v5 }
 0xa97   :  { %1663 = vmatprep.subr.mxu0 %v4797_v10 }
 0xa98   :  { %1664 = vmatpush1.msra.mxu0 %v4800_v39 }
 0xa99   :  { %1665 = vmatprep.subr.mxu0 %v4803_v15 }
 0xa9a   :  { %1666 = vmatpush1.msra.mxu0 %v4806_v35 }
 0xa9b   :  { %1667 = vmatprep.subr.mxu0 %v4809_v30 }
 0xa9c   :  { %1668 = vmatpush1.msra.mxu0 %v4812_v16 }
 0xa9d   :  { %1669 = vmatprep.subr.mxu0 %v4815_v18 }
 0xa9e   :  { %1670 = vmatpush1.msra.mxu0 %v4818_v14 }
 0xa9f   :  { %1671 = vmatprep.subr.mxu0 %v4821_v21 }
 0xaa0   :  { %1672 = vmatpush1.msra.mxu0 %v4824_v31 }
 0xaa1   :  { %1673 = vmatprep.subr.mxu0 %v4827_v12 }
 0xaa2   :  { %1674 = vmatpush1.msra.mxu0 %v4830_v23 }
 0xaa3   :  { %1675 = vmatprep.subr.mxu0 %v4833_v27 }
 0xaa4   :  { %1676 = vmatpush1.msra.mxu0 %v4836_v9 }
 0xaa5   :  { %1677 = vmatprep.subr.mxu0 %v4839_v6 }
 0xaa6   :  { %1678 = vmatpush1.msra.mxu0 %v4842_v41 }
 0xaa7   :  { %1679 = vmatprep.subr.mxu0 %v4845_v33 }
 0xaa8   :  { %1680 = vmatpush1.msra.mxu0 %v4848_v7 }
 0xaa9   :  { %1681 = vmatprep.subr.mxu0 %v4851_v20 }
 0xaaa   :  { %1682 = vmatpush1.msra.mxu0 %v4854_v34 }
 0xaab   :  { %1683 = vmatprep.subr.mxu0 %v4857_v38 }
 0xaac   :  { %1684 = vmatpush1.msra.mxu0 %v4860_v40 }
 0xaad   :  { %1685 = vmatprep.subr.mxu0 %v4863_v42 }
 0xaae   :  { %1686 = vmatpush1.msra.mxu0 %v4866_v44 }
 0xaaf   :  { %1687 = vmatprep.subr.mxu0 %v4869_v46 }
 0xab0   :  { %1688 = vmatpush1.msra.mxu0 %v4872_v48 }
 0xab1   :  { %1689 = vmatprep.subr.mxu0 %v4875_v49 }
 0xab2   :  { %1690 = vmatpush1.msra.mxu0 %v4878_v47  ;;  %v1796_v47 = vpop.f32.mrf.mxu1 }
 0xab3   :  { %1724 = vmatmul.mubr.f32.vlgmr.msra.gmra.mxu0 %v4718_v43  ;;  %3463 = vmatprep.subr.mxu0 %v5706_v63  ;;  %v5811_v43 = vld [vmem:[#allocation58_spill] sm:$0xff] }
 0xab4   :  { %3464 = vmatpush3.msra.mxu0 %v5768_v17  ;;  %3495 = vmatprep.mubr.msk.f32.mxu0 %vm3940_vm2, %v5706_v63  ;;  %v5812_v17 = vld [vmem:[#allocation59_spill] sm:$0xff] }
 0xab5   :  { %3465 = vmatprep.subr.mxu0 %v5706_v63 }
 0xab6   :  { %3466 = vmatpush3.msra.mxu0 %v5769_v19  ;;  %v5814_v19 = vld [vmem:[#allocation61_spill] sm:$0xff] }
 0xab7   :  { %3467 = vmatprep.subr.mxu0 %v5706_v63 }
 0xab8   :  { %3468 = vmatpush3.msra.mxu0 %v5809_v50  ;;  %v5819_v50 = vld [vmem:[#allocation66_spill] sm:$0xff] }
 0xab9   :  { %3469 = vmatprep.subr.mxu0 %v5706_v63 }
 0xaba   :  { %3470 = vmatpush3.msra.mxu0 %v5810_v51  ;;  %v5820_v51 = vld [vmem:[#allocation67_spill] sm:$0xff] }
 0xabb   :  { %3471 = vmatprep.subr.mxu0 %v5706_v63 }
 0xabc   :  { %3472 = vmatpush3.msra.mxu0 %v5811_v43  ;;  %v5821_v43 = vld [vmem:[#allocation68_spill] sm:$0xff] }
 0xabd   :  { %3473 = vmatprep.subr.mxu0 %v5706_v63 }
 0xabe   :  { %3474 = vmatpush3.msra.mxu0 %v5812_v17  ;;  %v5822_v17 = vld [vmem:[#allocation69_spill] sm:$0xff] }
 0xabf   :  { %3475 = vmatprep.subr.mxu0 %v5706_v63 }
 0xac0   :  { %3476 = vmatpush3.msra.mxu0 %v5813_v52  ;;  %v4916_v52 = vld [vmem:[#allocation5 + $0x1f8] sm:$0xff] }
 0xac1   :  { %3477 = vmatprep.subr.mxu0 %v5706_v63  ;;  %5823 = vst [vmem:[#allocation39_spill] sm:$0xff] %v4916_v52 }
 0xac2   :  { %3478 = vmatpush3.msra.mxu0 %v5814_v19 }
 0xac3   :  { %3479 = vmatprep.subr.mxu0 %v5706_v63 }
 0xac4   :  { %3480 = vmatpush3.msra.mxu0 %v5815_v53 }
 0xac5   :  { %3481 = vmatprep.subr.mxu0 %v5706_v63 }
 0xac6   :  { %3482 = vmatpush3.msra.mxu0 %v5816_v54 }
 0xac7   :  { %3483 = vmatprep.subr.mxu0 %v5706_v63 }
 0xac8   :  { %3484 = vmatpush3.msra.mxu0 %v5817_v55 }
 0xac9   :  { %3485 = vmatprep.subr.mxu0 %v5706_v63 }
 0xaca   :  { %3486 = vmatpush3.msra.mxu0 %v5818_v56  ;;  %v5824_v56 = vld [vmem:[#allocation70_spill] sm:$0xff] }
 0xacb   :  { %3487 = vmatprep.subr.mxu0 %v5706_v63 }
 0xacc   :  { %3488 = vmatpush3.msra.mxu0 %v5819_v50 }
 0xacd   :  { %3489 = vmatprep.subr.mxu0 %v5706_v63 }
 0xace   :  { %3490 = vmatpush3.msra.mxu0 %v5820_v51 }
 0xacf   :  { %3491 = vmatprep.subr.mxu0 %v5706_v63 }
 0xad0   :  { %3492 = vmatpush3.msra.mxu0 %v5821_v43 }
 0xad1   :  { %3493 = vmatprep.subr.mxu0 %v5706_v63 }
 0xad2   :  { %3494 = vmatpush3.msra.mxu0 %v5822_v17 }
 0xad3   :  { %2274 = vmatprep.subr.mxu0 %v4916_v52  ;;  %v1798_v52 = vpop.f32.mrf.mxu1 }
 0xb4d   :  { %v1579_v19 = vpop.f32.mrf.mxu0 }
 0xb4e   :  { %v1655_v50 = vadd.f32 %v1579_v19, %v5824_v56 }
 0xb4f   :  { %v1581_v53 = vpop.f32.mrf.mxu0 }
 0xb50   :  { %v1656_v51 = vadd.f32 %v1581_v53, %v5785_v29 }
 0xb53   :  { %v1650_v54 = vpop.f32.mrf.mxu0 }
 0xb54   :  { %v1657_v46 = vadd.f32 %v1650_v54, %v4444_v32 }
 0xb55   :  { %v1652_v55 = vpop.f32.mrf.mxu0 }
 0xb56   :  { %v1658_v49 = vadd.f32 %v1652_v55, %v4442_v25  ;;  %v1803_v19 = vadd.f32 %v1796_v47, %v1657_v46  ;;  %v4926_v46 = vld [vmem:[#allocation5 + $0x1f0] sm:$0xff]  ;;  %v4930_v47 = vld [vmem:[#allocation5 + $0x1d8] sm:$0xff] }
 0xb58   :  { %v1804_v48 = vadd.f32 %v1798_v52, %v1658_v49 }
 0xb5a   :  { %v3237_v44 = vmul.f32 -1.442695, %v1804_v48 }
 0xb73   :  { %v1725_v58 = vpop.f32.mrf.mxu0 }
 0xb74   :  { %v1801_v22 = vadd.f32 %v1725_v58, %v1655_v50  ;;  %v4936_v50 = vld [vmem:[#allocation5 + $0x1b8] sm:$0xff] }
 0xb75   :  { %v1727_v13 = vpop.f32.mrf.mxu0 }
 0xb76   :  { %v3235_v43 = vmul.f32 -1.442695, %v1801_v22  ;;  %v1802_v28 = vadd.f32 %v1727_v13, %v1656_v51  ;;  %v4939_v51 = vld [vmem:[#allocation5 + $0x1b0] sm:$0xff] }
 0xb78   :  { %3652 = vpow2.f32 %v3235_v43  ;;  %v3236_v17 = vmul.f32 -1.442695, %v1802_v28  ;;  %v3232_v28 = vld [vmem:[%s5503_s3 + $0x4] sm:$0x3]  ;;  %v4942_v43 = vld [vmem:[#allocation5 + $0x198] sm:$0xff] }
 0xb7a   :  { %3654 = vpow2.f32 %v3236_v17  ;;  %v4945_v17 = vld [vmem:[#allocation5 + $0x190] sm:$0xff] }
 0xb7b   :  { %3656 = vpow2.f32 %v3237_v44 }
 0xb85   :  { %v3653_v42 = vpop.eup %3652 }
 0xb86   :  { %v1808_v56 = vadd.f32 1.0, %v3653_v42 }
 0xb87   :  { %v3655_v40 = vpop.eup %3654 }
 0xb88   :  { %3658 = vrcp.f32 %v1808_v56  ;;  %v1814_v58 = vadd.f32 1.0, %v3655_v40  ;;  %v3657_v22 = vpop.eup %3656  ;;  %v4933_v56 = vld [vmem:[#allocation5 + $0x1d0] sm:$0xff] }
 0xb89   :  { %3660 = vtanh.f32 %v1803_v19  ;;  %v1821_v52 = vadd.f32 1.0, %v3657_v22  ;;  %v4948_v19 = vld [vmem:[#allocation5 + $0x178] sm:$0xff] }
 0xb8a   :  { %3662 = vrcp.f32 %v1814_v58  ;;  %v4951_v58 = vld [vmem:[#allocation5 + $0x170] sm:$0xff]  ;;  %v4954_v22 = vld [vmem:[#allocation5 + $0x158] sm:$0xff] }
 0xb8b   :  { %3664 = vrcp.f32 %v1821_v52  ;;  %5825 = vst [vmem:[#allocation40_spill] sm:$0xff] %v4951_v58  ;;  %5826 = vst [vmem:[#allocation41_spill] sm:$0xff] %v4954_v22  ;;  %v4969_v52 = vld [vmem:[#allocation5 + $0x110] sm:$0xff] }
 0xb8c   :  { %5831 = vst [vmem:[#allocation46_spill] sm:$0xff] %v4969_v52 }
 0xb95   :  { %v3659_v13 = vpop.eup %3658 }
 0xb96   :  { %v3661_v53 = vpop.eup %3660 }
 0xb97   :  { %v3663_v49 = vpop.eup %3662  ;;  %v1825_v54 = vmul.f32 %v3661_v53, %v3659_v13  ;;  %v4957_v13 = vld [vmem:[#allocation5 + $0x150] sm:$0xff] }
 0xb98   :  { %v1824_v48 = vmul.f32 %v3663_v49, %v3232_v28  ;;  %v3665_v42 = vpop.eup %3664  ;;  %5827 = vst [vmem:[#allocation42_spill] sm:$0xff] %v4957_v13  ;;  %v4960_v28 = vld [vmem:[#allocation5 + $0x138] sm:$0xff]  ;;  %v4963_v53 = vld [vmem:[#allocation5 + $0x130] sm:$0xff] }
 0xb99   :  { %5828 = vst [vmem:[#allocation43_spill] sm:$0xff] %v4960_v28  ;;  %5829 = vst [vmem:[#allocation44_spill] sm:$0xff] %v4963_v53  ;;  %v4966_v49 = vld [vmem:[#allocation5 + $0x118] sm:$0xff] }
 0xb9a   :  { %v1826_v55 = vadd.f32 %v1825_v54, %v1824_v48  ;;  %5830 = vst [vmem:[#allocation45_spill] sm:$0xff] %v4966_v49  ;;  %v4972_v54 = vld [vmem:[#allocation5 + $0xf8] sm:$0xff]  ;;  %v4975_v48 = vld [vmem:[#allocation5 + $0xf0] sm:$0xff] }
 0xb9b   :  { %5832 = vst [vmem:[#allocation47_spill] sm:$0xff] %v4972_v54  ;;  %5833 = vst [vmem:[#allocation48_spill] sm:$0xff] %v4975_v48 }
 0xb9c   :  { %1832 = vst [vmem:[#allocation11 + $0x4] sm:$0x3] %v1826_v55  ;;  %3666 = vtanh.f32 %v1826_v55  ;;  %v4978_v55 = vld [vmem:[#allocation5 + $0xd8] sm:$0xff] }
 0xb9d   :  { %5834 = vst [vmem:[#allocation49_spill] sm:$0xff] %v4978_v55 }
 0xba9   :  { %v3667_v44 = vpop.eup %3666 }
 0xbaa   :  { %v1828_v40 = vmul.f32 %v3667_v44, %v3665_v42  ;;  %v4981_v42 = vld [vmem:[#allocation5 + $0xd0] sm:$0xff]  ;;  %v4984_v44 = vld [vmem:[#allocation5 + $0xb8] sm:$0xff] }
 0xbab   :  { %5835 = vst [vmem:[#allocation50_spill] sm:$0xff] %v4981_v42  ;;  %5836 = vst [vmem:[#allocation51_spill] sm:$0xff] %v4984_v44 }
 0xbac   :  { %1830 = vst [vmem:[#allocation10 + $0x4] sm:$0x3] %v1828_v40  ;;  %3496 = vmatmul.mubr.f32.vlgmr.msra.gmra.mxu0 %v1828_v40  ;;  %v4987_v40 = vld [vmem:[#allocation5 + $0xb0] sm:$0xff] }
 0xbad   :  { %2275 = vmatpush1.msra.mxu0 %v4926_v46  ;;  %2338 = vmatprep.mubr.f32.mxu0 %v5706_v63  ;;  %5837 = vst [vmem:[#allocation52_spill] sm:$0xff] %v4987_v40 }
 0xbae   :  { %2276 = vmatprep.subr.mxu0 %v4930_v47 }
 0xbaf   :  { %2277 = vmatpush1.msra.mxu0 %v4933_v56 }
 0xbb0   :  { %2278 = vmatprep.subr.mxu0 %v4936_v50 }
 0xbb1   :  { %2279 = vmatpush1.msra.mxu0 %v4939_v51 }
 0xbb2   :  { %2280 = vmatprep.subr.mxu0 %v4942_v43 }
 0xbb3   :  { %2281 = vmatpush1.msra.mxu0 %v4945_v17 }
 0xbb4   :  { %2282 = vmatprep.subr.mxu0 %v4948_v19 }
 0xbb5   :  { %2283 = vmatpush1.msra.mxu0 %v4951_v58 }
 0xbb6   :  { %2284 = vmatprep.subr.mxu0 %v4954_v22 }
 0xbb7   :  { %2285 = vmatpush1.msra.mxu0 %v4957_v13 }
 0xbb8   :  { %2286 = vmatprep.subr.mxu0 %v4960_v28  ;;  %v1912_v28 = vpop.permute.xlu1 %1911 }
 0xbb9   :  { %2287 = vmatpush1.msra.mxu0 %v4963_v53 }
 0xbba   :  { %2288 = vmatprep.subr.mxu0 %v4966_v49 }
 0xbbb   :  { %2289 = vmatpush1.msra.mxu0 %v4969_v52 }
 0xbbc   :  { %2290 = vmatprep.subr.mxu0 %v4972_v54  ;;  %v4990_v54 = vld [vmem:[#allocation5 + $0x98] sm:$0xff] }
 0xbbd   :  { %2291 = vmatpush1.msra.mxu0 %v4975_v48  ;;  %5838 = vst [vmem:[#allocation53_spill] sm:$0xff] %v4990_v54  ;;  %v4993_v48 = vld [vmem:[#allocation5 + $0x90] sm:$0xff] }
 0xbbe   :  { %2292 = vmatprep.subr.mxu0 %v4978_v55  ;;  %5839 = vst [vmem:[#allocation54_spill] sm:$0xff] %v4993_v48  ;;  %v4996_v55 = vld [vmem:[#allocation5 + $0x78] sm:$0xff] }
 0xbbf   :  { %2293 = vmatpush1.msra.mxu0 %v4981_v42  ;;  %5840 = vst [vmem:[#allocation55_spill] sm:$0xff] %v4996_v55  ;;  %v4999_v42 = vld [vmem:[#allocation5 + $0x70] sm:$0xff] }
 0xbc0   :  { %2294 = vmatprep.subr.mxu0 %v4984_v44  ;;  %5841 = vst [vmem:[#allocation71_spill] sm:$0xff] %v4999_v42  ;;  %v5002_v44 = vld [vmem:[#allocation5 + $0x58] sm:$0xff] }
 0xbc1   :  { %2295 = vmatpush1.msra.mxu0 %v4987_v40  ;;  %5842 = vst [vmem:[#allocation34_spill] sm:$0xff] %v5002_v44  ;;  %v5005_v40 = vld [vmem:[#allocation5 + $0x50] sm:$0xff] }
 0xbc2   :  { %2296 = vmatprep.subr.mxu0 %v4990_v54  ;;  %5843 = vst [vmem:[#allocation56_spill] sm:$0xff] %v5005_v40  ;;  %v5008_v54 = vld [vmem:[#allocation5 + $0x38] sm:$0xff] }
 0xbc3   :  { %2297 = vmatpush1.msra.mxu0 %v4993_v48  ;;  %5844 = vst [vmem:[#allocation57_spill] sm:$0xff] %v5008_v54  ;;  %v5011_v48 = vld [vmem:[#allocation5 + $0x30] sm:$0xff] }
 0xbc4   :  { %2298 = vmatprep.subr.mxu0 %v4996_v55  ;;  %5845 = vst [vmem:[#allocation58_spill] sm:$0xff] %v5011_v48  ;;  %v5014_v55 = vld [vmem:[#allocation5 + $0x18] sm:$0xff] }
 0xbc5   :  { %2299 = vmatpush1.msra.mxu0 %v4999_v42  ;;  %5846 = vst [vmem:[#allocation59_spill] sm:$0xff] %v5014_v55  ;;  %v5017_v42 = vld [vmem:[#allocation5 + $0x10] sm:$0xff] }
 0xbc6   :  { %2300 = vmatprep.subr.mxu0 %v5002_v44  ;;  %5847 = vst [vmem:[#allocation60_spill] sm:$0xff] %v5017_v42 }
 0xbc7   :  { %2301 = vmatpush1.msra.mxu0 %v5005_v40 }
 0xbc8   :  { %2302 = vmatprep.subr.mxu0 %v5008_v54 }
 0xbc9   :  { %2303 = vmatpush1.msra.mxu0 %v5011_v48 }
 0xbca   :  { %2304 = vmatprep.subr.mxu0 %v5014_v55  ;;  %v5848_v55 = vsub.f32 1.0, %v4743_v57 }
 0xbcb   :  { %2305 = vmatpush1.msra.mxu0 %v5017_v42 }
 0xbcc   :  { %3542 = vmatprep.subr.mxu0 %v5706_v63  ;;  %v1914_v13 = vmul.f32 %v1912_v28, %v5848_v55  ;;  %v3242_v28 = vld [vmem:[%s5501_s1 + $0x4] sm:$0x3] }
 0xc6c   :  { %v1899_v44 = vpop.f32.mrf.mxu0 }
 0xc6d   :  { %v1900_v40 = vadd.f32 %v4487_v11, %v1899_v44 }
 0xc6e   :  { %v3497_v52 = vpop.f32.mrf.mxu0 }
 0xc6f   :  { %v1903_v54 = vsel %vm837_vm3, %v1900_v40, -inf }
 0xc70   :  { %1904 = vmax.xlane.f32.xlu0 %v1903_v54 }
 0xcf9   :  { %v1905_v49 = vpop.xlane.xlu0 %1904 }
 0xcfa   :  { %v1906_v53 = vsub.f32 %v1900_v40, %v1905_v49  ;;  %v5046_v40 = vld [vmem:[%s5505_s5 + $0x40] sm:$0xff] }
 0xcfc   :  { %v1907_v48 = vmul.f32 1.442695, %v1906_v53 }
 0xcfe   :  { %3668 = vpow2.f32 %v1907_v48 }
 0xd0b   :  { %v3669_v22 = vpop.eup %3668 }
 0xd0c   :  { %1917 = vrot.lane.b32.xlu0 %v3669_v22, %s3941_s25  ;;  %v1915_v42 = vmul.f32 %v3669_v22, %v1914_v13 }
 0xd0e   :  { %v1921_v58 = vsel %vm844_vm4, %v1915_v42, 0.0 }
 0xd0f   :  { %1922 = vadd.xlane.f32.xlu1 %v1921_v58 }
 0xd7e   :  { %v1918_v11 = vpop.permute.xlu0 %1917 }
 0xd7f   :  { %v1920_v52 = vmul.f32 %v1918_v11, %v1914_v13  ;;  %v5059_v11 = vld [vmem:[%s5505_s5 + $0x20] sm:$0xff] }
 0xd81   :  { %v1924_v44 = vsel %vm844_vm4, %v1920_v52, 0.0 }
 0xd82   :  { %1925 = vadd.xlane.f32.xlu0 %v1924_v44  ;;  %v5071_v44 = vld [vmem:[%s5505_s5] sm:$0xff] }
 0xd83   :  { %5853 = vst [vmem:[#allocation65_spill] sm:$0xff] %v5071_v44 }
 0xd98   :  { %v1923_v54 = vpop.xlane.xlu1 %1922  ;;  %2026 = vperm.xlu0 %3611, %v3242_v28  }
 0xe0b   :  { %v1926_v49 = vpop.xlane.xlu0 %1925 }
 0xe0c   :  { %v1927_v53 = vadd.f32 %v1926_v49, %v1923_v54  ;;  %v5077_v54 = vld [vmem:[%s5505_s5 + $0x58] sm:$0xff] }
 0xe0e   :  { %3670 = vrcp.f32 %v1927_v53 }
 0xe13   :  { %v2027_v49 = vpop.permute.xlu0 %2026 }
 0xe1b   :  { %v3671_v48 = vpop.eup %3670 }
 0xe1c   :  { %v5031_v55 = vmul.f32 %v3671_v48, %v1920_v52  ;;  %v5035_v58 = vmul.f32 %v3671_v48, %v1915_v42  ;;  %v5053_v42 = vld [vmem:[%s5505_s5 + $0x28] sm:$0xff] }
 0xe1d   :  { %v5065_v52 = vld [vmem:[%s5505_s5 + $0x8] sm:$0xff] }
 0xe1e   :  { %5849 = vst [vmem:[#allocation61_spill] sm:$0xff] %v5031_v55  ;;  %1937 = vrot.lane.b32.xlu1 %v5031_v55, %s3944_s18  ;;  %5850 = vst [vmem:[#allocation62_spill] sm:$0xff] %v5035_v58 }
 0xe1f   :  { %5852 = vst [vmem:[#allocation64_spill] sm:$0xff] %v5065_v52 }
 0xe90   :  { %v5037_v22 = vpop.permute.xlu1 %1937 }
 0xe91   :  { %5851 = vst [vmem:[#allocation63_spill] sm:$0xff] %v5037_v22  ;;  %v1948_v13 = vsel %vm861_vm12, %v5035_v58, %v5037_v22 }
 0xe92   :  { %3505 = vmatmul.mubr.msk.f32.vlgmr.msra.gmra.mxu1 %vm439_vm8, %v1948_v13 }
 0xe93   :  { %2084 = vmatpush1.msra.mxu1 %v5046_v40  ;;  %2121 = vmatprep.mubr.f32.mxu1 %v5706_v63 }
 0xe94   :  { %2085 = vmatprep.subr.mxu1 %v5053_v42 }
 0xe95   :  { %2086 = vmatpush1.msra.mxu1 %v5059_v11 }
 0xe96   :  { %2087 = vmatprep.subr.mxu1 %v5065_v52 }
 0xe97   :  { %2088 = vmatpush1.msra.mxu1 %v5071_v44  ;;  %v3244_v44 = vld [vmem:[%s5502_s2 + $0x6] sm:$0x3] }
 0xe98   :  { %2154 = vmatprep.subr.mxu1 %v5077_v54  ;;  %2339 = vmatmul.mubr.f32.vlgmr.msra.gmra.mxu0 %v3244_v44 }
 0xe99   :  { %3543 = vmatpush3.msk.msra.mxu0 %vm4500_vm5, %v5786_v8  ;;  %3548 = vmatprep.mubr.msk.f32.mxu0 %vm3940_vm2, %v5706_v63 }
 0xe9a   :  { %3544 = vmatprep.subr.mxu0 %v5706_v63 }
 0xe9b   :  { %3545 = vmatpush3.msk.msra.mxu0 %vm4505_vm6, %v5786_v8 }
 0xe9c   :  { %3546 = vmatprep.subr.mxu0 %v5706_v63 }
 0xe9d   :  { %3547 = vmatpush3.msk.msra.mxu0 %vm4515_vm7, %v5786_v8 }
 0xe9e   :  { %2627 = vmatprep.subr.mxu0 %v4737_v45  ;;  %v5854_v45 = vld [vmem:[#allocation30_spill] sm:$0xff] }
 0xf52   :  { %v2018_v53 = vpop.f32.mrf.mxu1 }
 0xf53   :  { %vm2029_vm0 = vcmp.lt.f32.partialorder %v2018_v53, %v2027_v49 }
 0xf54   :  { %v2030_v28 = vsel %vm2029_vm0, 1, %v5791_v36  ;;  %v3506_v48 = vpop.f32.mrf.mxu1 }
 0xf55   :  { %v2031_v13 = vsel %vm837_vm3, %v2030_v28, 0 }
 0xf56   :  { %v2033_v58 = vshrl.u32 %v2031_v13, 16  ;;  %v2032_v22 = vand.u32 65535, %v2031_v13 }
 0xf58   :  { %v2035_v55 = vcvt.s32.f32 %v2033_v58  ;;  %v2034_v52 = vcvt.s32.f32 %v2032_v22 }
 0xf5a   :  { %2038 = vadd.xlane.f32.xlu1 %v2035_v55  ;;  %2036 = vadd.xlane.f32.xlu0 %v2034_v52 }
 0xfe3   :  { %v2039_v55 = vpop.xlane.xlu1 %2038  ;;  %v2037_v58 = vpop.xlane.xlu0 %2036 }
 0xfe4   :  { %v2041_v22 = vcvt.f32.s32 %v2039_v55  ;;  %v2040_v49 = vcvt.f32.s32 %v2037_v58  ;;  %v5856_v55 = vld [vmem:[#allocation33_spill] sm:$0xff]  ;;  %v5857_v58 = vld [vmem:[#allocation35_spill] sm:$0xff] }
 0xfe6   :  { %v2042_v52 = vshll.u32 %v2041_v22, 16  ;;  %v5858_v22 = vld [vmem:[#allocation36_spill] sm:$0xff] }
 0xfe8   :  { %v2043_v53 = vadd.s32 %v2042_v52, %v2040_v49  ;;  %v5859_v52 = vld [vmem:[#allocation37_spill] sm:$0xff]  ;;  %v5860_v49 = vld [vmem:[#allocation38_spill] sm:$0xff] }
 0xfea   :  { %vm2044_vm1 = vcmp.lt.s32.totalorder %v2043_v53, 23 }
 0xfeb   :  { %v2045_v28 = vsel %vm2044_vm1, %v2043_v53, 23  ;;  %v5151_v53 = vld [vmem:[%s5508_s8 + $0x78] sm:$0xff] }
 0xfec   :  { %vm2046_vm9 = vcmp.eq.s32.totalorder %v4495_v26, %v2045_v28  ;;  %5861 = vst [vmem:[#allocation66_spill] sm:$0xff] %v5151_v53  ;;  %v5160_v28 = vld [vmem:[%s5508_s8 + $0x70] sm:$0xff] }
 0xfed   :  { %v3243_v48 = vsel %vm2046_vm9, 1.0, %v5706_v63  ;;  %5862 = vst [vmem:[#allocation67_spill] sm:$0xff] %v5160_v28 }
 0xfee   :  { %v5102_v13 = vadd.f32 %v3243_v48, %v4743_v57  ;;  %v5855_v57 = vld [vmem:[#allocation32_spill] sm:$0xff]  ;;  %v5174_v48 = vld [vmem:[%s5508_s8 + $0x60] sm:$0xff] }
 0xfef   :  { %5864 = vst [vmem:[#allocation69_spill] sm:$0xff] %v5174_v48 }
 0xff0   :  { %3246 = vmatmul.mubr.msk.f32.vlgmr.msra.gmra.mxu1 %vm439_vm8, %v5102_v13 }
 0xff1   :  { %2155 = vmatpush1.msra.mxu1 %v4751_v59  ;;  %2192 = vmatprep.mubr.f32.mxu1 %v5706_v63 }
 0xff2   :  { %2156 = vmatprep.subr.mxu1 %v4758_v60 }
 0xff3   :  { %2157 = vmatpush1.msra.mxu1 %v4767_v62 }
 0xff4   :  { %2158 = vmatprep.subr.mxu1 %v4773_v0 }
 0xff5   :  { %2159 = vmatpush1.msra.mxu1 %v4779_v1 }
 0xff6   :  { %3247 = vmatmul.mubr.msk.f32.vlgmr.msra.gmra.mxu1 %vm439_vm8, %v5102_v13  ;;  %2203 = vmatprep.subr.mxu1 %v4784_v2 }
 0xff7   :  { %2204 = vmatpush1.msra.mxu1 %v4787_v3  ;;  %2267 = vmatprep.mubr.f32.mxu1 %v5706_v63 }
 0xff8   :  { %2205 = vmatprep.subr.mxu1 %v4791_v4 }
 0xff9   :  { %2206 = vmatpush1.msra.mxu1 %v4794_v5 }
 0xffa   :  { %2207 = vmatprep.subr.mxu1 %v4797_v10 }
 0xffb   :  { %2208 = vmatpush1.msra.mxu1 %v4800_v39 }
 0xffc   :  { %2209 = vmatprep.subr.mxu1 %v4803_v15 }
 0xffd   :  { %2210 = vmatpush1.msra.mxu1 %v4806_v35 }
 0xffe   :  { %2211 = vmatprep.subr.mxu1 %v4809_v30 }
 0xfff   :  { %2212 = vmatpush1.msra.mxu1 %v4812_v16 }
0x1000   :  { %2213 = vmatprep.subr.mxu1 %v4815_v18 }
0x1001   :  { %2214 = vmatpush1.msra.mxu1 %v4818_v14 }
0x1002   :  { %2215 = vmatprep.subr.mxu1 %v4821_v21 }
0x1003   :  { %2216 = vmatpush1.msra.mxu1 %v4824_v31 }
0x1004   :  { %2217 = vmatprep.subr.mxu1 %v4827_v12 }
0x1005   :  { %2218 = vmatpush1.msra.mxu1 %v4830_v23 }
0x1006   :  { %2219 = vmatprep.subr.mxu1 %v4833_v27 }
0x1007   :  { %2220 = vmatpush1.msra.mxu1 %v4836_v9 }
0x1008   :  { %2221 = vmatprep.subr.mxu1 %v4839_v6 }
0x1009   :  { %2222 = vmatpush1.msra.mxu1 %v4842_v41 }
0x100a   :  { %2223 = vmatprep.subr.mxu1 %v4845_v33 }
0x100b   :  { %2224 = vmatpush1.msra.mxu1 %v4848_v7  ;;  %v2340_v7 = vpop.f32.mrf.mxu0 }
0x100c   :  { %2225 = vmatprep.subr.mxu1 %v4851_v20 }
0x100d   :  { %2226 = vmatpush1.msra.mxu1 %v4854_v34 }
0x100e   :  { %2227 = vmatprep.subr.mxu1 %v4857_v38 }
0x100f   :  { %2228 = vmatpush1.msra.mxu1 %v5854_v45 }
0x1010   :  { %2229 = vmatprep.subr.mxu1 %v5855_v57 }
0x1011   :  { %2230 = vmatpush1.msra.mxu1 %v5856_v55 }
0x1012   :  { %2231 = vmatprep.subr.mxu1 %v5857_v58  ;;  %v5878_v58 = vld [vmem:[#allocation70_spill] sm:$0xff] }
0x1013   :  { %2232 = vmatpush1.msra.mxu1 %v5858_v22 }
0x1014   :  { %2233 = vmatprep.subr.mxu1 %v5859_v52 }
0x1015   :  { %2234 = vmatpush1.msra.mxu1 %v5860_v49 }
0x1016   :  { %2268 = vmatmul.mubr.f32.vlgmr.msra.gmra.mxu1 %v3244_v44  ;;  %3507 = vmatprep.subr.mxu1 %v5706_v63  ;;  %v5167_v44 = vld [vmem:[%s5508_s8 + $0x68] sm:$0xff] }
0x1017   :  { %3508 = vmatpush3.msra.mxu1 %v5151_v53  ;;  %3539 = vmatprep.mubr.msk.f32.mxu1 %vm3940_vm2, %v5706_v63  ;;  %5863 = vst [vmem:[#allocation68_spill] sm:$0xff] %v5167_v44  ;;  %v5877_v53 = vld [vmem:[#allocation39_spill] sm:$0xff] }
0x1018   :  { %3509 = vmatprep.subr.mxu1 %v5706_v63 }
0x1019   :  { %3510 = vmatpush3.msra.mxu1 %v5160_v28  ;;  %v5181_v28 = vld [vmem:[%s5508_s8 + $0x58] sm:$0xff] }
0x101a   :  { %3511 = vmatprep.subr.mxu1 %v5706_v63  ;;  %5865 = vst [vmem:[#allocation73_spill] sm:$0xff] %v5181_v28 }
0x101b   :  { %3512 = vmatpush3.msra.mxu1 %v5167_v44  ;;  %v5188_v44 = vld [vmem:[%s5508_s8 + $0x50] sm:$0xff] }
0x101c   :  { %3513 = vmatprep.subr.mxu1 %v5706_v63  ;;  %5866 = vst [vmem:[#allocation74_spill] sm:$0xff] %v5188_v44 }
0x101d   :  { %3514 = vmatpush3.msra.mxu1 %v5174_v48  ;;  %v5195_v48 = vld [vmem:[%s5508_s8 + $0x48] sm:$0xff] }
0x101e   :  { %3515 = vmatprep.subr.mxu1 %v5706_v63  ;;  %5867 = vst [vmem:[#allocation75_spill] sm:$0xff] %v5195_v48 }
0x101f   :  { %3516 = vmatpush3.msra.mxu1 %v5181_v28  ;;  %v5202_v28 = vld [vmem:[%s5508_s8 + $0x40] sm:$0xff] }
0x1020   :  { %3517 = vmatprep.subr.mxu1 %v5706_v63  ;;  %5868 = vst [vmem:[#allocation76_spill] sm:$0xff] %v5202_v28 }
0x1021   :  { %3518 = vmatpush3.msra.mxu1 %v5188_v44  ;;  %v5209_v44 = vld [vmem:[%s5508_s8 + $0x38] sm:$0xff] }
0x1022   :  { %3519 = vmatprep.subr.mxu1 %v5706_v63  ;;  %5869 = vst [vmem:[#allocation77_spill] sm:$0xff] %v5209_v44 }
0x1023   :  { %3520 = vmatpush3.msra.mxu1 %v5195_v48  ;;  %v5216_v48 = vld [vmem:[%s5508_s8 + $0x30] sm:$0xff] }
0x1024   :  { %3521 = vmatprep.subr.mxu1 %v5706_v63  ;;  %5870 = vst [vmem:[#allocation78_spill] sm:$0xff] %v5216_v48 }
0x1025   :  { %3522 = vmatpush3.msra.mxu1 %v5202_v28  ;;  %v5223_v28 = vld [vmem:[%s5508_s8 + $0x28] sm:$0xff] }
0x1026   :  { %3523 = vmatprep.subr.mxu1 %v5706_v63  ;;  %5871 = vst [vmem:[#allocation79_spill] sm:$0xff] %v5223_v28 }
0x1027   :  { %3524 = vmatpush3.msra.mxu1 %v5209_v44  ;;  %v5230_v44 = vld [vmem:[%s5508_s8 + $0x20] sm:$0xff] }
0x1028   :  { %3525 = vmatprep.subr.mxu1 %v5706_v63  ;;  %5872 = vst [vmem:[#allocation80_spill] sm:$0xff] %v5230_v44 }
0x1029   :  { %3526 = vmatpush3.msra.mxu1 %v5216_v48  ;;  %v5237_v48 = vld [vmem:[%s5508_s8 + $0x18] sm:$0xff] }
0x102a   :  { %3527 = vmatprep.subr.mxu1 %v5706_v63  ;;  %5873 = vst [vmem:[#allocation81_spill] sm:$0xff] %v5237_v48 }
0x102b   :  { %3528 = vmatpush3.msra.mxu1 %v5223_v28  ;;  %v5244_v28 = vld [vmem:[%s5508_s8 + $0x10] sm:$0xff] }
0x102c   :  { %3529 = vmatprep.subr.mxu1 %v5706_v63  ;;  %5874 = vst [vmem:[#allocation82_spill] sm:$0xff] %v5244_v28 }
0x102d   :  { %3530 = vmatpush3.msra.mxu1 %v5230_v44  ;;  %v5251_v44 = vld [vmem:[%s5508_s8 + $0x8] sm:$0xff] }
0x102e   :  { %3531 = vmatprep.subr.mxu1 %v5706_v63  ;;  %5875 = vst [vmem:[#allocation83_spill] sm:$0xff] %v5251_v44 }
0x102f   :  { %3532 = vmatpush3.msra.mxu1 %v5237_v48  ;;  %v5258_v48 = vld [vmem:[%s5508_s8] sm:$0xff] }
0x1030   :  { %3533 = vmatprep.subr.mxu1 %v5706_v63  ;;  %5876 = vst [vmem:[#allocation84_spill] sm:$0xff] %v5258_v48 }
0x1031   :  { %3534 = vmatpush3.msra.mxu1 %v5244_v28 }
0x1032   :  { %3535 = vmatprep.subr.mxu1 %v5706_v63 }
0x1033   :  { %3536 = vmatpush3.msra.mxu1 %v5251_v44 }
0x1034   :  { %3537 = vmatprep.subr.mxu1 %v5706_v63 }
0x1035   :  { %3538 = vmatpush3.msra.mxu1 %v5258_v48 }
0x1036   :  { %2818 = vmatprep.subr.mxu1 %v5877_v53  ;;  %v2342_v53 = vpop.f32.mrf.mxu0 }
0x10b0   :  { %v2123_v28 = vpop.f32.mrf.mxu1 }
0x10b1   :  { %v2199_v55 = vadd.f32 %v2123_v28, %v5878_v58 }
0x10b2   :  { %v2125_v49 = vpop.f32.mrf.mxu1 }
0x10b3   :  { %v2200_v44 = vadd.f32 %v2125_v49, %v5785_v29  ;;  %v5890_v49 = vld [vmem:[#allocation51_spill] sm:$0xff] }
0x10b6   :  { %v2194_v52 = vpop.f32.mrf.mxu1 }
0x10b7   :  { %v2201_v6 = vadd.f32 %v2194_v52, %v4444_v32 }
0x10b8   :  { %v2196_v22 = vpop.f32.mrf.mxu1 }
0x10b9   :  { %v2202_v48 = vadd.f32 %v2196_v22, %v4442_v25  ;;  %v2347_v28 = vadd.f32 %v2340_v7, %v2201_v6  ;;  %v5879_v6 = vld [vmem:[#allocation40_spill] sm:$0xff]  ;;  %v5880_v7 = vld [vmem:[#allocation41_spill] sm:$0xff] }
0x10bb   :  { %v2348_v41 = vadd.f32 %v2342_v53, %v2202_v48  ;;  %v5892_v48 = vld [vmem:[#allocation53_spill] sm:$0xff]  ;;  %v5893_v53 = vld [vmem:[#allocation54_spill] sm:$0xff] }
0x10bd   :  { %v3250_v9 = vmul.f32 -1.442695, %v2348_v41 }
0x10d6   :  { %v2269_v57 = vpop.f32.mrf.mxu1 }
0x10d7   :  { %v2345_v45 = vadd.f32 %v2269_v57, %v2199_v55 }
0x10d8   :  { %v2271_v38 = vpop.f32.mrf.mxu1 }
0x10d9   :  { %v3248_v34 = vmul.f32 -1.442695, %v2345_v45  ;;  %v2346_v20 = vadd.f32 %v2271_v38, %v2200_v44  ;;  %v5891_v44 = vld [vmem:[#allocation52_spill] sm:$0xff] }
0x10db   :  { %3672 = vpow2.f32 %v3248_v34  ;;  %v3249_v33 = vmul.f32 -1.442695, %v2346_v20 }
0x10dd   :  { %3674 = vpow2.f32 %v3249_v33  ;;  %v3245_v33 = vld [vmem:[%s5503_s3 + $0x6] sm:$0x3] }
0x10de   :  { %3676 = vpow2.f32 %v3250_v9 }
0x10e8   :  { %v3673_v27 = vpop.eup %3672 }
0x10e9   :  { %v2352_v58 = vadd.f32 1.0, %v3673_v27 }
0x10ea   :  { %v3675_v23 = vpop.eup %3674 }
0x10eb   :  { %3678 = vrcp.f32 %v2352_v58  ;;  %v2358_v57 = vadd.f32 1.0, %v3675_v23  ;;  %v3677_v38 = vpop.eup %3676  ;;  %v5882_v58 = vld [vmem:[#allocation43_spill] sm:$0xff] }
0x10ec   :  { %3680 = vtanh.f32 %v2347_v28  ;;  %v2365_v55 = vadd.f32 1.0, %v3677_v38  ;;  %v5894_v28 = vld [vmem:[#allocation55_spill] sm:$0xff]  ;;  %v5896_v38 = vld [vmem:[#allocation34_spill] sm:$0xff] }
0x10ed   :  { %3682 = vrcp.f32 %v2358_v57  ;;  %v5895_v57 = vld [vmem:[#allocation71_spill] sm:$0xff] }
0x10ee   :  { %3684 = vrcp.f32 %v2365_v55  ;;  %v5901_v55 = vld [vmem:[#allocation60_spill] sm:$0xff] }
0x10f8   :  { %v3679_v34 = vpop.eup %3678 }
0x10f9   :  { %v3681_v20 = vpop.eup %3680 }
0x10fa   :  { %v3683_v45 = vpop.eup %3682  ;;  %v2369_v22 = vmul.f32 %v3681_v20, %v3679_v34  ;;  %v5897_v34 = vld [vmem:[#allocation56_spill] sm:$0xff]  ;;  %v5899_v20 = vld [vmem:[#allocation58_spill] sm:$0xff] }
0x10fb   :  { %v2368_v41 = vmul.f32 %v3683_v45, %v3245_v33  ;;  %v3685_v27 = vpop.eup %3684  ;;  %v5898_v33 = vld [vmem:[#allocation57_spill] sm:$0xff]  ;;  %v5900_v45 = vld [vmem:[#allocation59_spill] sm:$0xff] }
0x10fd   :  { %v2370_v52 = vadd.f32 %v2369_v22, %v2368_v41  ;;  %v5305_v41 = vld [vmem:[%s5509_s9] ss:$0 sm:$0xff] }
0x10ff   :  { %2376 = vst [vmem:[#allocation11 + $0x6] sm:$0x3] %v2370_v52  ;;  %3686 = vtanh.f32 %v2370_v52 }
0x110c   :  { %v3687_v9 = vpop.eup %3686 }
0x110d   :  { %v2372_v23 = vmul.f32 %v3687_v9, %v3685_v27 }
0x110f   :  { %2374 = vst [vmem:[#allocation10 + $0x6] sm:$0x3] %v2372_v23  ;;  %3540 = vmatmul.mubr.f32.vlgmr.msra.gmra.mxu1 %v2372_v23  ;;  %v2453_v23 = vsub.f32 1.0, %v5102_v13 }
0x1110   :  { %2819 = vmatpush1.msra.mxu1 %v4926_v46  ;;  %2882 = vmatprep.mubr.f32.mxu1 %v5706_v63  ;;  %v5881_v46 = vld [vmem:[#allocation42_spill] sm:$0xff] }
0x1111   :  { %2820 = vmatprep.subr.mxu1 %v4930_v47  ;;  %v5883_v47 = vld [vmem:[#allocation44_spill] sm:$0xff] }
0x1112   :  { %2821 = vmatpush1.msra.mxu1 %v4933_v56  ;;  %v5884_v56 = vld [vmem:[#allocation45_spill] sm:$0xff] }
0x1113   :  { %2822 = vmatprep.subr.mxu1 %v4936_v50  ;;  %v5885_v50 = vld [vmem:[#allocation46_spill] sm:$0xff] }
0x1114   :  { %2823 = vmatpush1.msra.mxu1 %v4939_v51  ;;  %v5886_v51 = vld [vmem:[#allocation47_spill] sm:$0xff] }
0x1115   :  { %2824 = vmatprep.subr.mxu1 %v4942_v43  ;;  %v5887_v43 = vld [vmem:[#allocation48_spill] sm:$0xff] }
0x1116   :  { %2825 = vmatpush1.msra.mxu1 %v4945_v17  ;;  %v5888_v17 = vld [vmem:[#allocation49_spill] sm:$0xff] }
0x1117   :  { %2826 = vmatprep.subr.mxu1 %v4948_v19  ;;  %v5889_v19 = vld [vmem:[#allocation50_spill] sm:$0xff] }
0x1118   :  { %2827 = vmatpush1.msra.mxu1 %v5879_v6 }
0x1119   :  { %2828 = vmatprep.subr.mxu1 %v5880_v7 }
0x111a   :  { %2829 = vmatpush1.msra.mxu1 %v5881_v46 }
0x111b   :  { %2830 = vmatprep.subr.mxu1 %v5882_v58 }
0x111c   :  { %2831 = vmatpush1.msra.mxu1 %v5883_v47 }
0x111d   :  { %2832 = vmatprep.subr.mxu1 %v5884_v56 }
0x111e   :  { %2833 = vmatpush1.msra.mxu1 %v5885_v50 }
0x111f   :  { %2834 = vmatprep.subr.mxu1 %v5886_v51 }
0x1120   :  { %2835 = vmatpush1.msra.mxu1 %v5887_v43 }
0x1121   :  { %2836 = vmatprep.subr.mxu1 %v5888_v17 }
0x1122   :  { %2837 = vmatpush1.msra.mxu1 %v5889_v19 }
0x1123   :  { %2838 = vmatprep.subr.mxu1 %v5890_v49 }
0x1124   :  { %2839 = vmatpush1.msra.mxu1 %v5891_v44 }
0x1125   :  { %2840 = vmatprep.subr.mxu1 %v5892_v48 }
0x1126   :  { %2841 = vmatpush1.msra.mxu1 %v5893_v53 }
0x1127   :  { %2842 = vmatprep.subr.mxu1 %v5894_v28 }
0x1128   :  { %2843 = vmatpush1.msra.mxu1 %v5895_v57  ;;  %v3255_v57 = vld [vmem:[%s5501_s1 + $0x6] sm:$0x3] }
0x1129   :  { %2844 = vmatprep.subr.mxu1 %v5896_v38 }
0x112a   :  { %2845 = vmatpush1.msra.mxu1 %v5897_v34 }
0x112b   :  { %2846 = vmatprep.subr.mxu1 %v5898_v33 }
0x112c   :  { %2847 = vmatpush1.msra.mxu1 %v5899_v20  ;;  %v5902_v20 = vld [vmem:[#allocation64_spill] sm:$0xff] }
0x112d   :  { %2848 = vmatprep.subr.mxu1 %v5900_v45  ;;  %v5903_v45 = vld [vmem:[#allocation65_spill] sm:$0xff] }
0x112e   :  { %2849 = vmatpush1.msra.mxu1 %v5901_v55 }
0x112f   :  { %3586 = vmatprep.subr.mxu1 %v5706_v63 }
0x11cf   :  { %v2443_v22 = vpop.f32.mrf.mxu1 }
0x11d0   :  { %v2444_v52 = vadd.f32 %v5305_v41, %v2443_v22 }
0x11d1   :  { %v3541_v27 = vpop.f32.mrf.mxu1 }
0x11d2   :  { %v2447_v9 = vsel %vm837_vm3, %v2444_v52, -inf }
0x11d3   :  { %2448 = vmax.xlane.f32.xlu1 %v2447_v9 }
0x11e4   :  { %2455 = vrot.lane.b32.xlu1 %v2453_v23, %s3941_s25 }
0x125c   :  { %v2449_v6 = vpop.xlane.xlu1 %2448 }
0x125d   :  { %v2450_v7 = vsub.f32 %v2444_v52, %v2449_v6 }
0x125f   :  { %v2451_v46 = vmul.f32 1.442695, %v2450_v7 }
0x1260   :  { %v2456_v47 = vpop.permute.xlu1 %2455 }
0x1261   :  { %3688 = vpow2.f32 %v2451_v46  ;;  %v2458_v56 = vmul.f32 %v2456_v47, %v2453_v23 }
0x126e   :  { %v3689_v58 = vpop.eup %3688 }
0x126f   :  { %2461 = vrot.lane.b32.xlu1 %v3689_v58, %s3941_s25  ;;  %v2459_v50 = vmul.f32 %v3689_v58, %v2458_v56 }
0x1271   :  { %v2465_v51 = vsel %vm844_vm4, %v2459_v50, 0.0 }
0x1293   :  { %2466 = vadd.xlane.f32.xlu1 %v2465_v51  ;;  %v5927_v51 = vld [vmem:[#allocation75_spill] sm:$0xff] }
0x12e1   :  { %v2462_v43 = vpop.permute.xlu1 %2461 }
0x12e2   :  { %v2464_v17 = vmul.f32 %v2462_v43, %v2458_v56  ;;  %v5928_v43 = vld [vmem:[#allocation76_spill] sm:$0xff] }
0x12e4   :  { %v2468_v19 = vsel %vm844_vm4, %v2464_v17, 0.0 }
0x12e5   :  { %2469 = vadd.xlane.f32.xlu0 %v2468_v19  ;;  %v5930_v19 = vld [vmem:[#allocation78_spill] sm:$0xff] }
0x131c   :  { %v2467_v49 = vpop.xlane.xlu1 %2466 }
0x136e   :  { %v2470_v44 = vpop.xlane.xlu0 %2469 }
0x136f   :  { %v2471_v48 = vadd.f32 %v2470_v44, %v2467_v49  ;;  %v5931_v49 = vld [vmem:[#allocation79_spill] sm:$0xff]  ;;  %v5932_v44 = vld [vmem:[#allocation80_spill] sm:$0xff] }
0x1371   :  { %3690 = vrcp.f32 %v2471_v48  ;;  %v5933_v48 = vld [vmem:[#allocation81_spill] sm:$0xff] }
0x137e   :  { %v3691_v53 = vpop.eup %3690 }
0x137f   :  { %v5314_v28 = vmul.f32 %v3691_v53, %v2464_v17  ;;  %v5321_v38 = vmul.f32 %v3691_v53, %v2459_v50  ;;  %v5929_v17 = vld [vmem:[#allocation77_spill] sm:$0xff]  ;;  %v5934_v53 = vld [vmem:[#allocation82_spill] sm:$0xff] }
0x1381   :  { %2481 = vrot.lane.b32.xlu0 %v5314_v28, %s3944_s18 }
0x1385   :  { %2570 = vperm.xlu0 %3611, %v3255_v57   ;;  %v5935_v57 = vld [vmem:[#allocation83_spill] sm:$0xff] }
0x13f3   :  { %v5323_v34 = vpop.permute.xlu0 %2481 }
0x13f4   :  { %v2492_v33 = vsel %vm861_vm12, %v5321_v38, %v5323_v34 }
0x13f5   :  { %3549 = vmatmul.mubr.msk.f32.vlgmr.msra.gmra.mxu0 %vm439_vm8, %v2492_v33  ;;  %v5936_v33 = vld [vmem:[#allocation84_spill] sm:$0xff] }
0x13f6   :  { %2628 = vmatpush1.msra.mxu0 %v5046_v40  ;;  %2665 = vmatprep.mubr.f32.mxu0 %v5706_v63 }
0x13f7   :  { %2629 = vmatprep.subr.mxu0 %v5053_v42 }
0x13f8   :  { %2630 = vmatpush1.msra.mxu0 %v5059_v11  ;;  %v3257_v11 = vld [vmem:[%s5502_s2 + $0x8] sm:$0x3] }
0x13f9   :  { %2631 = vmatprep.subr.mxu0 %v5902_v20  ;;  %2883 = vmatmul.mubr.f32.vlgmr.msra.gmra.mxu1 %v3257_v11 }
0x13fa   :  { %2632 = vmatpush1.msra.mxu0 %v5903_v45  ;;  %3587 = vmatpush3.msk.msra.mxu1 %vm4500_vm5, %v5786_v8 }
0x13fb   :  { %2698 = vmatprep.subr.mxu0 %v5077_v54  ;;  %3592 = vmatprep.mubr.msk.f32.mxu1 %vm3940_vm2, %v5706_v63 }
0x13fc   :  { %3588 = vmatprep.subr.mxu1 %v5706_v63 }
0x13fd   :  { %3589 = vmatpush3.msk.msra.mxu1 %vm4505_vm6, %v5786_v8 }
0x13fe   :  { %3590 = vmatprep.subr.mxu1 %v5706_v63 }
0x13ff   :  { %3591 = vmatpush3.msk.msra.mxu1 %vm4515_vm7, %v5786_v8  ;;  %v5905_v8 = vld [vmem:[#allocation19_spill] sm:$0xff] }
0x1400   :  { %v2571_v55 = vpop.permute.xlu0 %2570 }
0x14b5   :  { %v2562_v22 = vpop.f32.mrf.mxu0 }
0x14b6   :  { %vm2573_vm10 = vcmp.lt.f32.partialorder %v2562_v22, %v2571_v55 }
0x14b7   :  { %v2574_v52 = vsel %vm2573_vm10, 1, %v5791_v36  ;;  %v3550_v27 = vpop.f32.mrf.mxu0 }
0x14b8   :  { %v2575_v40 = vsel %vm837_vm3, %v2574_v52, 0  ;;  %v5937_v52 = vld [vmem:[#allocation70_spill] sm:$0xff] }
0x14b9   :  { %v2577_v9 = vshrl.u32 %v2575_v40, 16  ;;  %v2576_v23 = vand.u32 65535, %v2575_v40 }
0x14bb   :  { %v2579_v6 = vcvt.s32.f32 %v2577_v9  ;;  %v2578_v42 = vcvt.s32.f32 %v2576_v23 }
0x14bd   :  { %2582 = vadd.xlane.f32.xlu0 %v2579_v6  ;;  %2580 = vadd.xlane.f32.xlu1 %v2578_v42 }
0x1546   :  { %v2583_v54 = vpop.xlane.xlu0 %2582  ;;  %v2581_v7 = vpop.xlane.xlu1 %2580 }
0x1547   :  { %v2585_v46 = vcvt.f32.s32 %v2583_v54  ;;  %v2584_v58 = vcvt.f32.s32 %v2581_v7  ;;  %v2884_v54 = vpop.f32.mrf.mxu1 }
0x1549   :  { %v2586_v37 = vshll.u32 %v2585_v46, 16 }
0x154b   :  { %v2587_v47 = vadd.s32 %v2586_v37, %v2584_v58  ;;  %v2886_v37 = vpop.f32.mrf.mxu1 }
0x154d   :  { %vm2588_vm5 = vcmp.lt.s32.totalorder %v2587_v47, 23 }
0x154e   :  { %v2589_v56 = vsel %vm2588_vm5, %v2587_v47, 23 }
0x154f   :  { %vm2590_vm11 = vcmp.eq.s32.totalorder %v4495_v26, %v2589_v56 }
0x1550   :  { %v3256_v50 = vsel %vm2590_vm11, 1.0, %v5706_v63 }
0x1551   :  { %v5357_v24 = vadd.f32 %v3256_v50, %v5102_v13  ;;  %v5926_v13 = vld [vmem:[#allocation74_spill] sm:$0xff] }
0x1553   :  { %3259 = vmatmul.mubr.msk.f32.vlgmr.msra.gmra.mxu0 %vm439_vm8, %v5357_v24 }
0x1554   :  { %2699 = vmatpush1.msra.mxu0 %v4751_v59  ;;  %2736 = vmatprep.mubr.f32.mxu0 %v5706_v63  ;;  %v5906_v59 = vld [vmem:[#allocation20_spill] sm:$0xff] }
0x1555   :  { %2700 = vmatprep.subr.mxu0 %v4758_v60  ;;  %v5907_v60 = vld [vmem:[#allocation21_spill] sm:$0xff] }
0x1556   :  { %2701 = vmatpush1.msra.mxu0 %v4767_v62  ;;  %v5908_v62 = vld [vmem:[#allocation22_spill] sm:$0xff] }
0x1557   :  { %2702 = vmatprep.subr.mxu0 %v4773_v0  ;;  %v5909_v0 = vld [vmem:[#allocation23_spill] sm:$0xff] }
0x1558   :  { %2703 = vmatpush1.msra.mxu0 %v4779_v1  ;;  %v5910_v1 = vld [vmem:[#allocation24_spill] sm:$0xff] }
0x1559   :  { %3260 = vmatmul.mubr.msk.f32.vlgmr.msra.gmra.mxu0 %vm439_vm8, %v5357_v24  ;;  %2747 = vmatprep.subr.mxu0 %v4784_v2  ;;  %v5911_v2 = vld [vmem:[#allocation25_spill] sm:$0xff] }
0x155a   :  { %2748 = vmatpush1.msra.mxu0 %v4787_v3  ;;  %2811 = vmatprep.mubr.f32.mxu0 %v5706_v63  ;;  %v5912_v3 = vld [vmem:[#allocation26_spill] sm:$0xff] }
0x155b   :  { %2749 = vmatprep.subr.mxu0 %v4791_v4  ;;  %v5913_v4 = vld [vmem:[#allocation28_spill] sm:$0xff] }
0x155c   :  { %2750 = vmatpush1.msra.mxu0 %v4794_v5  ;;  %v5914_v5 = vld [vmem:[#allocation30_spill] sm:$0xff] }
0x155d   :  { %2751 = vmatprep.subr.mxu0 %v4797_v10  ;;  %v5915_v10 = vld [vmem:[#allocation32_spill] sm:$0xff] }
0x155e   :  { %2752 = vmatpush1.msra.mxu0 %v4800_v39  ;;  %v5916_v39 = vld [vmem:[#allocation33_spill] sm:$0xff] }
0x155f   :  { %2753 = vmatprep.subr.mxu0 %v4803_v15  ;;  %v5917_v15 = vld [vmem:[#allocation35_spill] sm:$0xff] }
0x1560   :  { %2754 = vmatpush1.msra.mxu0 %v4806_v35  ;;  %v5918_v35 = vld [vmem:[#allocation36_spill] sm:$0xff] }
0x1561   :  { %2755 = vmatprep.subr.mxu0 %v4809_v30  ;;  %v5919_v30 = vld [vmem:[#allocation37_spill] sm:$0xff] }
0x1562   :  { %2756 = vmatpush1.msra.mxu0 %v4812_v16  ;;  %v5920_v16 = vld [vmem:[#allocation38_spill] sm:$0xff] }
0x1563   :  { %2757 = vmatprep.subr.mxu0 %v4815_v18  ;;  %v5921_v18 = vld [vmem:[#allocation66_spill] sm:$0xff] }
0x1564   :  { %2758 = vmatpush1.msra.mxu0 %v4818_v14  ;;  %v5922_v14 = vld [vmem:[#allocation67_spill] sm:$0xff] }
0x1565   :  { %2759 = vmatprep.subr.mxu0 %v4821_v21  ;;  %v5923_v21 = vld [vmem:[#allocation68_spill] sm:$0xff] }
0x1566   :  { %2760 = vmatpush1.msra.mxu0 %v4824_v31  ;;  %v5924_v31 = vld [vmem:[#allocation69_spill] sm:$0xff] }
0x1567   :  { %2761 = vmatprep.subr.mxu0 %v4827_v12  ;;  %v5925_v12 = vld [vmem:[#allocation73_spill] sm:$0xff] }
0x1568   :  { %2762 = vmatpush1.msra.mxu0 %v5904_v61 }
0x1569   :  { %2763 = vmatprep.subr.mxu0 %v5905_v8 }
0x156a   :  { %2764 = vmatpush1.msra.mxu0 %v5906_v59 }
0x156b   :  { %2765 = vmatprep.subr.mxu0 %v5907_v60 }
0x156c   :  { %2766 = vmatpush1.msra.mxu0 %v5908_v62 }
0x156d   :  { %2767 = vmatprep.subr.mxu0 %v5909_v0 }
0x156e   :  { %2768 = vmatpush1.msra.mxu0 %v5910_v1 }
0x156f   :  { %2769 = vmatprep.subr.mxu0 %v5911_v2 }
0x1570   :  { %2770 = vmatpush1.msra.mxu0 %v5912_v3 }
0x1571   :  { %2771 = vmatprep.subr.mxu0 %v5913_v4 }
0x1572   :  { %2772 = vmatpush1.msra.mxu0 %v5914_v5 }
0x1573   :  { %2773 = vmatprep.subr.mxu0 %v5915_v10 }
0x1574   :  { %2774 = vmatpush1.msra.mxu0 %v5916_v39 }
0x1575   :  { %2775 = vmatprep.subr.mxu0 %v5917_v15 }
0x1576   :  { %2776 = vmatpush1.msra.mxu0 %v5918_v35 }
0x1577   :  { %2777 = vmatprep.subr.mxu0 %v5919_v30 }
0x1578   :  { %2778 = vmatpush1.msra.mxu0 %v5920_v16 }
0x1579   :  { %2812 = vmatmul.mubr.f32.vlgmr.msra.gmra.mxu0 %v3257_v11  ;;  %3551 = vmatprep.subr.mxu0 %v5706_v63 }
0x157a   :  { %3552 = vmatpush3.msra.mxu0 %v5921_v18  ;;  %3583 = vmatprep.mubr.msk.f32.mxu0 %vm3940_vm2, %v5706_v63  ;;  %v2997_v18 = vsub.f32 1.0, %v5357_v24 }
0x157b   :  { %3553 = vmatprep.subr.mxu0 %v5706_v63 }
0x157c   :  { %3554 = vmatpush3.msra.mxu0 %v5922_v14 }
0x157d   :  { %3555 = vmatprep.subr.mxu0 %v5706_v63 }
0x157e   :  { %3556 = vmatpush3.msra.mxu0 %v5923_v21 }
0x157f   :  { %3557 = vmatprep.subr.mxu0 %v5706_v63 }
0x1580   :  { %3558 = vmatpush3.msra.mxu0 %v5924_v31 }
0x1581   :  { %3559 = vmatprep.subr.mxu0 %v5706_v63 }
0x1582   :  { %3560 = vmatpush3.msra.mxu0 %v5925_v12 }
0x1583   :  { %3561 = vmatprep.subr.mxu0 %v5706_v63 }
0x1584   :  { %3562 = vmatpush3.msra.mxu0 %v5926_v13 }
0x1585   :  { %3563 = vmatprep.subr.mxu0 %v5706_v63 }
0x1586   :  { %3564 = vmatpush3.msra.mxu0 %v5927_v51 }
0x1587   :  { %3565 = vmatprep.subr.mxu0 %v5706_v63 }
0x1588   :  { %3566 = vmatpush3.msra.mxu0 %v5928_v43 }
0x1589   :  { %3567 = vmatprep.subr.mxu0 %v5706_v63 }
0x158a   :  { %3568 = vmatpush3.msra.mxu0 %v5929_v17 }
0x158b   :  { %3569 = vmatprep.subr.mxu0 %v5706_v63 }
0x158c   :  { %3570 = vmatpush3.msra.mxu0 %v5930_v19 }
0x158d   :  { %3571 = vmatprep.subr.mxu0 %v5706_v63 }
0x158e   :  { %3572 = vmatpush3.msra.mxu0 %v5931_v49 }
0x158f   :  { %3573 = vmatprep.subr.mxu0 %v5706_v63 }
0x1590   :  { %3574 = vmatpush3.msra.mxu0 %v5932_v44 }
0x1591   :  { %3575 = vmatprep.subr.mxu0 %v5706_v63 }
0x1592   :  { %3576 = vmatpush3.msra.mxu0 %v5933_v48 }
0x1593   :  { %3577 = vmatprep.subr.mxu0 %v5706_v63 }
0x1594   :  { %3578 = vmatpush3.msra.mxu0 %v5934_v53 }
0x1595   :  { %3579 = vmatprep.subr.mxu0 %v5706_v63 }
0x1596   :  { %3580 = vmatpush3.msra.mxu0 %v5935_v57 }
0x1597   :  { %3581 = vmatprep.subr.mxu0 %v5706_v63 }
0x1598   :  { %3582 = vmatpush3.msra.mxu0 %v5936_v33 }
0x1613   :  { %v2667_v20 = vpop.f32.mrf.mxu0 }
0x1614   :  { %v2743_v27 = vadd.f32 %v2667_v20, %v5937_v52  ;;  %v3268_v20 = vld [vmem:[%s5501_s1 + $0x8] sm:$0x3]  ;;  %s3945_s1 = smov [#allocation11]  }
0x1615   :  { %v2669_v45 = vpop.f32.mrf.mxu0 }
0x1616   :  { %v2744_v9 = vadd.f32 %v2669_v45, %v5785_v29  ;;  %v5938_v45 = vld [vmem:[#allocation27_spill] sm:$0xff] }
0x1619   :  { %v2738_v55 = vpop.f32.mrf.mxu0 }
0x161a   :  { %v2745_v47 = vadd.f32 %v2738_v55, %v4444_v32  ;;  %v1398_v55 = vsub.f32 1.0, %v5938_v45 }
0x161b   :  { %v2740_v22 = vpop.f32.mrf.mxu0 }
0x161c   :  { %v2746_v46 = vadd.f32 %v2740_v22, %v4442_v25  ;;  %v2891_v61 = vadd.f32 %v2884_v54, %v2745_v47  ;;  %v3258_v25 = vld [vmem:[%s5503_s3 + $0x8] sm:$0x3]  ;;  %v5939_v22 = vld [vmem:[#allocation61_spill] sm:$0xff] }
0x161d   :  { %v1942_v52 = vsub.f32 1.0, %v5939_v22  ;;  %v5940_v47 = vld [vmem:[#allocation72_spill] sm:$0xff] }
0x161e   :  { %v2892_v58 = vadd.f32 %v2886_v37, %v2746_v46 }
0x1620   :  { %v3263_v56 = vmul.f32 -1.442695, %v2892_v58 }
0x1639   :  { %v2813_v40 = vpop.f32.mrf.mxu0 }
0x163a   :  { %v2889_v23 = vadd.f32 %v2813_v40, %v2743_v27  ;;  %v2486_v27 = vsub.f32 1.0, %v5314_v28 }
0x163b   :  { %v2815_v6 = vpop.f32.mrf.mxu0 }
0x163c   :  { %v3261_v42 = vmul.f32 -1.442695, %v2889_v23  ;;  %v2890_v11 = vadd.f32 %v2815_v6, %v2744_v9 }
0x163e   :  { %3692 = vpow2.f32 %v3261_v42  ;;  %v3262_v7 = vmul.f32 -1.442695, %v2890_v11 }
0x1640   :  { %3694 = vpow2.f32 %v3262_v7 }
0x1641   :  { %3696 = vpow2.f32 %v3263_v56  ;;  %v860_v56 = vsub.f32 1.0, %v5940_v47 }
0x164b   :  { %v3693_v50 = vpop.eup %3692 }
0x164c   :  { %v2896_v8 = vadd.f32 1.0, %v3693_v50 }
0x164d   :  { %v3695_v59 = vpop.eup %3694 }
0x164e   :  { %3698 = vrcp.f32 %v2896_v8  ;;  %v2902_v29 = vadd.f32 1.0, %v3695_v59  ;;  %v3697_v60 = vpop.eup %3696 }
0x164f   :  { %3700 = vtanh.f32 %v2891_v61  ;;  %v2909_v2 = vadd.f32 1.0, %v3697_v60 }
0x1650   :  { %3702 = vrcp.f32 %v2902_v29  ;;  %v5941_v29 = vld [vmem:[#allocation31_spill] sm:$0xff] }
0x1651   :  { %3704 = vrcp.f32 %v2909_v2  ;;  %v1396_v60 = vmul.f32 %v5941_v29, %v860_v56 }
0x165b   :  { %v3699_v62 = vpop.eup %3698 }
0x165c   :  { %v3701_v0 = vpop.eup %3700 }
0x165d   :  { %v3703_v1 = vpop.eup %3702  ;;  %v2913_v32 = vmul.f32 %v3701_v0, %v3699_v62 }
0x165e   :  { %v2912_v3 = vmul.f32 %v3703_v1, %v3258_v25  ;;  %v3705_v5 = vpop.eup %3704  ;;  %v5942_v25 = vld [vmem:[#allocation63_spill] sm:$0xff] }
0x1660   :  { %v2914_v4 = vadd.f32 %v2913_v32, %v2912_v3 }
0x1662   :  { %2920 = vst [vmem:[#allocation11 + $0x8] sm:$0x3] %v2914_v4  ;;  %3706 = vtanh.f32 %v2914_v4 }
0x166f   :  { %v3707_v10 = vpop.eup %3706 }
0x1670   :  { %v2916_v39 = vmul.f32 %v3707_v10, %v3705_v5 }
0x1672   :  { %2918 = vst [vmem:[#allocation10 + $0x8] sm:$0x3] %v2916_v39  ;;  %3584 = vmatmul.mubr.f32.vlgmr.msra.gmra.mxu0 %v2916_v39 }
0x1732   :  { %v2987_v15 = vpop.f32.mrf.mxu0 }
0x1733   :  { %v2988_v35 = vadd.f32 %v5305_v41, %v2987_v15 }
0x1734   :  { %v3585_v30 = vpop.f32.mrf.mxu0 }
0x1735   :  { %v2991_v16 = vsel %vm837_vm3, %v2988_v35, -inf }
0x1736   :  { %2992 = vmax.xlane.f32.xlu1 %v2991_v16 }
0x1747   :  { %2999 = vrot.lane.b32.xlu1 %v2997_v18, %s3941_s25 }
0x17bf   :  { %v2993_v14 = vpop.xlane.xlu1 %2992 }
0x17c0   :  { %v2994_v21 = vsub.f32 %v2988_v35, %v2993_v14 }
0x17c2   :  { %v2995_v31 = vmul.f32 1.442695, %v2994_v21 }
0x17c3   :  { %v3000_v12 = vpop.permute.xlu1 %2999 }
0x17c4   :  { %3708 = vpow2.f32 %v2995_v31  ;;  %v3002_v13 = vmul.f32 %v3000_v12, %v2997_v18 }
0x17d1   :  { %v3709_v51 = vpop.eup %3708 }
0x17d2   :  { %3005 = vrot.lane.b32.xlu1 %v3709_v51, %s3941_s25  ;;  %v3003_v43 = vmul.f32 %v3709_v51, %v3002_v13 }
0x17d4   :  { %v3009_v41 = vsel %vm844_vm4, %v3003_v43, 0.0 }
0x17d5   :  { %3010 = vadd.xlane.f32.xlu0 %v3009_v41 }
0x1844   :  { %v3006_v17 = vpop.permute.xlu1 %3005 }
0x1845   :  { %v3008_v19 = vmul.f32 %v3006_v17, %v3002_v13 }
0x1847   :  { %v3012_v49 = vsel %vm844_vm4, %v3008_v19, 0.0 }
0x1848   :  { %3013 = vadd.xlane.f32.xlu1 %v3012_v49 }
0x185e   :  { %v3011_v44 = vpop.xlane.xlu0 %3010 }
0x18d1   :  { %v3014_v48 = vpop.xlane.xlu1 %3013 }
0x18d2   :  { %v3015_v53 = vadd.f32 %v3014_v48, %v3011_v44 }
0x18d4   :  { %3710 = vrcp.f32 %v3015_v53 }
0x18e1   :  { %v3711_v57 = vpop.eup %3710 }
0x18e2   :  { %v3019_v33 = vmul.f32 %v3711_v57, %v3008_v19  ;;  %v3018_v40 = vmul.f32 %v3711_v57, %v3003_v43 }
0x18e4   :  { %3023 = vrot.lane.b32.xlu0 %v3019_v33, %s3944_s18 }
0x18e8   :  { %3106 = vperm.xlu0 %3611, %v3268_v20  }
0x18ec   :  { %1400 = vrot.lane.b32.xlu0 %v1398_v55, %s3944_s18 }
0x18f0   :  { %1944 = vrot.lane.b32.xlu0 %v1942_v52, %s3944_s18 }
0x18f4   :  { %2488 = vrot.lane.b32.xlu0 %v2486_v27, %s3944_s18  ;;  %s3175_s18 = sshll.u32 %s3945_s1, 4  ;;  %s3176_s18 = int_to_ptr.vmem [resolvable:$true] %s3175_s18 }
0x18f5   :  { %s3845_s15 = scalar_lea.vmem %s3176_s18, 160  ;;  %p3850_p11 = scmp.lt.s32.totalorder %s3176_s18, %s3176_s18 }
0x18f6   :  { %p3846_p10 = scmp.ne.s32.totalorder %s3176_s18, %s3845_s15  ;;  %p3851_p12 = scmp.lt.s32.totalorder %s3845_s15, %s3845_s15 }
0x18f8   :  { %p3852_p13 = por %p3851_p12, %p3850_p11 }
0x18fa   :  { %p3853_p0 = pnand %p3852_p13, %p3846_p10 }
0x1956   :  { %v3024_v9 = vpop.permute.xlu0 %3023 }
0x1957   :  { %v3028_v23 = vsel %vm861_vm12, %v3018_v40, %v3024_v9 }
0x1958   :  { %3593 = vmatmul.mubr.msk.f32.vlgmr.msra.gmra.mxu1 %vm439_vm8, %v3028_v23 }
0x1963   :  { %v3107_v6 = vpop.permute.xlu0 %3106 }
0x1967   :  { %v1401_v42 = vpop.permute.xlu0 %1400 }
0x1968   :  { %v1403_v8 = vmul.f32 %v1401_v42, %v860_v56 }
0x196a   :  { %v1940_v0 = vmul.f32 %v5942_v25, %v1403_v8 }
0x196b   :  { %v1945_v54 = vpop.permute.xlu0 %1944 }
0x196c   :  { %v1947_v62 = vmul.f32 %v1945_v54, %v1403_v8 }
0x196e   :  { %v2484_v2 = vmul.f32 %v5323_v34, %v1947_v62 }
0x196f   :  { %v2489_v59 = vpop.permute.xlu0 %2488 }
0x1970   :  { %v2491_v1 = vmul.f32 %v2489_v59, %v1947_v62 }
0x1972   :  { %v3026_v3 = vmul.f32 %v3024_v9, %v2491_v1 }
0x1a18   :  { %v3098_v11 = vpop.f32.mrf.mxu1 }
0x1a19   :  { %vm3109_vm2 = vcmp.lt.f32.partialorder %v3098_v11, %v3107_v6 }
0x1a1a   :  { %v3110_v7 = vsel %vm3109_vm2, 1, %v5791_v36  ;;  %v3594_v46 = vpop.f32.mrf.mxu1  ;;  %v1397_v36 = vadd.f32 %v1396_v60, %v5940_v47 }
0x1a1b   :  { %v3111_v37 = vsel %vm837_vm3, %v3110_v7, 0 }
0x1a1c   :  { %v3113_v58 = vshrl.u32 %v3111_v37, 16  ;;  %v3112_v28 = vand.u32 65535, %v3111_v37  ;;  %v1941_v32 = vadd.f32 %v1940_v0, %v1397_v36 }
0x1a1e   :  { %v3115_v50 = vcvt.s32.f32 %v3113_v58  ;;  %v3114_v61 = vcvt.s32.f32 %v3112_v28  ;;  %v2485_v4 = vadd.f32 %v2484_v2, %v1941_v32 }
0x1a20   :  { %3118 = vadd.xlane.f32.xlu1 %v3115_v50  ;;  %3116 = vadd.xlane.f32.xlu0 %v3114_v61  ;;  %v3027_v5 = vadd.f32 %v3026_v3, %v2485_v4 }
0x1a22   :  { %v3131_v10 = vsub.f32 1.0, %v3027_v5 }
0x1a31   :  { %3133 = vrot.lane.b32.xlu1 %v3131_v10, %s3941_s25 }
0x1a32   :  { %3856 = shalt.err (!%p3853_p0)
}
0x1a33   :  { %s3946_s16 = smov 2   ;;  %v5943_v34 = vld [vmem:[#allocation29_spill] sm:$0xff]  ;;  %v5944_v15 = vld [vmem:[#allocation62_spill] sm:$0xff]  ;;  %v2478_v18 = vsub.f32 1.0, %v5321_v38  ;;  %s3948_s4 = smov [#allocation10]  }
0x1a34   :  { %3181 = dma.vmem_to_hbm [thread:$0]  %s3176_s18, 160, %s5513_s13, [#allocation12], %s3937_s29, %s3937_s29, %s3946_s16   ;;  %v1390_v39 = vsub.f32 1.0, %v5943_v34  ;;  %v1934_v35 = vsub.f32 1.0, %v5944_v15  ;;  %v1388_v30 = vmul.f32 %v5943_v34, %v860_v56 }
0x1a35   :  { %s3947_s13 = smov [#allocation8]   ;;  %s3163_s6 = sshll.u32 %s3948_s4, 4  ;;  %s3164_s6 = int_to_ptr.vmem [resolvable:$true] %s3163_s6 }
0x1a36   :  { %v1391_v16 = vmul.f32 %v1390_v39, %v860_v56  ;;  %v1389_v31 = vadd.f32 %v1388_v30, %v5940_v47  ;;  %s3154_s25 = sshll.u32 %s3947_s13, 4  ;;  %s3949_s0 = smov [#allocation7]   ;;  %s3155_s25 = int_to_ptr.vmem [resolvable:$true] %s3154_s25 }
0x1a37   :  { %s3144_s20 = sshll.u32 %s3949_s0, 4  ;;  %s3865_s21 = scalar_lea.vmem %s3155_s25, 32  ;;  %s3145_s20 = int_to_ptr.vmem [resolvable:$true] %s3144_s20 }
0x1a38   :  { %v1932_v14 = vmul.f32 %v5944_v15, %v1391_v16  ;;  %v1935_v21 = vmul.f32 %v1934_v35, %v1391_v16  ;;  %p3866_p1 = scmp.ne.s32.totalorder %s3155_s25, %s3865_s21  ;;  %p3870_p2 = scmp.lt.s32.totalorder %s3155_s25, %s3155_s25 }
0x1a39   :  { %p3871_p3 = scmp.lt.s32.totalorder %s3865_s21, %s3865_s21 }
0x1a3a   :  { %v2476_v12 = vmul.f32 %v5321_v38, %v1935_v21  ;;  %v2479_v13 = vmul.f32 %v2478_v18, %v1935_v21  ;;  %v1933_v51 = vadd.f32 %v1932_v14, %v1389_v31 }
0x1a3b   :  { %p3872_p4 = por %p3871_p3, %p3870_p2 }
0x1a3c   :  { %v3020_v43 = vmul.f32 %v3018_v40, %v2479_v13  ;;  %v2477_v49 = vadd.f32 %v2476_v12, %v1933_v51 }
0x1a3d   :  { %p3873_p5 = pnand %p3872_p4, %p3866_p1 }
0x1a3e   :  { %v3021_v53 = vadd.f32 %v3020_v43, %v2477_v49 }
0x1aa9   :  { %v3119_v41 = vpop.xlane.xlu1 %3118  ;;  %v3117_v17 = vpop.xlane.xlu0 %3116 }
0x1aaa   :  { %v3121_v19 = vcvt.f32.s32 %v3119_v41  ;;  %v3120_v48 = vcvt.f32.s32 %v3117_v17 }
0x1aac   :  { %v3122_v44 = vshll.u32 %v3121_v19, 16 }
0x1aad   :  { %v3134_v57 = vpop.permute.xlu1 %3133 }
0x1aae   :  { %v3123_v33 = vadd.s32 %v3122_v44, %v3120_v48  ;;  %v3136_v20 = vmul.f32 %v3134_v57, %v3021_v53 }
0x1ab0   :  { %vm3124_vm3 = vcmp.lt.s32.totalorder %v3123_v33, 23  ;;  %3137 = vst.msk [vmem:[#allocation8] sm:$0x3] %vm844_vm4, %v3136_v20 }
0x1ab1   :  { %v3125_v38 = vsel %vm3124_vm3, %v3123_v33, 23 }
0x1ab2   :  { %3876 = shalt.err (!%p3873_p5)
}
0x1ab3   :  { %3157 = dma.vmem_to_hbm [thread:$0]  %s3155_s25, 32, %s5511_s11, [#allocation9]   ;;  %vm3126_vm6 = vcmp.eq.s32.totalorder %v4495_v26, %v3125_v38 }
0x1ab4   :  { %s3885_s8 = scalar_lea.vmem %s3164_s6, 160  ;;  %p3890_p7 = scmp.lt.s32.totalorder %s3164_s6, %s3164_s6 }
0x1ab5   :  { %p3886_p6 = scmp.ne.s32.totalorder %s3164_s6, %s3885_s8  ;;  %p3891_p8 = scmp.lt.s32.totalorder %s3885_s8, %s3885_s8 }
0x1ab7   :  { %p3892_p9 = por %p3891_p8, %p3890_p7 }
0x1ab9   :  { %p3893_p10 = pnand %p3892_p9, %p3886_p6 }
0x1abb   :  { %3896 = shalt.err (!%p3893_p10)
}
0x1abc   :  { %3169 = dma.vmem_to_hbm [thread:$0]  %s3164_s6, 160, %s5512_s12, [#allocation9], %s3937_s29, %s3937_s29, %s3946_s16   ;;  %v3269_v45 = vsel %vm3126_vm6, 1.0, %v5706_v63 }
0x1abd   :  { %v3129_v55 = vadd.f32 %v3269_v45, %v5357_v24  ;;  %s3905_s11 = scalar_lea.vmem %s3145_s20, 32  ;;  %p3910_p12 = scmp.lt.s32.totalorder %s3145_s20, %s3145_s20 }
0x1abe   :  { %p3906_p11 = scmp.ne.s32.totalorder %s3145_s20, %s3905_s11  ;;  %p3911_p13 = scmp.lt.s32.totalorder %s3905_s11, %s3905_s11 }
0x1abf   :  { %3130 = vst.msk [vmem:[#allocation7] sm:$0x3] %vm844_vm4, %v3129_v55 }
0x1ac0   :  { %p3912_p0 = por %p3911_p13, %p3910_p12 }
0x1ac2   :  { %p3913_p1 = pnand %p3912_p0, %p3906_p11 }
0x1ac4   :  { %3916 = shalt.err (!%p3913_p1)
}
0x1ac5   :  { %3147 = dma.vmem_to_hbm [thread:$0]  %s3145_s20, 32, %s5510_s10, [#allocation4]  }
0x1ac6   :  { %3929 = dma.done.wait [#allocation4], 32  }
0x1ac7   :  { %3930 = vsyncadd [#allocation4], 4294967264 }
0x1ac8   :  { %3931 = dma.done.wait [#allocation9], 192  }
0x1ac9   :  { %3932 = vsyncadd [#allocation9], 4294967104 }
0x1aca   :  { %3933 = dma.done.wait [#allocation12], 160  }
0x1acb   :  { %3934 = vsyncadd [#allocation12], 4294967136 }
0x1acc   :  { %3194 = vsyncpa [#allocation3], 1 }
0x1acd   :  { %3195 = vsyncpa [#allocation6], 1 }
0x1ace   :  { %3196 = vsyncpa [#allocation4], 1 }
0x1acf   :  { %3197 = vsyncpa [#allocation9], 1 }
0x1ad0   :  { %3198 = vsyncpa [#allocation12], 1 }

</bundles_post_ra>
